<compile_context>
chip_gen: v5e
topology: v5e:2x2
jax: 0.10.0
libtpu: 0.0.40
codegen_flags: <defaults>
</compile_context>

<pallas_src>
import functools

import jax
import jax.numpy as jnp
import numpy as np
from jax import lax
from jax.experimental import pallas as pl
from jax.experimental.pallas import tpu as pltpu


_SUBLANE = 8
_LANE = 128

# Python-unroll the time loop only when the sequence is at most this long;
# longer sequences use lax.fori_loop so vreg pressure / compile time stay flat.
_UNROLL_SEQ_LIMIT = 32


def _round_up(x, m):
    return (x + m - 1) // m * m


def _sigmoid(x):
    # sigmoid(x) == 0.5 * (1 + tanh(x / 2)) exactly: a single EUP push (tanh)
    # per gate instead of a possible exp + divide pair on the serial chain.
    return 0.5 * (jnp.tanh(0.5 * x) + 1.0)


def encoder_kernel(x_ref, wih_ref, whh_ref, b_ref,
                   out_ref, hN_ref, cN_ref,
                   xproj_ref, hseq_ref, *, n_layers, hid_pad):
    """Fused multi-layer LSTM over a full (time-major, padded) sequence.

    x_ref:     (S, Bt, Ds)                layer-0 inputs (zero padded)
    wih_ref:   (n_layers, Ds, 4*Hp)       input->gate weights (transposed, padded, f32)
    whh_ref:   (n_layers, Hp, 4*Hp)       hidden->gate weights (transposed, padded, bf16)
    b_ref:     (n_layers, 1, 4*Hp)        combined bias (b_ih + b_hh, padded)
    out_ref:   (S, Bt, Hp)                last layer's hidden sequence
    hN_ref:    (n_layers, Bt, Hp)         final hidden state per layer
    cN_ref:    (n_layers, Bt, Hp)         final cell state per layer
    xproj_ref: (S*Bt, 4*Hp)   scratch     hoisted x @ W_ih + b for current layer
    hseq_ref:  (S*Bt, Hp)     scratch     current layer's hidden sequence

    Gate layout along the 4*Hp axis: [i | f | g | o], each gate in its own
    lane-aligned Hp-wide (multiple of 128) block, so gate slices are free views.
    """
    S, Bt, Ds = x_ref.shape
    Hp = hid_pad

    for layer in range(n_layers):          # static unroll over layers
        # ---- Hoisted input projection: ONE matmul over the whole sequence,
        #      bias folded in once, written straight into the 2-D scratch.
        if layer == 0:
            # Leading-dim collapse (S, Bt, Ds) -> (S*Bt, Ds) is layout-preserving.
            x_flat = x_ref[...].reshape(S * Bt, Ds)
            w_in = wih_ref[layer]                      # (Ds, 4Hp)
        else:
            x_flat = hseq_ref[...]                     # (S*Bt, Hp) prev layer's h-seq
            w_in = wih_ref[layer, :Hp, :]              # Ref slice: skip padding rows
        xproj_ref[...] = (
            jnp.dot(x_flat, w_in, preferred_element_type=jnp.float32)
            + b_ref[layer]
        )

        whh = whh_ref[layer]                           # (Hp, 4Hp), bf16
        last_layer = layer == n_layers - 1

        def step(t, h, c, *, whh=whh, last_layer=last_layer):
            row = (t * Bt if isinstance(t, int)
                   else pl.multiple_of(t * Bt, _SUBLANE))
            # Serial chain per timestep: bf16 h @ W_hh (f32 accumulation) plus
            # f32 elementwise gate math. Strictly sequential in t.
            gates = xproj_ref[pl.ds(row, Bt), :] + jnp.dot(
                h.astype(whh.dtype), whh, preferred_element_type=jnp.float32)
            i_g = _sigmoid(gates[:, 0 * Hp:1 * Hp])    # lane-aligned views
            f_g = _sigmoid(gates[:, 1 * Hp:2 * Hp])
            g_g = jnp.tanh(gates[:, 2 * Hp:3 * Hp])
            o_g = _sigmoid(gates[:, 3 * Hp:4 * Hp])
            c_new = f_g * c + i_g * g_g
            h_new = o_g * jnp.tanh(c_new)
            if last_layer:
                out_ref[t] = h_new                     # straight to output block
            else:
                hseq_ref[pl.ds(row, Bt), :] = h_new    # feeds next layer's projection
            return h_new, c_new

        h = jnp.zeros((Bt, Hp), jnp.float32)
        c = jnp.zeros((Bt, Hp), jnp.float32)
        if S <= _UNROLL_SEQ_LIMIT:
            for t in range(S):                         # static unroll (small S)
                h, c = step(t, h, c)
        else:
            h, c = lax.fori_loop(0, S, lambda t, hc: step(t, *hc), (h, c))

        hN_ref[layer] = h
        cN_ref[layer] = c


def init_encoder_params(key, input_dim, hid_dim, n_layers):
    """Deterministic init matching nn.LSTM's U(-1/sqrt(H), 1/sqrt(H))."""
    params = []
    k = 1.0 / np.sqrt(hid_dim)
    for layer in range(n_layers):
        d_in = input_dim if layer == 0 else hid_dim
        key, k1, k2, k3, k4 = jax.random.split(key, 5)
        w_ih = jax.random.uniform(k1, (4 * hid_dim, d_in), jnp.float32, -k, k)
        w_hh = jax.random.uniform(k2, (4 * hid_dim, hid_dim), jnp.float32, -k, k)
        b_ih = jax.random.uniform(k3, (4 * hid_dim,), jnp.float32, -k, k)
        b_hh = jax.random.uniform(k4, (4 * hid_dim,), jnp.float32, -k, k)
        params.append((w_ih, w_hh, b_ih, b_hh))
    return params


def prepare_encoder_params(params, input_dim, hid_dim, *, whh_dtype=jnp.bfloat16):
    """One-time weight prep: transpose, pad to (8,128) granularity, stack layers.

    Each gate's weight/bias block lands in its own lane-aligned Hp-wide column
    region so in-kernel gate slices are free views. Padded rows/columns are
    zero, which keeps padded hidden lanes exactly zero through the recurrence.
    W_hh is stored in bf16 (recurrent matmul operand); W_ih / bias stay f32.
    """
    n_layers = len(params)
    Hp = _round_up(hid_dim, _LANE)
    Ds = max(_round_up(input_dim, _LANE), Hp)
    wih_all = np.zeros((n_layers, Ds, 4 * Hp), np.float32)
    whh_all = np.zeros((n_layers, Hp, 4 * Hp), np.float32)
    b_all = np.zeros((n_layers, 1, 4 * Hp), np.float32)
    for layer, (w_ih, w_hh, b_ih, b_hh) in enumerate(params):
        d_in = input_dim if layer == 0 else hid_dim
        w_ih = np.asarray(w_ih)
        w_hh = np.asarray(w_hh)
        b = np.asarray(b_ih) + np.asarray(b_hh)
        for g in range(4):
            rows = slice(g * hid_dim, (g + 1) * hid_dim)
            cols = slice(g * Hp, g * Hp + hid_dim)
            wih_all[layer, :d_in, cols] = w_ih[rows, :].T
            whh_all[layer, :hid_dim, cols] = w_hh[rows, :].T
            b_all[layer, 0, cols] = b[rows]
    meta = dict(n_layers=n_layers, input_dim=input_dim, hid_dim=hid_dim,
                hid_pad=Hp, d_stack=Ds)
    return (jnp.asarray(wih_all),
            jnp.asarray(whh_all).astype(whh_dtype),
            jnp.asarray(b_all),
            meta)


def _choose_batch_tile(b_pad8, max_batch_tile):
    """Batch tile: as large as allowed (multiple of 8), but keep >= 2 grid
    steps when the batch allows it so the parallel axis can shard across both
    v7x TensorCores (a single-step grid leaves one TC idle)."""
    bt = min(b_pad8, _round_up(max_batch_tile, _SUBLANE))
    if b_pad8 > _SUBLANE:
        bt = min(bt, _round_up(-(-b_pad8 // 2), _SUBLANE))
    return max(bt, _SUBLANE)


def encoder_forward(prepared, X, *, max_batch_tile=256):
    """Pallas Encoder.forward: X (B, S, D) -> (outputs, hidden, cell)."""
    wih, whh, bias, meta = prepared
    B, S, D = X.shape
    H = meta["hid_dim"]
    Hp = meta["hid_pad"]
    Ds = meta["d_stack"]
    n_layers = meta["n_layers"]
    assert D == meta["input_dim"]

    B_pad8 = _round_up(B, _SUBLANE)
    Bt = _choose_batch_tile(B_pad8, max_batch_tile)
    B_pad = _round_up(B_pad8, Bt)

    # Pad + time-major: (B, S, D) -> (S, B_pad, Ds). Tiny HBM op here; the
    # kernel consumes everything time-major and lane/sublane aligned.
    x = jnp.transpose(X.astype(jnp.float32), (1, 0, 2))
    x = jnp.pad(x, ((0, 0), (0, B_pad - B), (0, Ds - D)))

    grid = (B_pad // Bt,)
    kernel = functools.partial(encoder_kernel, n_layers=n_layers, hid_pad=Hp)

    # Scoped-VMEM budget (double-buffered in/out blocks + fused scratches) with
    # headroom, so bigger Bt/S/hid_dim don't trip the 16/32 MiB scoped default.
    f32b = 4
    vmem_need = (
        2 * S * Bt * Ds * f32b                                # x blocks
        + 2 * n_layers * Ds * 4 * Hp * f32b                   # W_ih
        + 2 * n_layers * Hp * 4 * Hp * whh.dtype.itemsize     # W_hh (bf16)
        + 2 * n_layers * 4 * Hp * f32b                        # bias
        + 2 * S * Bt * Hp * f32b                              # out blocks
        + 4 * n_layers * Bt * Hp * f32b                       # hN + cN blocks
        + S * Bt * 4 * Hp * f32b                              # xproj scratch
        + S * Bt * Hp * f32b)                                 # hseq scratch
    vmem_limit = int(min(64 * 2 ** 20, max(32 * 2 ** 20, 1.5 * vmem_need)))

    out_tm, h_n, c_n = pl.pallas_call(
        kernel,
        out_shape=(
            jax.ShapeDtypeStruct((S, B_pad, Hp), jnp.float32),
            jax.ShapeDtypeStruct((n_layers, B_pad, Hp), jnp.float32),
            jax.ShapeDtypeStruct((n_layers, B_pad, Hp), jnp.float32),
        ),
        grid_spec=pltpu.PrefetchScalarGridSpec(
            num_scalar_prefetch=0,
            grid=grid,
            in_specs=[
                pl.BlockSpec((S, Bt, Ds), lambda b: (0, b, 0)),
                # Weights/bias have a constant index_map: the block index never
                # changes across batch tiles, so they are not re-DMA'd per step.
                # TODO(synk): at very large hid_dim, stream layers via an extra
                # 'arbitrary' grid axis (or single-buffer these blocks) to stop
                # resident weight VMEM scaling with n_layers.
                pl.BlockSpec((n_layers, Ds, 4 * Hp), lambda b: (0, 0, 0)),
                pl.BlockSpec((n_layers, Hp, 4 * Hp), lambda b: (0, 0, 0)),
                pl.BlockSpec((n_layers, 1, 4 * Hp), lambda b: (0, 0, 0)),
            ],
            out_specs=(
                pl.BlockSpec((S, Bt, Hp), lambda b: (0, b, 0)),
                pl.BlockSpec((n_layers, Bt, Hp), lambda b: (0, b, 0)),
                pl.BlockSpec((n_layers, Bt, Hp), lambda b: (0, b, 0)),
            ),
            scratch_shapes=[
                pltpu.VMEM((S * Bt, 4 * Hp), jnp.float32),   # hoisted x-projection
                pltpu.VMEM((S * Bt, Hp), jnp.float32),       # inter-layer hidden seq
            ],
        ),
        compiler_params=pltpu.CompilerParams(
            dimension_semantics=("parallel",),               # batch shards across TCs
            vmem_limit_bytes=vmem_limit,
        ),
    )(x, wih, whh, bias)

    outputs = jnp.transpose(out_tm[:, :B, :H], (1, 0, 2))    # (B, S, H) batch-first
    hidden = h_n[:, :B, :H]                                   # (n_layers, B, H)
    cell = c_n[:, :B, :H]                                     # (n_layers, B, H)
    return outputs, hidden, cell


def encoder_reference(params, X, hid_dim):
    """Pure-JAX reference LSTM (same math as PyTorch nn.LSTM, eval mode)."""
    x = jnp.transpose(X, (1, 0, 2))               # (S, B, D)
    hs, cs = [], []
    for (w_ih, w_hh, b_ih, b_hh) in params:
        B = x.shape[1]

        def cell_fn(carry, x_t, w_ih=w_ih, w_hh=w_hh, b_ih=b_ih, b_hh=b_hh):
            h, c = carry
            gates = x_t @ w_ih.T + h @ w_hh.T + b_ih + b_hh
            i, f, g, o = jnp.split(gates, 4, axis=-1)
            c_new = jax.nn.sigmoid(f) * c + jax.nn.sigmoid(i) * jnp.tanh(g)
            h_new = jax.nn.sigmoid(o) * jnp.tanh(c_new)
            return (h_new, c_new), h_new

        init = (jnp.zeros((B, hid_dim), jnp.float32),
                jnp.zeros((B, hid_dim), jnp.float32))
        (h_f, c_f), out = lax.scan(cell_fn, init, x)
        x = out
        hs.append(h_f)
        cs.append(c_f)
    return jnp.transpose(x, (1, 0, 2)), jnp.stack(hs), jnp.stack(cs)


if __name__ == "__main__":
    # Small shapes consistent with Encoder(input_dim, hid_dim, n_layers, dropout)
    batch, seq, input_dim, hid_dim, n_layers = 2, 8, 4, 32, 2

    key = jax.random.PRNGKey(0)
    key, kx, kp = jax.random.split(key, 3)
    X = jax.random.normal(kx, (batch, seq, input_dim), jnp.float32)
    params = init_encoder_params(kp, input_dim, hid_dim, n_layers)

    # One-time weight preparation (transpose / pad / stack / bf16 W_hh).
    prepared = prepare_encoder_params(params, input_dim, hid_dim)

    outputs, hidden, cell = encoder_forward(prepared, X)
    jax.block_until_ready((outputs, hidden, cell))

    ref_out, ref_h, ref_c = encoder_reference(params, X, hid_dim)
    assert outputs.shape == (batch, seq, hid_dim)
    assert hidden.shape == (n_layers, batch, hid_dim)
    assert cell.shape == (n_layers, batch, hid_dim)
    # bf16 operands on the recurrent matmul (f32 accumulation) => ~1e-3 level
    # error in practice; 2e-2 tolerance leaves ample margin vs the f32 reference.
    np.testing.assert_allclose(np.asarray(outputs), np.asarray(ref_out),
                               rtol=2e-2, atol=2e-2)
    np.testing.assert_allclose(np.asarray(hidden), np.asarray(ref_h),
                               rtol=2e-2, atol=2e-2)
    np.testing.assert_allclose(np.asarray(cell), np.asarray(ref_c),
                               rtol=2e-2, atol=2e-2)

    print("KERNEL_OK")
</pallas_src>

<mosaic_0001>
module attributes {stable_mosaic.version = 11 : i64} {
  func.func @encoder_kernel(%arg0: i32, %arg1: memref<8x8x128xf32, #tpu.memory_space<vmem>>, %arg2: memref<2x128x512xf32, #tpu.memory_space<vmem>>, %arg3: memref<2x128x512xbf16, #tpu.memory_space<vmem>>, %arg4: memref<2x1x512xf32, #tpu.memory_space<vmem>>, %arg5: memref<8x8x128xf32, #tpu.memory_space<vmem>>, %arg6: memref<2x8x128xf32, #tpu.memory_space<vmem>>, %arg7: memref<2x8x128xf32, #tpu.memory_space<vmem>>, %arg8: memref<64x512xf32, #tpu.memory_space<vmem>>, %arg9: memref<64x128xf32, #tpu.memory_space<vmem>>) attributes {dimension_semantics = [#tpu.dimension_semantics<parallel>], iteration_bounds = array<i64: 1>, scalar_prefetch = 0 : i64, scratch_operands = 2 : i64, tpu.core_type = #tpu.core_type<tc>, window_params = [{transform_indices = @transform_0, window_bounds = array<i64: 8, 8, 128>}, {pipeline_mode = #tpu.pipeline_mode<synchronous>, transform_indices = @transform_1, window_bounds = array<i64: 2, 128, 512>}, {pipeline_mode = #tpu.pipeline_mode<synchronous>, transform_indices = @transform_2, window_bounds = array<i64: 2, 128, 512>}, {pipeline_mode = #tpu.pipeline_mode<synchronous>, transform_indices = @transform_3, window_bounds = array<i64: 2, 1, 512>}, {transform_indices = @transform_4, window_bounds = array<i64: 8, 8, 128>}, {transform_indices = @transform_5, window_bounds = array<i64: 2, 8, 128>}, {transform_indices = @transform_6, window_bounds = array<i64: 2, 8, 128>}]} {
    %c0 = arith.constant 0 : index
    %c0_0 = arith.constant 0 : index
    %c0_1 = arith.constant 0 : index
    %0 = vector.load %arg1[%c0, %c0_0, %c0_1] : memref<8x8x128xf32, #tpu.memory_space<vmem>>, vector<8x8x128xf32>
    %1 = vector.shape_cast %0 : vector<8x8x128xf32> to vector<64x128xf32>
    %c0_2 = arith.constant 0 : index
    %c0_3 = arith.constant 0 : index
    %c0_4 = arith.constant 0 : index
    %2 = vector.load %arg2[%c0_2, %c0_3, %c0_4] : memref<2x128x512xf32, #tpu.memory_space<vmem>>, vector<1x128x512xf32>
    %3 = vector.shape_cast %2 : vector<1x128x512xf32> to vector<128x512xf32>
    %cst = arith.constant dense<0.000000e+00> : vector<64x512xf32>
    %4 = tpu.matmul %1, %3, %cst {dimension_numbers = #tpu.dot_dimension_numbers<[1], [0], [0], [1], [0, 0, 1, 1], [], []>} : vector<64x128xf32>, vector<128x512xf32>, vector<64x512xf32> -> vector<64x512xf32>
    %c0_5 = arith.constant 0 : index
    %c0_6 = arith.constant 0 : index
    %c0_7 = arith.constant 0 : index
    %5 = vector.load %arg4[%c0_5, %c0_6, %c0_7] : memref<2x1x512xf32, #tpu.memory_space<vmem>>, vector<1x1x512xf32>
    %6 = vector.shape_cast %5 : vector<1x1x512xf32> to vector<1x512xf32>
    %7 = vector.broadcast %6 : vector<1x512xf32> to vector<64x512xf32>
    %8 = arith.addf %4, %7 : vector<64x512xf32>
    %c0_8 = arith.constant 0 : index
    %c0_9 = arith.constant 0 : index
    %9 = vector.load %arg8[%c0_8, %c0_9] : memref<64x512xf32, #tpu.memory_space<vmem>>, vector<64x512xf32>
    tpu.vector_store %arg8[%c0_8, %c0_9], %8 {strides = array<i32>} : memref<64x512xf32, #tpu.memory_space<vmem>>, vector<64x512xf32>,
    %c0_10 = arith.constant 0 : index
    %c0_11 = arith.constant 0 : index
    %c0_12 = arith.constant 0 : index
    %10 = vector.load %arg3[%c0_10, %c0_11, %c0_12] : memref<2x128x512xbf16, #tpu.memory_space<vmem>>, vector<1x128x512xbf16>
    %11 = vector.shape_cast %10 : vector<1x128x512xbf16> to vector<128x512xbf16>
    %cst_13 = arith.constant 0.000000e+00 : f32
    %12 = vector.broadcast %cst_13 : f32 to vector<8x128xf32>
    %cst_14 = arith.constant 0.000000e+00 : f32
    %13 = vector.broadcast %cst_14 : f32 to vector<8x128xf32>
    %c0_15 = arith.constant 0 : index
    %c0_16 = arith.constant 0 : index
    %14 = vector.load %arg8[%c0_15, %c0_16] : memref<64x512xf32, #tpu.memory_space<vmem>>, vector<8x512xf32>
    %15 = arith.truncf %12 : vector<8x128xf32> to vector<8x128xbf16>
    %cst_17 = arith.constant dense<0.000000e+00> : vector<8x512xf32>
    %16 = tpu.matmul %15, %11, %cst_17 {dimension_numbers = #tpu.dot_dimension_numbers<[1], [0], [0], [1], [0, 0, 1, 1], [], []>} : vector<8x128xbf16>, vector<128x512xbf16>, vector<8x512xf32> -> vector<8x512xf32>
    %17 = arith.addf %14, %16 : vector<8x512xf32>
    %18 = vector.extract_strided_slice %17 {offsets = [0, 0], sizes = [8, 128], strides = [1, 1]} : vector<8x512xf32> to vector<8x128xf32>
    %cst_18 = arith.constant 5.000000e-01 : f32
    %19 = vector.broadcast %cst_18 : f32 to vector<8x128xf32>
    %20 = arith.mulf %19, %18 : vector<8x128xf32>
    %21 = math.tanh %20 : vector<8x128xf32>
    %cst_19 = arith.constant 1.000000e+00 : f32
    %22 = vector.broadcast %cst_19 : f32 to vector<8x128xf32>
    %23 = arith.addf %21, %22 : vector<8x128xf32>
    %cst_20 = arith.constant 5.000000e-01 : f32
    %24 = vector.broadcast %cst_20 : f32 to vector<8x128xf32>
    %25 = arith.mulf %24, %23 : vector<8x128xf32>
    %26 = vector.extract_strided_slice %17 {offsets = [0, 128], sizes = [8, 128], strides = [1, 1]} : vector<8x512xf32> to vector<8x128xf32>
    %cst_21 = arith.constant 5.000000e-01 : f32
    %27 = vector.broadcast %cst_21 : f32 to vector<8x128xf32>
    %28 = arith.mulf %27, %26 : vector<8x128xf32>
    %29 = math.tanh %28 : vector<8x128xf32>
    %cst_22 = arith.constant 1.000000e+00 : f32
    %30 = vector.broadcast %cst_22 : f32 to vector<8x128xf32>
    %31 = arith.addf %29, %30 : vector<8x128xf32>
    %cst_23 = arith.constant 5.000000e-01 : f32
    %32 = vector.broadcast %cst_23 : f32 to vector<8x128xf32>
    %33 = arith.mulf %32, %31 : vector<8x128xf32>
    %34 = vector.extract_strided_slice %17 {offsets = [0, 256], sizes = [8, 128], strides = [1, 1]} : vector<8x512xf32> to vector<8x128xf32>
    %35 = math.tanh %34 : vector<8x128xf32>
    %36 = vector.extract_strided_slice %17 {offsets = [0, 384], sizes = [8, 128], strides = [1, 1]} : vector<8x512xf32> to vector<8x128xf32>
    %cst_24 = arith.constant 5.000000e-01 : f32
    %37 = vector.broadcast %cst_24 : f32 to vector<8x128xf32>
    %38 = arith.mulf %37, %36 : vector<8x128xf32>
    %39 = math.tanh %38 : vector<8x128xf32>
    %cst_25 = arith.constant 1.000000e+00 : f32
    %40 = vector.broadcast %cst_25 : f32 to vector<8x128xf32>
    %41 = arith.addf %39, %40 : vector<8x128xf32>
    %cst_26 = arith.constant 5.000000e-01 : f32
    %42 = vector.broadcast %cst_26 : f32 to vector<8x128xf32>
    %43 = arith.mulf %42, %41 : vector<8x128xf32>
    %44 = arith.mulf %33, %13 : vector<8x128xf32>
    %45 = arith.mulf %25, %35 : vector<8x128xf32>
    %46 = arith.addf %44, %45 : vector<8x128xf32>
    %47 = math.tanh %46 : vector<8x128xf32>
    %48 = arith.mulf %43, %47 : vector<8x128xf32>
    %c0_27 = arith.constant 0 : index
    %c0_28 = arith.constant 0 : index
    %49 = vector.load %arg9[%c0_27, %c0_28] : memref<64x128xf32, #tpu.memory_space<vmem>>, vector<8x128xf32>
    tpu.vector_store %arg9[%c0_27, %c0_28], %48 {strides = array<i32>} : memref<64x128xf32, #tpu.memory_space<vmem>>, vector<8x128xf32>,
    %c8 = arith.constant 8 : index
    %c0_29 = arith.constant 0 : index
    %50 = vector.load %arg8[%c8, %c0_29] : memref<64x512xf32, #tpu.memory_space<vmem>>, vector<8x512xf32>
    %51 = arith.truncf %48 : vector<8x128xf32> to vector<8x128xbf16>
    %cst_30 = arith.constant dense<0.000000e+00> : vector<8x512xf32>
    %52 = tpu.matmul %51, %11, %cst_30 {dimension_numbers = #tpu.dot_dimension_numbers<[1], [0], [0], [1], [0, 0, 1, 1], [], []>} : vector<8x128xbf16>, vector<128x512xbf16>, vector<8x512xf32> -> vector<8x512xf32>
    %53 = arith.addf %50, %52 : vector<8x512xf32>
    %54 = vector.extract_strided_slice %53 {offsets = [0, 0], sizes = [8, 128], strides = [1, 1]} : vector<8x512xf32> to vector<8x128xf32>
    %cst_31 = arith.constant 5.000000e-01 : f32
    %55 = vector.broadcast %cst_31 : f32 to vector<8x128xf32>
    %56 = arith.mulf %55, %54 : vector<8x128xf32>
    %57 = math.tanh %56 : vector<8x128xf32>
    %cst_32 = arith.constant 1.000000e+00 : f32
    %58 = vector.broadcast %cst_32 : f32 to vector<8x128xf32>
    %59 = arith.addf %57, %58 : vector<8x128xf32>
    %cst_33 = arith.constant 5.000000e-01 : f32
    %60 = vector.broadcast %cst_33 : f32 to vector<8x128xf32>
    %61 = arith.mulf %60, %59 : vector<8x128xf32>
    %62 = vector.extract_strided_slice %53 {offsets = [0, 128], sizes = [8, 128], strides = [1, 1]} : vector<8x512xf32> to vector<8x128xf32>
    %cst_34 = arith.constant 5.000000e-01 : f32
    %63 = vector.broadcast %cst_34 : f32 to vector<8x128xf32>
    %64 = arith.mulf %63, %62 : vector<8x128xf32>
    %65 = math.tanh %64 : vector<8x128xf32>
    %cst_35 = arith.constant 1.000000e+00 : f32
    %66 = vector.broadcast %cst_35 : f32 to vector<8x128xf32>
    %67 = arith.addf %65, %66 : vector<8x128xf32>
    %cst_36 = arith.constant 5.000000e-01 : f32
    %68 = vector.broadcast %cst_36 : f32 to vector<8x128xf32>
    %69 = arith.mulf %68, %67 : vector<8x128xf32>
    %70 = vector.extract_strided_slice %53 {offsets = [0, 256], sizes = [8, 128], strides = [1, 1]} : vector<8x512xf32> to vector<8x128xf32>
    %71 = math.tanh %70 : vector<8x128xf32>
    %72 = vector.extract_strided_slice %53 {offsets = [0, 384], sizes = [8, 128], strides = [1, 1]} : vector<8x512xf32> to vector<8x128xf32>
    %cst_37 = arith.constant 5.000000e-01 : f32
    %73 = vector.broadcast %cst_37 : f32 to vector<8x128xf32>
    %74 = arith.mulf %73, %72 : vector<8x128xf32>
    %75 = math.tanh %74 : vector<8x128xf32>
    %cst_38 = arith.constant 1.000000e+00 : f32
    %76 = vector.broadcast %cst_38 : f32 to vector<8x128xf32>
    %77 = arith.addf %75, %76 : vector<8x128xf32>
    %cst_39 = arith.constant 5.000000e-01 : f32
    %78 = vector.broadcast %cst_39 : f32 to vector<8x128xf32>
    %79 = arith.mulf %78, %77 : vector<8x128xf32>
    %80 = arith.mulf %69, %46 : vector<8x128xf32>
    %81 = arith.mulf %61, %71 : vector<8x128xf32>
    %82 = arith.addf %80, %81 : vector<8x128xf32>
    %83 = math.tanh %82 : vector<8x128xf32>
    %84 = arith.mulf %79, %83 : vector<8x128xf32>
    %c8_40 = arith.constant 8 : index
    %c0_41 = arith.constant 0 : index
    %85 = vector.load %arg9[%c8_40, %c0_41] : memref<64x128xf32, #tpu.memory_space<vmem>>, vector<8x128xf32>
    tpu.vector_store %arg9[%c8_40, %c0_41], %84 {strides = array<i32>} : memref<64x128xf32, #tpu.memory_space<vmem>>, vector<8x128xf32>,
    %c16 = arith.constant 16 : index
    %c0_42 = arith.constant 0 : index
    %86 = vector.load %arg8[%c16, %c0_42] : memref<64x512xf32, #tpu.memory_space<vmem>>, vector<8x512xf32>
    %87 = arith.truncf %84 : vector<8x128xf32> to vector<8x128xbf16>
    %cst_43 = arith.constant dense<0.000000e+00> : vector<8x512xf32>
    %88 = tpu.matmul %87, %11, %cst_43 {dimension_numbers = #tpu.dot_dimension_numbers<[1], [0], [0], [1], [0, 0, 1, 1], [], []>} : vector<8x128xbf16>, vector<128x512xbf16>, vector<8x512xf32> -> vector<8x512xf32>
    %89 = arith.addf %86, %88 : vector<8x512xf32>
    %90 = vector.extract_strided_slice %89 {offsets = [0, 0], sizes = [8, 128], strides = [1, 1]} : vector<8x512xf32> to vector<8x128xf32>
    %cst_44 = arith.constant 5.000000e-01 : f32
    %91 = vector.broadcast %cst_44 : f32 to vector<8x128xf32>
    %92 = arith.mulf %91, %90 : vector<8x128xf32>
    %93 = math.tanh %92 : vector<8x128xf32>
    %cst_45 = arith.constant 1.000000e+00 : f32
    %94 = vector.broadcast %cst_45 : f32 to vector<8x128xf32>
    %95 = arith.addf %93, %94 : vector<8x128xf32>
    %cst_46 = arith.constant 5.000000e-01 : f32
    %96 = vector.broadcast %cst_46 : f32 to vector<8x128xf32>
    %97 = arith.mulf %96, %95 : vector<8x128xf32>
    %98 = vector.extract_strided_slice %89 {offsets = [0, 128], sizes = [8, 128], strides = [1, 1]} : vector<8x512xf32> to vector<8x128xf32>
    %cst_47 = arith.constant 5.000000e-01 : f32
    %99 = vector.broadcast %cst_47 : f32 to vector<8x128xf32>
    %100 = arith.mulf %99, %98 : vector<8x128xf32>
    %101 = math.tanh %100 : vector<8x128xf32>
    %cst_48 = arith.constant 1.000000e+00 : f32
    %102 = vector.broadcast %cst_48 : f32 to vector<8x128xf32>
    %103 = arith.addf %101, %102 : vector<8x128xf32>
    %cst_49 = arith.constant 5.000000e-01 : f32
    %104 = vector.broadcast %cst_49 : f32 to vector<8x128xf32>
    %105 = arith.mulf %104, %103 : vector<8x128xf32>
    %106 = vector.extract_strided_slice %89 {offsets = [0, 256], sizes = [8, 128], strides = [1, 1]} : vector<8x512xf32> to vector<8x128xf32>
    %107 = math.tanh %106 : vector<8x128xf32>
    %108 = vector.extract_strided_slice %89 {offsets = [0, 384], sizes = [8, 128], strides = [1, 1]} : vector<8x512xf32> to vector<8x128xf32>
    %cst_50 = arith.constant 5.000000e-01 : f32
    %109 = vector.broadcast %cst_50 : f32 to vector<8x128xf32>
    %110 = arith.mulf %109, %108 : vector<8x128xf32>
    %111 = math.tanh %110 : vector<8x128xf32>
    %cst_51 = arith.constant 1.000000e+00 : f32
    %112 = vector.broadcast %cst_51 : f32 to vector<8x128xf32>
    %113 = arith.addf %111, %112 : vector<8x128xf32>
    %cst_52 = arith.constant 5.000000e-01 : f32
    %114 = vector.broadcast %cst_52 : f32 to vector<8x128xf32>
    %115 = arith.mulf %114, %113 : vector<8x128xf32>
    %116 = arith.mulf %105, %82 : vector<8x128xf32>
    %117 = arith.mulf %97, %107 : vector<8x128xf32>
    %118 = arith.addf %116, %117 : vector<8x128xf32>
    %119 = math.tanh %118 : vector<8x128xf32>
    %120 = arith.mulf %115, %119 : vector<8x128xf32>
    %c16_53 = arith.constant 16 : index
    %c0_54 = arith.constant 0 : index
    %121 = vector.load %arg9[%c16_53, %c0_54] : memref<64x128xf32, #tpu.memory_space<vmem>>, vector<8x128xf32>
    tpu.vector_store %arg9[%c16_53, %c0_54], %120 {strides = array<i32>} : memref<64x128xf32, #tpu.memory_space<vmem>>, vector<8x128xf32>,
    %c24 = arith.constant 24 : index
    %c0_55 = arith.constant 0 : index
    %122 = vector.load %arg8[%c24, %c0_55] : memref<64x512xf32, #tpu.memory_space<vmem>>, vector<8x512xf32>
    %123 = arith.truncf %120 : vector<8x128xf32> to vector<8x128xbf16>
    %cst_56 = arith.constant dense<0.000000e+00> : vector<8x512xf32>
    %124 = tpu.matmul %123, %11, %cst_56 {dimension_numbers = #tpu.dot_dimension_numbers<[1], [0], [0], [1], [0, 0, 1, 1], [], []>} : vector<8x128xbf16>, vector<128x512xbf16>, vector<8x512xf32> -> vector<8x512xf32>
    %125 = arith.addf %122, %124 : vector<8x512xf32>
    %126 = vector.extract_strided_slice %125 {offsets = [0, 0], sizes = [8, 128], strides = [1, 1]} : vector<8x512xf32> to vector<8x128xf32>
    %cst_57 = arith.constant 5.000000e-01 : f32
    %127 = vector.broadcast %cst_57 : f32 to vector<8x128xf32>
    %128 = arith.mulf %127, %126 : vector<8x128xf32>
    %129 = math.tanh %128 : vector<8x128xf32>
    %cst_58 = arith.constant 1.000000e+00 : f32
    %130 = vector.broadcast %cst_58 : f32 to vector<8x128xf32>
    %131 = arith.addf %129, %130 : vector<8x128xf32>
    %cst_59 = arith.constant 5.000000e-01 : f32
    %132 = vector.broadcast %cst_59 : f32 to vector<8x128xf32>
    %133 = arith.mulf %132, %131 : vector<8x128xf32>
    %134 = vector.extract_strided_slice %125 {offsets = [0, 128], sizes = [8, 128], strides = [1, 1]} : vector<8x512xf32> to vector<8x128xf32>
    %cst_60 = arith.constant 5.000000e-01 : f32
    %135 = vector.broadcast %cst_60 : f32 to vector<8x128xf32>
    %136 = arith.mulf %135, %134 : vector<8x128xf32>
    %137 = math.tanh %136 : vector<8x128xf32>
    %cst_61 = arith.constant 1.000000e+00 : f32
    %138 = vector.broadcast %cst_61 : f32 to vector<8x128xf32>
    %139 = arith.addf %137, %138 : vector<8x128xf32>
    %cst_62 = arith.constant 5.000000e-01 : f32
    %140 = vector.broadcast %cst_62 : f32 to vector<8x128xf32>
    %141 = arith.mulf %140, %139 : vector<8x128xf32>
    %142 = vector.extract_strided_slice %125 {offsets = [0, 256], sizes = [8, 128], strides = [1, 1]} : vector<8x512xf32> to vector<8x128xf32>
    %143 = math.tanh %142 : vector<8x128xf32>
    %144 = vector.extract_strided_slice %125 {offsets = [0, 384], sizes = [8, 128], strides = [1, 1]} : vector<8x512xf32> to vector<8x128xf32>
    %cst_63 = arith.constant 5.000000e-01 : f32
    %145 = vector.broadcast %cst_63 : f32 to vector<8x128xf32>
    %146 = arith.mulf %145, %144 : vector<8x128xf32>
    %147 = math.tanh %146 : vector<8x128xf32>
    %cst_64 = arith.constant 1.000000e+00 : f32
    %148 = vector.broadcast %cst_64 : f32 to vector<8x128xf32>
    %149 = arith.addf %147, %148 : vector<8x128xf32>
    %cst_65 = arith.constant 5.000000e-01 : f32
    %150 = vector.broadcast %cst_65 : f32 to vector<8x128xf32>
    %151 = arith.mulf %150, %149 : vector<8x128xf32>
    %152 = arith.mulf %141, %118 : vector<8x128xf32>
    %153 = arith.mulf %133, %143 : vector<8x128xf32>
    %154 = arith.addf %152, %153 : vector<8x128xf32>
    %155 = math.tanh %154 : vector<8x128xf32>
    %156 = arith.mulf %151, %155 : vector<8x128xf32>
    %c24_66 = arith.constant 24 : index
    %c0_67 = arith.constant 0 : index
    %157 = vector.load %arg9[%c24_66, %c0_67] : memref<64x128xf32, #tpu.memory_space<vmem>>, vector<8x128xf32>
    tpu.vector_store %arg9[%c24_66, %c0_67], %156 {strides = array<i32>} : memref<64x128xf32, #tpu.memory_space<vmem>>, vector<8x128xf32>,
    %c32 = arith.constant 32 : index
    %c0_68 = arith.constant 0 : index
    %158 = vector.load %arg8[%c32, %c0_68] : memref<64x512xf32, #tpu.memory_space<vmem>>, vector<8x512xf32>
    %159 = arith.truncf %156 : vector<8x128xf32> to vector<8x128xbf16>
    %cst_69 = arith.constant dense<0.000000e+00> : vector<8x512xf32>
    %160 = tpu.matmul %159, %11, %cst_69 {dimension_numbers = #tpu.dot_dimension_numbers<[1], [0], [0], [1], [0, 0, 1, 1], [], []>} : vector<8x128xbf16>, vector<128x512xbf16>, vector<8x512xf32> -> vector<8x512xf32>
    %161 = arith.addf %158, %160 : vector<8x512xf32>
    %162 = vector.extract_strided_slice %161 {offsets = [0, 0], sizes = [8, 128], strides = [1, 1]} : vector<8x512xf32> to vector<8x128xf32>
    %cst_70 = arith.constant 5.000000e-01 : f32
    %163 = vector.broadcast %cst_70 : f32 to vector<8x128xf32>
    %164 = arith.mulf %163, %162 : vector<8x128xf32>
    %165 = math.tanh %164 : vector<8x128xf32>
    %cst_71 = arith.constant 1.000000e+00 : f32
    %166 = vector.broadcast %cst_71 : f32 to vector<8x128xf32>
    %167 = arith.addf %165, %166 : vector<8x128xf32>
    %cst_72 = arith.constant 5.000000e-01 : f32
    %168 = vector.broadcast %cst_72 : f32 to vector<8x128xf32>
    %169 = arith.mulf %168, %167 : vector<8x128xf32>
    %170 = vector.extract_strided_slice %161 {offsets = [0, 128], sizes = [8, 128], strides = [1, 1]} : vector<8x512xf32> to vector<8x128xf32>
    %cst_73 = arith.constant 5.000000e-01 : f32
    %171 = vector.broadcast %cst_73 : f32 to vector<8x128xf32>
    %172 = arith.mulf %171, %170 : vector<8x128xf32>
    %173 = math.tanh %172 : vector<8x128xf32>
    %cst_74 = arith.constant 1.000000e+00 : f32
    %174 = vector.broadcast %cst_74 : f32 to vector<8x128xf32>
    %175 = arith.addf %173, %174 : vector<8x128xf32>
    %cst_75 = arith.constant 5.000000e-01 : f32
    %176 = vector.broadcast %cst_75 : f32 to vector<8x128xf32>
    %177 = arith.mulf %176, %175 : vector<8x128xf32>
    %178 = vector.extract_strided_slice %161 {offsets = [0, 256], sizes = [8, 128], strides = [1, 1]} : vector<8x512xf32> to vector<8x128xf32>
    %179 = math.tanh %178 : vector<8x128xf32>
    %180 = vector.extract_strided_slice %161 {offsets = [0, 384], sizes = [8, 128], strides = [1, 1]} : vector<8x512xf32> to vector<8x128xf32>
    %cst_76 = arith.constant 5.000000e-01 : f32
    %181 = vector.broadcast %cst_76 : f32 to vector<8x128xf32>
    %182 = arith.mulf %181, %180 : vector<8x128xf32>
    %183 = math.tanh %182 : vector<8x128xf32>
    %cst_77 = arith.constant 1.000000e+00 : f32
    %184 = vector.broadcast %cst_77 : f32 to vector<8x128xf32>
    %185 = arith.addf %183, %184 : vector<8x128xf32>
    %cst_78 = arith.constant 5.000000e-01 : f32
    %186 = vector.broadcast %cst_78 : f32 to vector<8x128xf32>
    %187 = arith.mulf %186, %185 : vector<8x128xf32>
    %188 = arith.mulf %177, %154 : vector<8x128xf32>
    %189 = arith.mulf %169, %179 : vector<8x128xf32>
    %190 = arith.addf %188, %189 : vector<8x128xf32>
    %191 = math.tanh %190 : vector<8x128xf32>
    %192 = arith.mulf %187, %191 : vector<8x128xf32>
    %c32_79 = arith.constant 32 : index
    %c0_80 = arith.constant 0 : index
    %193 = vector.load %arg9[%c32_79, %c0_80] : memref<64x128xf32, #tpu.memory_space<vmem>>, vector<8x128xf32>
    tpu.vector_store %arg9[%c32_79, %c0_80], %192 {strides = array<i32>} : memref<64x128xf32, #tpu.memory_space<vmem>>, vector<8x128xf32>,
    %c40 = arith.constant 40 : index
    %c0_81 = arith.constant 0 : index
    %194 = vector.load %arg8[%c40, %c0_81] : memref<64x512xf32, #tpu.memory_space<vmem>>, vector<8x512xf32>
    %195 = arith.truncf %192 : vector<8x128xf32> to vector<8x128xbf16>
    %cst_82 = arith.constant dense<0.000000e+00> : vector<8x512xf32>
    %196 = tpu.matmul %195, %11, %cst_82 {dimension_numbers = #tpu.dot_dimension_numbers<[1], [0], [0], [1], [0, 0, 1, 1], [], []>} : vector<8x128xbf16>, vector<128x512xbf16>, vector<8x512xf32> -> vector<8x512xf32>
    %197 = arith.addf %194, %196 : vector<8x512xf32>
    %198 = vector.extract_strided_slice %197 {offsets = [0, 0], sizes = [8, 128], strides = [1, 1]} : vector<8x512xf32> to vector<8x128xf32>
    %cst_83 = arith.constant 5.000000e-01 : f32
    %199 = vector.broadcast %cst_83 : f32 to vector<8x128xf32>
    %200 = arith.mulf %199, %198 : vector<8x128xf32>
    %201 = math.tanh %200 : vector<8x128xf32>
    %cst_84 = arith.constant 1.000000e+00 : f32
    %202 = vector.broadcast %cst_84 : f32 to vector<8x128xf32>
    %203 = arith.addf %201, %202 : vector<8x128xf32>
    %cst_85 = arith.constant 5.000000e-01 : f32
    %204 = vector.broadcast %cst_85 : f32 to vector<8x128xf32>
    %205 = arith.mulf %204, %203 : vector<8x128xf32>
    %206 = vector.extract_strided_slice %197 {offsets = [0, 128], sizes = [8, 128], strides = [1, 1]} : vector<8x512xf32> to vector<8x128xf32>
    %cst_86 = arith.constant 5.000000e-01 : f32
    %207 = vector.broadcast %cst_86 : f32 to vector<8x128xf32>
    %208 = arith.mulf %207, %206 : vector<8x128xf32>
    %209 = math.tanh %208 : vector<8x128xf32>
    %cst_87 = arith.constant 1.000000e+00 : f32
    %210 = vector.broadcast %cst_87 : f32 to vector<8x128xf32>
    %211 = arith.addf %209, %210 : vector<8x128xf32>
    %cst_88 = arith.constant 5.000000e-01 : f32
    %212 = vector.broadcast %cst_88 : f32 to vector<8x128xf32>
    %213 = arith.mulf %212, %211 : vector<8x128xf32>
    %214 = vector.extract_strided_slice %197 {offsets = [0, 256], sizes = [8, 128], strides = [1, 1]} : vector<8x512xf32> to vector<8x128xf32>
    %215 = math.tanh %214 : vector<8x128xf32>
    %216 = vector.extract_strided_slice %197 {offsets = [0, 384], sizes = [8, 128], strides = [1, 1]} : vector<8x512xf32> to vector<8x128xf32>
    %cst_89 = arith.constant 5.000000e-01 : f32
    %217 = vector.broadcast %cst_89 : f32 to vector<8x128xf32>
    %218 = arith.mulf %217, %216 : vector<8x128xf32>
    %219 = math.tanh %218 : vector<8x128xf32>
    %cst_90 = arith.constant 1.000000e+00 : f32
    %220 = vector.broadcast %cst_90 : f32 to vector<8x128xf32>
    %221 = arith.addf %219, %220 : vector<8x128xf32>
    %cst_91 = arith.constant 5.000000e-01 : f32
    %222 = vector.broadcast %cst_91 : f32 to vector<8x128xf32>
    %223 = arith.mulf %222, %221 : vector<8x128xf32>
    %224 = arith.mulf %213, %190 : vector<8x128xf32>
    %225 = arith.mulf %205, %215 : vector<8x128xf32>
    %226 = arith.addf %224, %225 : vector<8x128xf32>
    %227 = math.tanh %226 : vector<8x128xf32>
    %228 = arith.mulf %223, %227 : vector<8x128xf32>
    %c40_92 = arith.constant 40 : index
    %c0_93 = arith.constant 0 : index
    %229 = vector.load %arg9[%c40_92, %c0_93] : memref<64x128xf32, #tpu.memory_space<vmem>>, vector<8x128xf32>
    tpu.vector_store %arg9[%c40_92, %c0_93], %228 {strides = array<i32>} : memref<64x128xf32, #tpu.memory_space<vmem>>, vector<8x128xf32>,
    %c48 = arith.constant 48 : index
    %c0_94 = arith.constant 0 : index
    %230 = vector.load %arg8[%c48, %c0_94] : memref<64x512xf32, #tpu.memory_space<vmem>>, vector<8x512xf32>
    %231 = arith.truncf %228 : vector<8x128xf32> to vector<8x128xbf16>
    %cst_95 = arith.constant dense<0.000000e+00> : vector<8x512xf32>
    %232 = tpu.matmul %231, %11, %cst_95 {dimension_numbers = #tpu.dot_dimension_numbers<[1], [0], [0], [1], [0, 0, 1, 1], [], []>} : vector<8x128xbf16>, vector<128x512xbf16>, vector<8x512xf32> -> vector<8x512xf32>
    %233 = arith.addf %230, %232 : vector<8x512xf32>
    %234 = vector.extract_strided_slice %233 {offsets = [0, 0], sizes = [8, 128], strides = [1, 1]} : vector<8x512xf32> to vector<8x128xf32>
    %cst_96 = arith.constant 5.000000e-01 : f32
    %235 = vector.broadcast %cst_96 : f32 to vector<8x128xf32>
    %236 = arith.mulf %235, %234 : vector<8x128xf32>
    %237 = math.tanh %236 : vector<8x128xf32>
    %cst_97 = arith.constant 1.000000e+00 : f32
    %238 = vector.broadcast %cst_97 : f32 to vector<8x128xf32>
    %239 = arith.addf %237, %238 : vector<8x128xf32>
    %cst_98 = arith.constant 5.000000e-01 : f32
    %240 = vector.broadcast %cst_98 : f32 to vector<8x128xf32>
    %241 = arith.mulf %240, %239 : vector<8x128xf32>
    %242 = vector.extract_strided_slice %233 {offsets = [0, 128], sizes = [8, 128], strides = [1, 1]} : vector<8x512xf32> to vector<8x128xf32>
    %cst_99 = arith.constant 5.000000e-01 : f32
    %243 = vector.broadcast %cst_99 : f32 to vector<8x128xf32>
    %244 = arith.mulf %243, %242 : vector<8x128xf32>
    %245 = math.tanh %244 : vector<8x128xf32>
    %cst_100 = arith.constant 1.000000e+00 : f32
    %246 = vector.broadcast %cst_100 : f32 to vector<8x128xf32>
    %247 = arith.addf %245, %246 : vector<8x128xf32>
    %cst_101 = arith.constant 5.000000e-01 : f32
    %248 = vector.broadcast %cst_101 : f32 to vector<8x128xf32>
    %249 = arith.mulf %248, %247 : vector<8x128xf32>
    %250 = vector.extract_strided_slice %233 {offsets = [0, 256], sizes = [8, 128], strides = [1, 1]} : vector<8x512xf32> to vector<8x128xf32>
    %251 = math.tanh %250 : vector<8x128xf32>
    %252 = vector.extract_strided_slice %233 {offsets = [0, 384], sizes = [8, 128], strides = [1, 1]} : vector<8x512xf32> to vector<8x128xf32>
    %cst_102 = arith.constant 5.000000e-01 : f32
    %253 = vector.broadcast %cst_102 : f32 to vector<8x128xf32>
    %254 = arith.mulf %253, %252 : vector<8x128xf32>
    %255 = math.tanh %254 : vector<8x128xf32>
    %cst_103 = arith.constant 1.000000e+00 : f32
    %256 = vector.broadcast %cst_103 : f32 to vector<8x128xf32>
    %257 = arith.addf %255, %256 : vector<8x128xf32>
    %cst_104 = arith.constant 5.000000e-01 : f32
    %258 = vector.broadcast %cst_104 : f32 to vector<8x128xf32>
    %259 = arith.mulf %258, %257 : vector<8x128xf32>
    %260 = arith.mulf %249, %226 : vector<8x128xf32>
    %261 = arith.mulf %241, %251 : vector<8x128xf32>
    %262 = arith.addf %260, %261 : vector<8x128xf32>
    %263 = math.tanh %262 : vector<8x128xf32>
    %264 = arith.mulf %259, %263 : vector<8x128xf32>
    %c48_105 = arith.constant 48 : index
    %c0_106 = arith.constant 0 : index
    %265 = vector.load %arg9[%c48_105, %c0_106] : memref<64x128xf32, #tpu.memory_space<vmem>>, vector<8x128xf32>
    tpu.vector_store %arg9[%c48_105, %c0_106], %264 {strides = array<i32>} : memref<64x128xf32, #tpu.memory_space<vmem>>, vector<8x128xf32>,
    %c56 = arith.constant 56 : index
    %c0_107 = arith.constant 0 : index
    %266 = vector.load %arg8[%c56, %c0_107] : memref<64x512xf32, #tpu.memory_space<vmem>>, vector<8x512xf32>
    %267 = arith.truncf %264 : vector<8x128xf32> to vector<8x128xbf16>
    %cst_108 = arith.constant dense<0.000000e+00> : vector<8x512xf32>
    %268 = tpu.matmul %267, %11, %cst_108 {dimension_numbers = #tpu.dot_dimension_numbers<[1], [0], [0], [1], [0, 0, 1, 1], [], []>} : vector<8x128xbf16>, vector<128x512xbf16>, vector<8x512xf32> -> vector<8x512xf32>
    %269 = arith.addf %266, %268 : vector<8x512xf32>
    %270 = vector.extract_strided_slice %269 {offsets = [0, 0], sizes = [8, 128], strides = [1, 1]} : vector<8x512xf32> to vector<8x128xf32>
    %cst_109 = arith.constant 5.000000e-01 : f32
    %271 = vector.broadcast %cst_109 : f32 to vector<8x128xf32>
    %272 = arith.mulf %271, %270 : vector<8x128xf32>
    %273 = math.tanh %272 : vector<8x128xf32>
    %cst_110 = arith.constant 1.000000e+00 : f32
    %274 = vector.broadcast %cst_110 : f32 to vector<8x128xf32>
    %275 = arith.addf %273, %274 : vector<8x128xf32>
    %cst_111 = arith.constant 5.000000e-01 : f32
    %276 = vector.broadcast %cst_111 : f32 to vector<8x128xf32>
    %277 = arith.mulf %276, %275 : vector<8x128xf32>
    %278 = vector.extract_strided_slice %269 {offsets = [0, 128], sizes = [8, 128], strides = [1, 1]} : vector<8x512xf32> to vector<8x128xf32>
    %cst_112 = arith.constant 5.000000e-01 : f32
    %279 = vector.broadcast %cst_112 : f32 to vector<8x128xf32>
    %280 = arith.mulf %279, %278 : vector<8x128xf32>
    %281 = math.tanh %280 : vector<8x128xf32>
    %cst_113 = arith.constant 1.000000e+00 : f32
    %282 = vector.broadcast %cst_113 : f32 to vector<8x128xf32>
    %283 = arith.addf %281, %282 : vector<8x128xf32>
    %cst_114 = arith.constant 5.000000e-01 : f32
    %284 = vector.broadcast %cst_114 : f32 to vector<8x128xf32>
    %285 = arith.mulf %284, %283 : vector<8x128xf32>
    %286 = vector.extract_strided_slice %269 {offsets = [0, 256], sizes = [8, 128], strides = [1, 1]} : vector<8x512xf32> to vector<8x128xf32>
    %287 = math.tanh %286 : vector<8x128xf32>
    %288 = vector.extract_strided_slice %269 {offsets = [0, 384], sizes = [8, 128], strides = [1, 1]} : vector<8x512xf32> to vector<8x128xf32>
    %cst_115 = arith.constant 5.000000e-01 : f32
    %289 = vector.broadcast %cst_115 : f32 to vector<8x128xf32>
    %290 = arith.mulf %289, %288 : vector<8x128xf32>
    %291 = math.tanh %290 : vector<8x128xf32>
    %cst_116 = arith.constant 1.000000e+00 : f32
    %292 = vector.broadcast %cst_116 : f32 to vector<8x128xf32>
    %293 = arith.addf %291, %292 : vector<8x128xf32>
    %cst_117 = arith.constant 5.000000e-01 : f32
    %294 = vector.broadcast %cst_117 : f32 to vector<8x128xf32>
    %295 = arith.mulf %294, %293 : vector<8x128xf32>
    %296 = arith.mulf %285, %262 : vector<8x128xf32>
    %297 = arith.mulf %277, %287 : vector<8x128xf32>
    %298 = arith.addf %296, %297 : vector<8x128xf32>
    %299 = math.tanh %298 : vector<8x128xf32>
    %300 = arith.mulf %295, %299 : vector<8x128xf32>
    %c56_118 = arith.constant 56 : index
    %c0_119 = arith.constant 0 : index
    %301 = vector.load %arg9[%c56_118, %c0_119] : memref<64x128xf32, #tpu.memory_space<vmem>>, vector<8x128xf32>
    tpu.vector_store %arg9[%c56_118, %c0_119], %300 {strides = array<i32>} : memref<64x128xf32, #tpu.memory_space<vmem>>, vector<8x128xf32>,
    %c0_120 = arith.constant 0 : index
    %c0_121 = arith.constant 0 : index
    %c0_122 = arith.constant 0 : index
    %302 = vector.load %arg6[%c0_120, %c0_121, %c0_122] : memref<2x8x128xf32, #tpu.memory_space<vmem>>, vector<1x8x128xf32>
    %303 = vector.shape_cast %302 : vector<1x8x128xf32> to vector<8x128xf32>
    %304 = vector.shape_cast %300 : vector<8x128xf32> to vector<1x8x128xf32>
    tpu.vector_store %arg6[%c0_120, %c0_121, %c0_122], %304 {strides = array<i32>} : memref<2x8x128xf32, #tpu.memory_space<vmem>>, vector<1x8x128xf32>,
    %c0_123 = arith.constant 0 : index
    %c0_124 = arith.constant 0 : index
    %c0_125 = arith.constant 0 : index
    %305 = vector.load %arg7[%c0_123, %c0_124, %c0_125] : memref<2x8x128xf32, #tpu.memory_space<vmem>>, vector<1x8x128xf32>
    %306 = vector.shape_cast %305 : vector<1x8x128xf32> to vector<8x128xf32>
    %307 = vector.shape_cast %298 : vector<8x128xf32> to vector<1x8x128xf32>
    tpu.vector_store %arg7[%c0_123, %c0_124, %c0_125], %307 {strides = array<i32>} : memref<2x8x128xf32, #tpu.memory_space<vmem>>, vector<1x8x128xf32>,
    %c0_126 = arith.constant 0 : index
    %c0_127 = arith.constant 0 : index
    %308 = vector.load %arg9[%c0_126, %c0_127] : memref<64x128xf32, #tpu.memory_space<vmem>>, vector<64x128xf32>
    %c1 = arith.constant 1 : index
    %c0_128 = arith.constant 0 : index
    %c0_129 = arith.constant 0 : index
    %309 = vector.load %arg2[%c1, %c0_128, %c0_129] : memref<2x128x512xf32, #tpu.memory_space<vmem>>, vector<1x128x512xf32>
    %310 = vector.shape_cast %309 : vector<1x128x512xf32> to vector<128x512xf32>
    %cst_130 = arith.constant dense<0.000000e+00> : vector<64x512xf32>
    %311 = tpu.matmul %308, %310, %cst_130 {dimension_numbers = #tpu.dot_dimension_numbers<[1], [0], [0], [1], [0, 0, 1, 1], [], []>} : vector<64x128xf32>, vector<128x512xf32>, vector<64x512xf32> -> vector<64x512xf32>
    %c1_131 = arith.constant 1 : index
    %c0_132 = arith.constant 0 : index
    %c0_133 = arith.constant 0 : index
    %312 = vector.load %arg4[%c1_131, %c0_132, %c0_133] : memref<2x1x512xf32, #tpu.memory_space<vmem>>, vector<1x1x512xf32>
    %313 = vector.shape_cast %312 : vector<1x1x512xf32> to vector<1x512xf32>
    %314 = vector.broadcast %313 : vector<1x512xf32> to vector<64x512xf32>
    %315 = arith.addf %311, %314 : vector<64x512xf32>
    %c0_134 = arith.constant 0 : index
    %c0_135 = arith.constant 0 : index
    %316 = vector.load %arg8[%c0_134, %c0_135] : memref<64x512xf32, #tpu.memory_space<vmem>>, vector<64x512xf32>
    tpu.vector_store %arg8[%c0_134, %c0_135], %315 {strides = array<i32>} : memref<64x512xf32, #tpu.memory_space<vmem>>, vector<64x512xf32>,
    %c1_136 = arith.constant 1 : index
    %c0_137 = arith.constant 0 : index
    %c0_138 = arith.constant 0 : index
    %317 = vector.load %arg3[%c1_136, %c0_137, %c0_138] : memref<2x128x512xbf16, #tpu.memory_space<vmem>>, vector<1x128x512xbf16>
    %318 = vector.shape_cast %317 : vector<1x128x512xbf16> to vector<128x512xbf16>
    %cst_139 = arith.constant 0.000000e+00 : f32
    %319 = vector.broadcast %cst_139 : f32 to vector<8x128xf32>
    %cst_140 = arith.constant 0.000000e+00 : f32
    %320 = vector.broadcast %cst_140 : f32 to vector<8x128xf32>
    %c0_141 = arith.constant 0 : index
    %c0_142 = arith.constant 0 : index
    %321 = vector.load %arg8[%c0_141, %c0_142] : memref<64x512xf32, #tpu.memory_space<vmem>>, vector<8x512xf32>
    %322 = arith.truncf %319 : vector<8x128xf32> to vector<8x128xbf16>
    %cst_143 = arith.constant dense<0.000000e+00> : vector<8x512xf32>
    %323 = tpu.matmul %322, %318, %cst_143 {dimension_numbers = #tpu.dot_dimension_numbers<[1], [0], [0], [1], [0, 0, 1, 1], [], []>} : vector<8x128xbf16>, vector<128x512xbf16>, vector<8x512xf32> -> vector<8x512xf32>
    %324 = arith.addf %321, %323 : vector<8x512xf32>
    %325 = vector.extract_strided_slice %324 {offsets = [0, 0], sizes = [8, 128], strides = [1, 1]} : vector<8x512xf32> to vector<8x128xf32>
    %cst_144 = arith.constant 5.000000e-01 : f32
    %326 = vector.broadcast %cst_144 : f32 to vector<8x128xf32>
    %327 = arith.mulf %326, %325 : vector<8x128xf32>
    %328 = math.tanh %327 : vector<8x128xf32>
    %cst_145 = arith.constant 1.000000e+00 : f32
    %329 = vector.broadcast %cst_145 : f32 to vector<8x128xf32>
    %330 = arith.addf %328, %329 : vector<8x128xf32>
    %cst_146 = arith.constant 5.000000e-01 : f32
    %331 = vector.broadcast %cst_146 : f32 to vector<8x128xf32>
    %332 = arith.mulf %331, %330 : vector<8x128xf32>
    %333 = vector.extract_strided_slice %324 {offsets = [0, 128], sizes = [8, 128], strides = [1, 1]} : vector<8x512xf32> to vector<8x128xf32>
    %cst_147 = arith.constant 5.000000e-01 : f32
    %334 = vector.broadcast %cst_147 : f32 to vector<8x128xf32>
    %335 = arith.mulf %334, %333 : vector<8x128xf32>
    %336 = math.tanh %335 : vector<8x128xf32>
    %cst_148 = arith.constant 1.000000e+00 : f32
    %337 = vector.broadcast %cst_148 : f32 to vector<8x128xf32>
    %338 = arith.addf %336, %337 : vector<8x128xf32>
    %cst_149 = arith.constant 5.000000e-01 : f32
    %339 = vector.broadcast %cst_149 : f32 to vector<8x128xf32>
    %340 = arith.mulf %339, %338 : vector<8x128xf32>
    %341 = vector.extract_strided_slice %324 {offsets = [0, 256], sizes = [8, 128], strides = [1, 1]} : vector<8x512xf32> to vector<8x128xf32>
    %342 = math.tanh %341 : vector<8x128xf32>
    %343 = vector.extract_strided_slice %324 {offsets = [0, 384], sizes = [8, 128], strides = [1, 1]} : vector<8x512xf32> to vector<8x128xf32>
    %cst_150 = arith.constant 5.000000e-01 : f32
    %344 = vector.broadcast %cst_150 : f32 to vector<8x128xf32>
    %345 = arith.mulf %344, %343 : vector<8x128xf32>
    %346 = math.tanh %345 : vector<8x128xf32>
    %cst_151 = arith.constant 1.000000e+00 : f32
    %347 = vector.broadcast %cst_151 : f32 to vector<8x128xf32>
    %348 = arith.addf %346, %347 : vector<8x128xf32>
    %cst_152 = arith.constant 5.000000e-01 : f32
    %349 = vector.broadcast %cst_152 : f32 to vector<8x128xf32>
    %350 = arith.mulf %349, %348 : vector<8x128xf32>
    %351 = arith.mulf %340, %320 : vector<8x128xf32>
    %352 = arith.mulf %332, %342 : vector<8x128xf32>
    %353 = arith.addf %351, %352 : vector<8x128xf32>
    %354 = math.tanh %353 : vector<8x128xf32>
    %355 = arith.mulf %350, %354 : vector<8x128xf32>
    %c0_153 = arith.constant 0 : index
    %c0_154 = arith.constant 0 : index
    %c0_155 = arith.constant 0 : index
    %356 = vector.load %arg5[%c0_153, %c0_154, %c0_155] : memref<8x8x128xf32, #tpu.memory_space<vmem>>, vector<1x8x128xf32>
    %357 = vector.shape_cast %356 : vector<1x8x128xf32> to vector<8x128xf32>
    %358 = vector.shape_cast %355 : vector<8x128xf32> to vector<1x8x128xf32>
    tpu.vector_store %arg5[%c0_153, %c0_154, %c0_155], %358 {strides = array<i32>} : memref<8x8x128xf32, #tpu.memory_space<vmem>>, vector<1x8x128xf32>,
    %c8_156 = arith.constant 8 : index
    %c0_157 = arith.constant 0 : index
    %359 = vector.load %arg8[%c8_156, %c0_157] : memref<64x512xf32, #tpu.memory_space<vmem>>, vector<8x512xf32>
    %360 = arith.truncf %355 : vector<8x128xf32> to vector<8x128xbf16>
    %cst_158 = arith.constant dense<0.000000e+00> : vector<8x512xf32>
    %361 = tpu.matmul %360, %318, %cst_158 {dimension_numbers = #tpu.dot_dimension_numbers<[1], [0], [0], [1], [0, 0, 1, 1], [], []>} : vector<8x128xbf16>, vector<128x512xbf16>, vector<8x512xf32> -> vector<8x512xf32>
    %362 = arith.addf %359, %361 : vector<8x512xf32>
    %363 = vector.extract_strided_slice %362 {offsets = [0, 0], sizes = [8, 128], strides = [1, 1]} : vector<8x512xf32> to vector<8x128xf32>
    %cst_159 = arith.constant 5.000000e-01 : f32
    %364 = vector.broadcast %cst_159 : f32 to vector<8x128xf32>
    %365 = arith.mulf %364, %363 : vector<8x128xf32>
    %366 = math.tanh %365 : vector<8x128xf32>
    %cst_160 = arith.constant 1.000000e+00 : f32
    %367 = vector.broadcast %cst_160 : f32 to vector<8x128xf32>
    %368 = arith.addf %366, %367 : vector<8x128xf32>
    %cst_161 = arith.constant 5.000000e-01 : f32
    %369 = vector.broadcast %cst_161 : f32 to vector<8x128xf32>
    %370 = arith.mulf %369, %368 : vector<8x128xf32>
    %371 = vector.extract_strided_slice %362 {offsets = [0, 128], sizes = [8, 128], strides = [1, 1]} : vector<8x512xf32> to vector<8x128xf32>
    %cst_162 = arith.constant 5.000000e-01 : f32
    %372 = vector.broadcast %cst_162 : f32 to vector<8x128xf32>
    %373 = arith.mulf %372, %371 : vector<8x128xf32>
    %374 = math.tanh %373 : vector<8x128xf32>
    %cst_163 = arith.constant 1.000000e+00 : f32
    %375 = vector.broadcast %cst_163 : f32 to vector<8x128xf32>
    %376 = arith.addf %374, %375 : vector<8x128xf32>
    %cst_164 = arith.constant 5.000000e-01 : f32
    %377 = vector.broadcast %cst_164 : f32 to vector<8x128xf32>
    %378 = arith.mulf %377, %376 : vector<8x128xf32>
    %379 = vector.extract_strided_slice %362 {offsets = [0, 256], sizes = [8, 128], strides = [1, 1]} : vector<8x512xf32> to vector<8x128xf32>
    %380 = math.tanh %379 : vector<8x128xf32>
    %381 = vector.extract_strided_slice %362 {offsets = [0, 384], sizes = [8, 128], strides = [1, 1]} : vector<8x512xf32> to vector<8x128xf32>
    %cst_165 = arith.constant 5.000000e-01 : f32
    %382 = vector.broadcast %cst_165 : f32 to vector<8x128xf32>
    %383 = arith.mulf %382, %381 : vector<8x128xf32>
    %384 = math.tanh %383 : vector<8x128xf32>
    %cst_166 = arith.constant 1.000000e+00 : f32
    %385 = vector.broadcast %cst_166 : f32 to vector<8x128xf32>
    %386 = arith.addf %384, %385 : vector<8x128xf32>
    %cst_167 = arith.constant 5.000000e-01 : f32
    %387 = vector.broadcast %cst_167 : f32 to vector<8x128xf32>
    %388 = arith.mulf %387, %386 : vector<8x128xf32>
    %389 = arith.mulf %378, %353 : vector<8x128xf32>
    %390 = arith.mulf %370, %380 : vector<8x128xf32>
    %391 = arith.addf %389, %390 : vector<8x128xf32>
    %392 = math.tanh %391 : vector<8x128xf32>
    %393 = arith.mulf %388, %392 : vector<8x128xf32>
    %c1_168 = arith.constant 1 : index
    %c0_169 = arith.constant 0 : index
    %c0_170 = arith.constant 0 : index
    %394 = vector.load %arg5[%c1_168, %c0_169, %c0_170] : memref<8x8x128xf32, #tpu.memory_space<vmem>>, vector<1x8x128xf32>
    %395 = vector.shape_cast %394 : vector<1x8x128xf32> to vector<8x128xf32>
    %396 = vector.shape_cast %393 : vector<8x128xf32> to vector<1x8x128xf32>
    tpu.vector_store %arg5[%c1_168, %c0_169, %c0_170], %396 {strides = array<i32>} : memref<8x8x128xf32, #tpu.memory_space<vmem>>, vector<1x8x128xf32>,
    %c16_171 = arith.constant 16 : index
    %c0_172 = arith.constant 0 : index
    %397 = vector.load %arg8[%c16_171, %c0_172] : memref<64x512xf32, #tpu.memory_space<vmem>>, vector<8x512xf32>
    %398 = arith.truncf %393 : vector<8x128xf32> to vector<8x128xbf16>
    %cst_173 = arith.constant dense<0.000000e+00> : vector<8x512xf32>
    %399 = tpu.matmul %398, %318, %cst_173 {dimension_numbers = #tpu.dot_dimension_numbers<[1], [0], [0], [1], [0, 0, 1, 1], [], []>} : vector<8x128xbf16>, vector<128x512xbf16>, vector<8x512xf32> -> vector<8x512xf32>
    %400 = arith.addf %397, %399 : vector<8x512xf32>
    %401 = vector.extract_strided_slice %400 {offsets = [0, 0], sizes = [8, 128], strides = [1, 1]} : vector<8x512xf32> to vector<8x128xf32>
    %cst_174 = arith.constant 5.000000e-01 : f32
    %402 = vector.broadcast %cst_174 : f32 to vector<8x128xf32>
    %403 = arith.mulf %402, %401 : vector<8x128xf32>
    %404 = math.tanh %403 : vector<8x128xf32>
    %cst_175 = arith.constant 1.000000e+00 : f32
    %405 = vector.broadcast %cst_175 : f32 to vector<8x128xf32>
    %406 = arith.addf %404, %405 : vector<8x128xf32>
    %cst_176 = arith.constant 5.000000e-01 : f32
    %407 = vector.broadcast %cst_176 : f32 to vector<8x128xf32>
    %408 = arith.mulf %407, %406 : vector<8x128xf32>
    %409 = vector.extract_strided_slice %400 {offsets = [0, 128], sizes = [8, 128], strides = [1, 1]} : vector<8x512xf32> to vector<8x128xf32>
    %cst_177 = arith.constant 5.000000e-01 : f32
    %410 = vector.broadcast %cst_177 : f32 to vector<8x128xf32>
    %411 = arith.mulf %410, %409 : vector<8x128xf32>
    %412 = math.tanh %411 : vector<8x128xf32>
    %cst_178 = arith.constant 1.000000e+00 : f32
    %413 = vector.broadcast %cst_178 : f32 to vector<8x128xf32>
    %414 = arith.addf %412, %413 : vector<8x128xf32>
    %cst_179 = arith.constant 5.000000e-01 : f32
    %415 = vector.broadcast %cst_179 : f32 to vector<8x128xf32>
    %416 = arith.mulf %415, %414 : vector<8x128xf32>
    %417 = vector.extract_strided_slice %400 {offsets = [0, 256], sizes = [8, 128], strides = [1, 1]} : vector<8x512xf32> to vector<8x128xf32>
    %418 = math.tanh %417 : vector<8x128xf32>
    %419 = vector.extract_strided_slice %400 {offsets = [0, 384], sizes = [8, 128], strides = [1, 1]} : vector<8x512xf32> to vector<8x128xf32>
    %cst_180 = arith.constant 5.000000e-01 : f32
    %420 = vector.broadcast %cst_180 : f32 to vector<8x128xf32>
    %421 = arith.mulf %420, %419 : vector<8x128xf32>
    %422 = math.tanh %421 : vector<8x128xf32>
    %cst_181 = arith.constant 1.000000e+00 : f32
    %423 = vector.broadcast %cst_181 : f32 to vector<8x128xf32>
    %424 = arith.addf %422, %423 : vector<8x128xf32>
    %cst_182 = arith.constant 5.000000e-01 : f32
    %425 = vector.broadcast %cst_182 : f32 to vector<8x128xf32>
    %426 = arith.mulf %425, %424 : vector<8x128xf32>
    %427 = arith.mulf %416, %391 : vector<8x128xf32>
    %428 = arith.mulf %408, %418 : vector<8x128xf32>
    %429 = arith.addf %427, %428 : vector<8x128xf32>
    %430 = math.tanh %429 : vector<8x128xf32>
    %431 = arith.mulf %426, %430 : vector<8x128xf32>
    %c2 = arith.constant 2 : index
    %c0_183 = arith.constant 0 : index
    %c0_184 = arith.constant 0 : index
    %432 = vector.load %arg5[%c2, %c0_183, %c0_184] : memref<8x8x128xf32, #tpu.memory_space<vmem>>, vector<1x8x128xf32>
    %433 = vector.shape_cast %432 : vector<1x8x128xf32> to vector<8x128xf32>
    %434 = vector.shape_cast %431 : vector<8x128xf32> to vector<1x8x128xf32>
    tpu.vector_store %arg5[%c2, %c0_183, %c0_184], %434 {strides = array<i32>} : memref<8x8x128xf32, #tpu.memory_space<vmem>>, vector<1x8x128xf32>,
    %c24_185 = arith.constant 24 : index
    %c0_186 = arith.constant 0 : index
    %435 = vector.load %arg8[%c24_185, %c0_186] : memref<64x512xf32, #tpu.memory_space<vmem>>, vector<8x512xf32>
    %436 = arith.truncf %431 : vector<8x128xf32> to vector<8x128xbf16>
    %cst_187 = arith.constant dense<0.000000e+00> : vector<8x512xf32>
    %437 = tpu.matmul %436, %318, %cst_187 {dimension_numbers = #tpu.dot_dimension_numbers<[1], [0], [0], [1], [0, 0, 1, 1], [], []>} : vector<8x128xbf16>, vector<128x512xbf16>, vector<8x512xf32> -> vector<8x512xf32>
    %438 = arith.addf %435, %437 : vector<8x512xf32>
    %439 = vector.extract_strided_slice %438 {offsets = [0, 0], sizes = [8, 128], strides = [1, 1]} : vector<8x512xf32> to vector<8x128xf32>
    %cst_188 = arith.constant 5.000000e-01 : f32
    %440 = vector.broadcast %cst_188 : f32 to vector<8x128xf32>
    %441 = arith.mulf %440, %439 : vector<8x128xf32>
    %442 = math.tanh %441 : vector<8x128xf32>
    %cst_189 = arith.constant 1.000000e+00 : f32
    %443 = vector.broadcast %cst_189 : f32 to vector<8x128xf32>
    %444 = arith.addf %442, %443 : vector<8x128xf32>
    %cst_190 = arith.constant 5.000000e-01 : f32
    %445 = vector.broadcast %cst_190 : f32 to vector<8x128xf32>
    %446 = arith.mulf %445, %444 : vector<8x128xf32>
    %447 = vector.extract_strided_slice %438 {offsets = [0, 128], sizes = [8, 128], strides = [1, 1]} : vector<8x512xf32> to vector<8x128xf32>
    %cst_191 = arith.constant 5.000000e-01 : f32
    %448 = vector.broadcast %cst_191 : f32 to vector<8x128xf32>
    %449 = arith.mulf %448, %447 : vector<8x128xf32>
    %450 = math.tanh %449 : vector<8x128xf32>
    %cst_192 = arith.constant 1.000000e+00 : f32
    %451 = vector.broadcast %cst_192 : f32 to vector<8x128xf32>
    %452 = arith.addf %450, %451 : vector<8x128xf32>
    %cst_193 = arith.constant 5.000000e-01 : f32
    %453 = vector.broadcast %cst_193 : f32 to vector<8x128xf32>
    %454 = arith.mulf %453, %452 : vector<8x128xf32>
    %455 = vector.extract_strided_slice %438 {offsets = [0, 256], sizes = [8, 128], strides = [1, 1]} : vector<8x512xf32> to vector<8x128xf32>
    %456 = math.tanh %455 : vector<8x128xf32>
    %457 = vector.extract_strided_slice %438 {offsets = [0, 384], sizes = [8, 128], strides = [1, 1]} : vector<8x512xf32> to vector<8x128xf32>
    %cst_194 = arith.constant 5.000000e-01 : f32
    %458 = vector.broadcast %cst_194 : f32 to vector<8x128xf32>
    %459 = arith.mulf %458, %457 : vector<8x128xf32>
    %460 = math.tanh %459 : vector<8x128xf32>
    %cst_195 = arith.constant 1.000000e+00 : f32
    %461 = vector.broadcast %cst_195 : f32 to vector<8x128xf32>
    %462 = arith.addf %460, %461 : vector<8x128xf32>
    %cst_196 = arith.constant 5.000000e-01 : f32
    %463 = vector.broadcast %cst_196 : f32 to vector<8x128xf32>
    %464 = arith.mulf %463, %462 : vector<8x128xf32>
    %465 = arith.mulf %454, %429 : vector<8x128xf32>
    %466 = arith.mulf %446, %456 : vector<8x128xf32>
    %467 = arith.addf %465, %466 : vector<8x128xf32>
    %468 = math.tanh %467 : vector<8x128xf32>
    %469 = arith.mulf %464, %468 : vector<8x128xf32>
    %c3 = arith.constant 3 : index
    %c0_197 = arith.constant 0 : index
    %c0_198 = arith.constant 0 : index
    %470 = vector.load %arg5[%c3, %c0_197, %c0_198] : memref<8x8x128xf32, #tpu.memory_space<vmem>>, vector<1x8x128xf32>
    %471 = vector.shape_cast %470 : vector<1x8x128xf32> to vector<8x128xf32>
    %472 = vector.shape_cast %469 : vector<8x128xf32> to vector<1x8x128xf32>
    tpu.vector_store %arg5[%c3, %c0_197, %c0_198], %472 {strides = array<i32>} : memref<8x8x128xf32, #tpu.memory_space<vmem>>, vector<1x8x128xf32>,
    %c32_199 = arith.constant 32 : index
    %c0_200 = arith.constant 0 : index
    %473 = vector.load %arg8[%c32_199, %c0_200] : memref<64x512xf32, #tpu.memory_space<vmem>>, vector<8x512xf32>
    %474 = arith.truncf %469 : vector<8x128xf32> to vector<8x128xbf16>
    %cst_201 = arith.constant dense<0.000000e+00> : vector<8x512xf32>
    %475 = tpu.matmul %474, %318, %cst_201 {dimension_numbers = #tpu.dot_dimension_numbers<[1], [0], [0], [1], [0, 0, 1, 1], [], []>} : vector<8x128xbf16>, vector<128x512xbf16>, vector<8x512xf32> -> vector<8x512xf32>
    %476 = arith.addf %473, %475 : vector<8x512xf32>
    %477 = vector.extract_strided_slice %476 {offsets = [0, 0], sizes = [8, 128], strides = [1, 1]} : vector<8x512xf32> to vector<8x128xf32>
    %cst_202 = arith.constant 5.000000e-01 : f32
    %478 = vector.broadcast %cst_202 : f32 to vector<8x128xf32>
    %479 = arith.mulf %478, %477 : vector<8x128xf32>
    %480 = math.tanh %479 : vector<8x128xf32>
    %cst_203 = arith.constant 1.000000e+00 : f32
    %481 = vector.broadcast %cst_203 : f32 to vector<8x128xf32>
    %482 = arith.addf %480, %481 : vector<8x128xf32>
    %cst_204 = arith.constant 5.000000e-01 : f32
    %483 = vector.broadcast %cst_204 : f32 to vector<8x128xf32>
    %484 = arith.mulf %483, %482 : vector<8x128xf32>
    %485 = vector.extract_strided_slice %476 {offsets = [0, 128], sizes = [8, 128], strides = [1, 1]} : vector<8x512xf32> to vector<8x128xf32>
    %cst_205 = arith.constant 5.000000e-01 : f32
    %486 = vector.broadcast %cst_205 : f32 to vector<8x128xf32>
    %487 = arith.mulf %486, %485 : vector<8x128xf32>
    %488 = math.tanh %487 : vector<8x128xf32>
    %cst_206 = arith.constant 1.000000e+00 : f32
    %489 = vector.broadcast %cst_206 : f32 to vector<8x128xf32>
    %490 = arith.addf %488, %489 : vector<8x128xf32>
    %cst_207 = arith.constant 5.000000e-01 : f32
    %491 = vector.broadcast %cst_207 : f32 to vector<8x128xf32>
    %492 = arith.mulf %491, %490 : vector<8x128xf32>
    %493 = vector.extract_strided_slice %476 {offsets = [0, 256], sizes = [8, 128], strides = [1, 1]} : vector<8x512xf32> to vector<8x128xf32>
    %494 = math.tanh %493 : vector<8x128xf32>
    %495 = vector.extract_strided_slice %476 {offsets = [0, 384], sizes = [8, 128], strides = [1, 1]} : vector<8x512xf32> to vector<8x128xf32>
    %cst_208 = arith.constant 5.000000e-01 : f32
    %496 = vector.broadcast %cst_208 : f32 to vector<8x128xf32>
    %497 = arith.mulf %496, %495 : vector<8x128xf32>
    %498 = math.tanh %497 : vector<8x128xf32>
    %cst_209 = arith.constant 1.000000e+00 : f32
    %499 = vector.broadcast %cst_209 : f32 to vector<8x128xf32>
    %500 = arith.addf %498, %499 : vector<8x128xf32>
    %cst_210 = arith.constant 5.000000e-01 : f32
    %501 = vector.broadcast %cst_210 : f32 to vector<8x128xf32>
    %502 = arith.mulf %501, %500 : vector<8x128xf32>
    %503 = arith.mulf %492, %467 : vector<8x128xf32>
    %504 = arith.mulf %484, %494 : vector<8x128xf32>
    %505 = arith.addf %503, %504 : vector<8x128xf32>
    %506 = math.tanh %505 : vector<8x128xf32>
    %507 = arith.mulf %502, %506 : vector<8x128xf32>
    %c4 = arith.constant 4 : index
    %c0_211 = arith.constant 0 : index
    %c0_212 = arith.constant 0 : index
    %508 = vector.load %arg5[%c4, %c0_211, %c0_212] : memref<8x8x128xf32, #tpu.memory_space<vmem>>, vector<1x8x128xf32>
    %509 = vector.shape_cast %508 : vector<1x8x128xf32> to vector<8x128xf32>
    %510 = vector.shape_cast %507 : vector<8x128xf32> to vector<1x8x128xf32>
    tpu.vector_store %arg5[%c4, %c0_211, %c0_212], %510 {strides = array<i32>} : memref<8x8x128xf32, #tpu.memory_space<vmem>>, vector<1x8x128xf32>,
    %c40_213 = arith.constant 40 : index
    %c0_214 = arith.constant 0 : index
    %511 = vector.load %arg8[%c40_213, %c0_214] : memref<64x512xf32, #tpu.memory_space<vmem>>, vector<8x512xf32>
    %512 = arith.truncf %507 : vector<8x128xf32> to vector<8x128xbf16>
    %cst_215 = arith.constant dense<0.000000e+00> : vector<8x512xf32>
    %513 = tpu.matmul %512, %318, %cst_215 {dimension_numbers = #tpu.dot_dimension_numbers<[1], [0], [0], [1], [0, 0, 1, 1], [], []>} : vector<8x128xbf16>, vector<128x512xbf16>, vector<8x512xf32> -> vector<8x512xf32>
    %514 = arith.addf %511, %513 : vector<8x512xf32>
    %515 = vector.extract_strided_slice %514 {offsets = [0, 0], sizes = [8, 128], strides = [1, 1]} : vector<8x512xf32> to vector<8x128xf32>
    %cst_216 = arith.constant 5.000000e-01 : f32
    %516 = vector.broadcast %cst_216 : f32 to vector<8x128xf32>
    %517 = arith.mulf %516, %515 : vector<8x128xf32>
    %518 = math.tanh %517 : vector<8x128xf32>
    %cst_217 = arith.constant 1.000000e+00 : f32
    %519 = vector.broadcast %cst_217 : f32 to vector<8x128xf32>
    %520 = arith.addf %518, %519 : vector<8x128xf32>
    %cst_218 = arith.constant 5.000000e-01 : f32
    %521 = vector.broadcast %cst_218 : f32 to vector<8x128xf32>
    %522 = arith.mulf %521, %520 : vector<8x128xf32>
    %523 = vector.extract_strided_slice %514 {offsets = [0, 128], sizes = [8, 128], strides = [1, 1]} : vector<8x512xf32> to vector<8x128xf32>
    %cst_219 = arith.constant 5.000000e-01 : f32
    %524 = vector.broadcast %cst_219 : f32 to vector<8x128xf32>
    %525 = arith.mulf %524, %523 : vector<8x128xf32>
    %526 = math.tanh %525 : vector<8x128xf32>
    %cst_220 = arith.constant 1.000000e+00 : f32
    %527 = vector.broadcast %cst_220 : f32 to vector<8x128xf32>
    %528 = arith.addf %526, %527 : vector<8x128xf32>
    %cst_221 = arith.constant 5.000000e-01 : f32
    %529 = vector.broadcast %cst_221 : f32 to vector<8x128xf32>
    %530 = arith.mulf %529, %528 : vector<8x128xf32>
    %531 = vector.extract_strided_slice %514 {offsets = [0, 256], sizes = [8, 128], strides = [1, 1]} : vector<8x512xf32> to vector<8x128xf32>
    %532 = math.tanh %531 : vector<8x128xf32>
    %533 = vector.extract_strided_slice %514 {offsets = [0, 384], sizes = [8, 128], strides = [1, 1]} : vector<8x512xf32> to vector<8x128xf32>
    %cst_222 = arith.constant 5.000000e-01 : f32
    %534 = vector.broadcast %cst_222 : f32 to vector<8x128xf32>
    %535 = arith.mulf %534, %533 : vector<8x128xf32>
    %536 = math.tanh %535 : vector<8x128xf32>
    %cst_223 = arith.constant 1.000000e+00 : f32
    %537 = vector.broadcast %cst_223 : f32 to vector<8x128xf32>
    %538 = arith.addf %536, %537 : vector<8x128xf32>
    %cst_224 = arith.constant 5.000000e-01 : f32
    %539 = vector.broadcast %cst_224 : f32 to vector<8x128xf32>
    %540 = arith.mulf %539, %538 : vector<8x128xf32>
    %541 = arith.mulf %530, %505 : vector<8x128xf32>
    %542 = arith.mulf %522, %532 : vector<8x128xf32>
    %543 = arith.addf %541, %542 : vector<8x128xf32>
    %544 = math.tanh %543 : vector<8x128xf32>
    %545 = arith.mulf %540, %544 : vector<8x128xf32>
    %c5 = arith.constant 5 : index
    %c0_225 = arith.constant 0 : index
    %c0_226 = arith.constant 0 : index
    %546 = vector.load %arg5[%c5, %c0_225, %c0_226] : memref<8x8x128xf32, #tpu.memory_space<vmem>>, vector<1x8x128xf32>
    %547 = vector.shape_cast %546 : vector<1x8x128xf32> to vector<8x128xf32>
    %548 = vector.shape_cast %545 : vector<8x128xf32> to vector<1x8x128xf32>
    tpu.vector_store %arg5[%c5, %c0_225, %c0_226], %548 {strides = array<i32>} : memref<8x8x128xf32, #tpu.memory_space<vmem>>, vector<1x8x128xf32>,
    %c48_227 = arith.constant 48 : index
    %c0_228 = arith.constant 0 : index
    %549 = vector.load %arg8[%c48_227, %c0_228] : memref<64x512xf32, #tpu.memory_space<vmem>>, vector<8x512xf32>
    %550 = arith.truncf %545 : vector<8x128xf32> to vector<8x128xbf16>
    %cst_229 = arith.constant dense<0.000000e+00> : vector<8x512xf32>
    %551 = tpu.matmul %550, %318, %cst_229 {dimension_numbers = #tpu.dot_dimension_numbers<[1], [0], [0], [1], [0, 0, 1, 1], [], []>} : vector<8x128xbf16>, vector<128x512xbf16>, vector<8x512xf32> -> vector<8x512xf32>
    %552 = arith.addf %549, %551 : vector<8x512xf32>
    %553 = vector.extract_strided_slice %552 {offsets = [0, 0], sizes = [8, 128], strides = [1, 1]} : vector<8x512xf32> to vector<8x128xf32>
    %cst_230 = arith.constant 5.000000e-01 : f32
    %554 = vector.broadcast %cst_230 : f32 to vector<8x128xf32>
    %555 = arith.mulf %554, %553 : vector<8x128xf32>
    %556 = math.tanh %555 : vector<8x128xf32>
    %cst_231 = arith.constant 1.000000e+00 : f32
    %557 = vector.broadcast %cst_231 : f32 to vector<8x128xf32>
    %558 = arith.addf %556, %557 : vector<8x128xf32>
    %cst_232 = arith.constant 5.000000e-01 : f32
    %559 = vector.broadcast %cst_232 : f32 to vector<8x128xf32>
    %560 = arith.mulf %559, %558 : vector<8x128xf32>
    %561 = vector.extract_strided_slice %552 {offsets = [0, 128], sizes = [8, 128], strides = [1, 1]} : vector<8x512xf32> to vector<8x128xf32>
    %cst_233 = arith.constant 5.000000e-01 : f32
    %562 = vector.broadcast %cst_233 : f32 to vector<8x128xf32>
    %563 = arith.mulf %562, %561 : vector<8x128xf32>
    %564 = math.tanh %563 : vector<8x128xf32>
    %cst_234 = arith.constant 1.000000e+00 : f32
    %565 = vector.broadcast %cst_234 : f32 to vector<8x128xf32>
    %566 = arith.addf %564, %565 : vector<8x128xf32>
    %cst_235 = arith.constant 5.000000e-01 : f32
    %567 = vector.broadcast %cst_235 : f32 to vector<8x128xf32>
    %568 = arith.mulf %567, %566 : vector<8x128xf32>
    %569 = vector.extract_strided_slice %552 {offsets = [0, 256], sizes = [8, 128], strides = [1, 1]} : vector<8x512xf32> to vector<8x128xf32>
    %570 = math.tanh %569 : vector<8x128xf32>
    %571 = vector.extract_strided_slice %552 {offsets = [0, 384], sizes = [8, 128], strides = [1, 1]} : vector<8x512xf32> to vector<8x128xf32>
    %cst_236 = arith.constant 5.000000e-01 : f32
    %572 = vector.broadcast %cst_236 : f32 to vector<8x128xf32>
    %573 = arith.mulf %572, %571 : vector<8x128xf32>
    %574 = math.tanh %573 : vector<8x128xf32>
    %cst_237 = arith.constant 1.000000e+00 : f32
    %575 = vector.broadcast %cst_237 : f32 to vector<8x128xf32>
    %576 = arith.addf %574, %575 : vector<8x128xf32>
    %cst_238 = arith.constant 5.000000e-01 : f32
    %577 = vector.broadcast %cst_238 : f32 to vector<8x128xf32>
    %578 = arith.mulf %577, %576 : vector<8x128xf32>
    %579 = arith.mulf %568, %543 : vector<8x128xf32>
    %580 = arith.mulf %560, %570 : vector<8x128xf32>
    %581 = arith.addf %579, %580 : vector<8x128xf32>
    %582 = math.tanh %581 : vector<8x128xf32>
    %583 = arith.mulf %578, %582 : vector<8x128xf32>
    %c6 = arith.constant 6 : index
    %c0_239 = arith.constant 0 : index
    %c0_240 = arith.constant 0 : index
    %584 = vector.load %arg5[%c6, %c0_239, %c0_240] : memref<8x8x128xf32, #tpu.memory_space<vmem>>, vector<1x8x128xf32>
    %585 = vector.shape_cast %584 : vector<1x8x128xf32> to vector<8x128xf32>
    %586 = vector.shape_cast %583 : vector<8x128xf32> to vector<1x8x128xf32>
    tpu.vector_store %arg5[%c6, %c0_239, %c0_240], %586 {strides = array<i32>} : memref<8x8x128xf32, #tpu.memory_space<vmem>>, vector<1x8x128xf32>,
    %c56_241 = arith.constant 56 : index
    %c0_242 = arith.constant 0 : index
    %587 = vector.load %arg8[%c56_241, %c0_242] : memref<64x512xf32, #tpu.memory_space<vmem>>, vector<8x512xf32>
    %588 = arith.truncf %583 : vector<8x128xf32> to vector<8x128xbf16>
    %cst_243 = arith.constant dense<0.000000e+00> : vector<8x512xf32>
    %589 = tpu.matmul %588, %318, %cst_243 {dimension_numbers = #tpu.dot_dimension_numbers<[1], [0], [0], [1], [0, 0, 1, 1], [], []>} : vector<8x128xbf16>, vector<128x512xbf16>, vector<8x512xf32> -> vector<8x512xf32>
    %590 = arith.addf %587, %589 : vector<8x512xf32>
    %591 = vector.extract_strided_slice %590 {offsets = [0, 0], sizes = [8, 128], strides = [1, 1]} : vector<8x512xf32> to vector<8x128xf32>
    %cst_244 = arith.constant 5.000000e-01 : f32
    %592 = vector.broadcast %cst_244 : f32 to vector<8x128xf32>
    %593 = arith.mulf %592, %591 : vector<8x128xf32>
    %594 = math.tanh %593 : vector<8x128xf32>
    %cst_245 = arith.constant 1.000000e+00 : f32
    %595 = vector.broadcast %cst_245 : f32 to vector<8x128xf32>
    %596 = arith.addf %594, %595 : vector<8x128xf32>
    %cst_246 = arith.constant 5.000000e-01 : f32
    %597 = vector.broadcast %cst_246 : f32 to vector<8x128xf32>
    %598 = arith.mulf %597, %596 : vector<8x128xf32>
    %599 = vector.extract_strided_slice %590 {offsets = [0, 128], sizes = [8, 128], strides = [1, 1]} : vector<8x512xf32> to vector<8x128xf32>
    %cst_247 = arith.constant 5.000000e-01 : f32
    %600 = vector.broadcast %cst_247 : f32 to vector<8x128xf32>
    %601 = arith.mulf %600, %599 : vector<8x128xf32>
    %602 = math.tanh %601 : vector<8x128xf32>
    %cst_248 = arith.constant 1.000000e+00 : f32
    %603 = vector.broadcast %cst_248 : f32 to vector<8x128xf32>
    %604 = arith.addf %602, %603 : vector<8x128xf32>
    %cst_249 = arith.constant 5.000000e-01 : f32
    %605 = vector.broadcast %cst_249 : f32 to vector<8x128xf32>
    %606 = arith.mulf %605, %604 : vector<8x128xf32>
    %607 = vector.extract_strided_slice %590 {offsets = [0, 256], sizes = [8, 128], strides = [1, 1]} : vector<8x512xf32> to vector<8x128xf32>
    %608 = math.tanh %607 : vector<8x128xf32>
    %609 = vector.extract_strided_slice %590 {offsets = [0, 384], sizes = [8, 128], strides = [1, 1]} : vector<8x512xf32> to vector<8x128xf32>
    %cst_250 = arith.constant 5.000000e-01 : f32
    %610 = vector.broadcast %cst_250 : f32 to vector<8x128xf32>
    %611 = arith.mulf %610, %609 : vector<8x128xf32>
    %612 = math.tanh %611 : vector<8x128xf32>
    %cst_251 = arith.constant 1.000000e+00 : f32
    %613 = vector.broadcast %cst_251 : f32 to vector<8x128xf32>
    %614 = arith.addf %612, %613 : vector<8x128xf32>
    %cst_252 = arith.constant 5.000000e-01 : f32
    %615 = vector.broadcast %cst_252 : f32 to vector<8x128xf32>
    %616 = arith.mulf %615, %614 : vector<8x128xf32>
    %617 = arith.mulf %606, %581 : vector<8x128xf32>
    %618 = arith.mulf %598, %608 : vector<8x128xf32>
    %619 = arith.addf %617, %618 : vector<8x128xf32>
    %620 = math.tanh %619 : vector<8x128xf32>
    %621 = arith.mulf %616, %620 : vector<8x128xf32>
    %c7 = arith.constant 7 : index
    %c0_253 = arith.constant 0 : index
    %c0_254 = arith.constant 0 : index
    %622 = vector.load %arg5[%c7, %c0_253, %c0_254] : memref<8x8x128xf32, #tpu.memory_space<vmem>>, vector<1x8x128xf32>
    %623 = vector.shape_cast %622 : vector<1x8x128xf32> to vector<8x128xf32>
    %624 = vector.shape_cast %621 : vector<8x128xf32> to vector<1x8x128xf32>
    tpu.vector_store %arg5[%c7, %c0_253, %c0_254], %624 {strides = array<i32>} : memref<8x8x128xf32, #tpu.memory_space<vmem>>, vector<1x8x128xf32>,
    %c1_255 = arith.constant 1 : index
    %c0_256 = arith.constant 0 : index
    %c0_257 = arith.constant 0 : index
    %625 = vector.load %arg6[%c1_255, %c0_256, %c0_257] : memref<2x8x128xf32, #tpu.memory_space<vmem>>, vector<1x8x128xf32>
    %626 = vector.shape_cast %625 : vector<1x8x128xf32> to vector<8x128xf32>
    %627 = vector.shape_cast %621 : vector<8x128xf32> to vector<1x8x128xf32>
    tpu.vector_store %arg6[%c1_255, %c0_256, %c0_257], %627 {strides = array<i32>} : memref<2x8x128xf32, #tpu.memory_space<vmem>>, vector<1x8x128xf32>,
    %c1_258 = arith.constant 1 : index
    %c0_259 = arith.constant 0 : index
    %c0_260 = arith.constant 0 : index
    %628 = vector.load %arg7[%c1_258, %c0_259, %c0_260] : memref<2x8x128xf32, #tpu.memory_space<vmem>>, vector<1x8x128xf32>
    %629 = vector.shape_cast %628 : vector<1x8x128xf32> to vector<8x128xf32>
    %630 = vector.shape_cast %619 : vector<8x128xf32> to vector<1x8x128xf32>
    tpu.vector_store %arg7[%c1_258, %c0_259, %c0_260], %630 {strides = array<i32>} : memref<2x8x128xf32, #tpu.memory_space<vmem>>, vector<1x8x128xf32>,
    return
  }
  func.func @transform_0(%arg0: i32) -> (i32, i32, i32) {
    %c0_i32 = arith.constant 0 : i32
    %c0_i32_0 = arith.constant 0 : i32
    %c0_i32_1 = arith.constant 0 : i32
    return %c0_i32, %arg0, %c0_i32_0 : i32, i32, i32
  }
  func.func @transform_1(%arg0: i32) -> (i32, i32, i32) {
    %c0_i32 = arith.constant 0 : i32
    %c0_i32_0 = arith.constant 0 : i32
    %c0_i32_1 = arith.constant 0 : i32
    %c0_i32_2 = arith.constant 0 : i32
    return %c0_i32, %c0_i32_0, %c0_i32_1 : i32, i32, i32
  }
  func.func @transform_2(%arg0: i32) -> (i32, i32, i32) {
    %c0_i32 = arith.constant 0 : i32
    %c0_i32_0 = arith.constant 0 : i32
    %c0_i32_1 = arith.constant 0 : i32
    %c0_i32_2 = arith.constant 0 : i32
    return %c0_i32, %c0_i32_0, %c0_i32_1 : i32, i32, i32
  }
  func.func @transform_3(%arg0: i32) -> (i32, i32, i32) {
    %c0_i32 = arith.constant 0 : i32
    %c0_i32_0 = arith.constant 0 : i32
    %c0_i32_1 = arith.constant 0 : i32
    %c0_i32_2 = arith.constant 0 : i32
    return %c0_i32, %c0_i32_0, %c0_i32_1 : i32, i32, i32
  }
  func.func @transform_4(%arg0: i32) -> (i32, i32, i32) {
    %c0_i32 = arith.constant 0 : i32
    %c0_i32_0 = arith.constant 0 : i32
    %c0_i32_1 = arith.constant 0 : i32
    return %c0_i32, %arg0, %c0_i32_0 : i32, i32, i32
  }
  func.func @transform_5(%arg0: i32) -> (i32, i32, i32) {
    %c0_i32 = arith.constant 0 : i32
    %c0_i32_0 = arith.constant 0 : i32
    %c0_i32_1 = arith.constant 0 : i32
    return %c0_i32, %arg0, %c0_i32_0 : i32, i32, i32
  }
  func.func @transform_6(%arg0: i32) -> (i32, i32, i32) {
    %c0_i32 = arith.constant 0 : i32
    %c0_i32_0 = arith.constant 0 : i32
    %c0_i32_1 = arith.constant 0 : i32
    return %c0_i32, %arg0, %c0_i32_0 : i32, i32, i32
  }
}

</mosaic_0001>

<bundles_post_ra>
// kernel: tpu_custom_call.1
= control target key start
LH: loop header
LB: loop body
LE: loop exit
PB: predicated region body
PF: predicated region fallthrough
CT: control target
= control target key end

     0   :  { %12 = vsyncpa [#allocation5], 0  ;;  %s4134_s0 = inlined_call_operand.hbm [shape: f32[8,8,128], index: 0, kind: input, shape index: {}]   ;;  %s4135_s1 = inlined_call_operand.hbm [shape: f32[2,128,512], index: 1, kind: input, shape index: {}]   ;;  %s4136_s2 = inlined_call_operand.hbm [shape: bf16[2,128,512], index: 2, kind: input, shape index: {}]   ;;  %s4137_s3 = inlined_call_operand.hbm [shape: f32[2,1,512], index: 3, kind: input, shape index: {}]   ;;  %s4138_s4 = inlined_call_operand.hbm [shape: f32[8,8,128], index: 4, kind: output, shape index: {0}]   ;;  %s4139_s5 = inlined_call_operand.hbm [shape: f32[2,8,128], index: 5, kind: output, shape index: {1}]   ;;  %s4140_s6 = inlined_call_operand.hbm [shape: f32[2,8,128], index: 6, kind: output, shape index: {2}]  }
   0x1   :  { %13 = vsyncpa [#allocation8], 0 }
   0x2   :  { %14 = vsyncpa [#allocation11], 0 }
   0x3   :  { %15 = vsyncpa [#allocation6], 0  ;;  %s34_s23 = sshll.u32 %s4135_s1, 4  ;;  %s35_s23 = int_to_ptr.hbm [resolvable:$true] %s34_s23 }
   0x4   :  { %16 = vsyncpa [#allocation14], 0  ;;  %s3050_s24 = smov [#allocation7]   ;;  %s21_s28 = sshll.u32 %s4134_s0, 4  ;;  %s22_s28 = int_to_ptr.hbm [resolvable:$true] %s21_s28 }
   0x5   :  { %s36_s25 = sshll.u32 %s3050_s24, 4  ;;  %s3051_s29 = smov 512   ;;  %s37_s25 = int_to_ptr.vmem [resolvable:$true] %s36_s25 }
   0x6   :  { %s3052_s30 = smov 32   ;;  %s3053_s7 = smov [#allocation4]  }
   0x7   :  { %42 = dma.hbm_to_vmem [thread:$0]  %s35_s23, 16384, %s37_s25, [#allocation8], %s3051_s29, %s3051_s29, %s3052_s30  }
   0x8   :  { %s23_s8 = sshll.u32 %s3053_s7, 4  ;;  %s3054_s9 = smov 128   ;;  %s24_s8 = int_to_ptr.vmem [resolvable:$true] %s23_s8 }
   0x9   :  { %s3055_s10 = smov 8   ;;  %s47_s12 = sshll.u32 %s4136_s2, 4  ;;  %s48_s12 = int_to_ptr.hbm [resolvable:$true] %s47_s12 }
   0xa   :  { %29 = dma.hbm_to_vmem [thread:$0]  %s22_s28, 1024, %s24_s8, [#allocation5], %s3054_s9, %s3054_s9, %s3055_s10  }
   0xb   :  { %s3056_s13 = smov [#allocation9]   ;;  %s60_s16 = sshll.u32 %s4137_s3, 4  ;;  %s61_s16 = int_to_ptr.hbm [resolvable:$true] %s60_s16 }
   0xc   :  { %s49_s0 = sshll.u32 %s3056_s13, 4  ;;  %s3057_s17 = smov 256   ;;  %s50_s0 = int_to_ptr.vmem [resolvable:$true] %s49_s0 }
   0xd   :  { %s3058_s18 = smov 16   ;;  %s3059_s19 = smov [#allocation10]  }
   0xe   :  { %55 = dma.hbm_to_vmem [thread:$0]  %s48_s12, 8192, %s50_s0, [#allocation8], %s3057_s17, %s3057_s17, %s3058_s18  }
   0xf   :  { %s62_s20 = sshll.u32 %s3059_s19, 4  ;;  %s3060_s21 = smov 64   ;;  %s63_s20 = int_to_ptr.vmem [resolvable:$true] %s62_s20 }
  0x10   :  { %s3061_s22 = smov 4  }
  0x11   :  { %68 = dma.hbm_to_vmem [thread:$0]  %s61_s16, 128, %s63_s20, [#allocation11], %s3060_s21, %s3060_s21, %s3061_s22  }
  0x12   :  { %3040 = dma.done.wait [#allocation5], 1024  }
  0x13   :  { %3041 = vsyncadd [#allocation5], 4294966272 }
  0x14   :  { %3042 = dma.done.wait [#allocation8], 24576  }
  0x15   :  { %3043 = vsyncadd [#allocation8], 4294942720 }
  0x16   :  { %3044 = dma.done.wait [#allocation11], 128  }
  0x17   :  { %3045 = vsyncadd [#allocation11], 4294967168  ;;  %v154_v0 = vld [vmem:[#allocation7 + $0x1e0] sm:$0xff]  ;;  %v155_v1 = vld [vmem:[#allocation7 + $0x1e8] sm:$0xff]  ;;  %s3063_s2 = smov [#allocation12]   ;;  %s2326_s25 = sshll.u32 %s4138_s4, 4  ;;  %s2327_s25 = int_to_ptr.hbm [resolvable:$true] %s2326_s25 }
  0x18   :  { %v156_v2 = vld [vmem:[#allocation7 + $0x1f0] sm:$0xff]  ;;  %168 = vmatpush.msra.mxu0 %v154_v0  ;;  %209 = vmatpush.msra.mxu1 %v155_v1  ;;  %v157_v3 = vld [vmem:[#allocation7 + $0x1f8] sm:$0xff]  ;;  %v150_v4 = vld [vmem:[#allocation7 + $0x1c0] sm:$0xff]  ;;  %s2324_s3 = sshll.u32 %s3063_s2, 4  ;;  %s3064_s26 = smov [#allocation13]   ;;  %s2325_s3 = int_to_ptr.vmem [resolvable:$true] %s2324_s3 }
  0x19   :  { %v151_v5 = vld [vmem:[#allocation7 + $0x1c8] sm:$0xff]  ;;  %250 = vmatpush.msra.mxu2 %v156_v2  ;;  %291 = vmatpush.msra.mxu3 %v157_v3  ;;  %v152_v6 = vld [vmem:[#allocation7 + $0x1d0] sm:$0xff]  ;;  %v153_v7 = vld [vmem:[#allocation7 + $0x1d8] sm:$0xff]  ;;  %s2337_s27 = sshll.u32 %s3064_s26, 4  ;;  %s2339_s30 = sshll.u32 %s4139_s5, 4  ;;  %s2338_s27 = int_to_ptr.vmem [resolvable:$true] %s2337_s27  ;;  %s2340_s30 = int_to_ptr.hbm [resolvable:$true] %s2339_s30 }
  0x1a   :  { %v146_v8 = vld [vmem:[#allocation7 + $0x1a0] sm:$0xff]  ;;  %169 = vmatpush.msra.mxu0 %v150_v4  ;;  %210 = vmatpush.msra.mxu1 %v151_v5  ;;  %v147_v9 = vld [vmem:[#allocation7 + $0x1a8] sm:$0xff]  ;;  %v148_v10 = vld [vmem:[#allocation7 + $0x1b0] sm:$0xff]  ;;  %s3065_s7 = smov [#allocation15]   ;;  %s2352_s12 = sshll.u32 %s4140_s6, 4  ;;  %s2353_s12 = int_to_ptr.hbm [resolvable:$true] %s2352_s12 }
  0x1b   :  { %v149_v11 = vld [vmem:[#allocation7 + $0x1b8] sm:$0xff]  ;;  %251 = vmatpush.msra.mxu2 %v152_v6  ;;  %292 = vmatpush.msra.mxu3 %v153_v7  ;;  %v142_v12 = vld [vmem:[#allocation7 + $0x180] sm:$0xff]  ;;  %v143_v13 = vld [vmem:[#allocation7 + $0x188] sm:$0xff]  ;;  %s2350_s8 = sshll.u32 %s3065_s7, 4  ;;  %s2351_s8 = int_to_ptr.vmem [resolvable:$true] %s2350_s8 }
  0x1c   :  { %170 = vmatpush.msra.mxu0 %v146_v8  ;;  %211 = vmatpush.msra.mxu1 %v147_v9  ;;  %v144_v14 = vld [vmem:[#allocation7 + $0x190] sm:$0xff]  ;;  %v145_v15 = vld [vmem:[#allocation7 + $0x198] sm:$0xff]  ;;  %v138_v16 = vld [vmem:[#allocation7 + $0x160] sm:$0xff] }
  0x1d   :  { %252 = vmatpush.msra.mxu2 %v148_v10  ;;  %293 = vmatpush.msra.mxu3 %v149_v11  ;;  %v139_v17 = vld [vmem:[#allocation7 + $0x168] sm:$0xff]  ;;  %v140_v18 = vld [vmem:[#allocation7 + $0x170] sm:$0xff]  ;;  %v141_v19 = vld [vmem:[#allocation7 + $0x178] sm:$0xff] }
  0x1e   :  { %171 = vmatpush.msra.mxu0 %v142_v12  ;;  %212 = vmatpush.msra.mxu1 %v143_v13  ;;  %v134_v20 = vld [vmem:[#allocation7 + $0x140] sm:$0xff]  ;;  %v135_v21 = vld [vmem:[#allocation7 + $0x148] sm:$0xff]  ;;  %v136_v22 = vld [vmem:[#allocation7 + $0x150] sm:$0xff] }
  0x1f   :  { %253 = vmatpush.msra.mxu2 %v144_v14  ;;  %294 = vmatpush.msra.mxu3 %v145_v15  ;;  %v137_v23 = vld [vmem:[#allocation7 + $0x158] sm:$0xff]  ;;  %v130_v24 = vld [vmem:[#allocation7 + $0x120] sm:$0xff]  ;;  %v131_v25 = vld [vmem:[#allocation7 + $0x128] sm:$0xff] }
  0x20   :  { %172 = vmatpush.msra.mxu0 %v138_v16  ;;  %213 = vmatpush.msra.mxu1 %v139_v17  ;;  %v132_v26 = vld [vmem:[#allocation7 + $0x130] sm:$0xff]  ;;  %v133_v27 = vld [vmem:[#allocation7 + $0x138] sm:$0xff]  ;;  %v126_v28 = vld [vmem:[#allocation7 + $0x100] sm:$0xff] }
  0x21   :  { %254 = vmatpush.msra.mxu2 %v140_v18  ;;  %295 = vmatpush.msra.mxu3 %v141_v19  ;;  %v127_v29 = vld [vmem:[#allocation7 + $0x108] sm:$0xff]  ;;  %v128_v30 = vld [vmem:[#allocation7 + $0x110] sm:$0xff]  ;;  %v129_v31 = vld [vmem:[#allocation7 + $0x118] sm:$0xff] }
  0x22   :  { %173 = vmatpush.msra.mxu0 %v134_v20  ;;  %214 = vmatpush.msra.mxu1 %v135_v21  ;;  %v122_v32 = vld [vmem:[#allocation7 + $0xe0] sm:$0xff]  ;;  %v123_v33 = vld [vmem:[#allocation7 + $0xe8] sm:$0xff]  ;;  %v124_v34 = vld [vmem:[#allocation7 + $0xf0] sm:$0xff] }
  0x23   :  { %255 = vmatpush.msra.mxu2 %v136_v22  ;;  %296 = vmatpush.msra.mxu3 %v137_v23  ;;  %v125_v35 = vld [vmem:[#allocation7 + $0xf8] sm:$0xff]  ;;  %v118_v36 = vld [vmem:[#allocation7 + $0xc0] sm:$0xff]  ;;  %v119_v37 = vld [vmem:[#allocation7 + $0xc8] sm:$0xff] }
  0x24   :  { %174 = vmatpush.msra.mxu0 %v130_v24  ;;  %215 = vmatpush.msra.mxu1 %v131_v25  ;;  %v120_v38 = vld [vmem:[#allocation7 + $0xd0] sm:$0xff]  ;;  %v121_v39 = vld [vmem:[#allocation7 + $0xd8] sm:$0xff]  ;;  %v114_v40 = vld [vmem:[#allocation7 + $0xa0] sm:$0xff] }
  0x25   :  { %256 = vmatpush.msra.mxu2 %v132_v26  ;;  %297 = vmatpush.msra.mxu3 %v133_v27  ;;  %v115_v41 = vld [vmem:[#allocation7 + $0xa8] sm:$0xff]  ;;  %v116_v42 = vld [vmem:[#allocation7 + $0xb0] sm:$0xff]  ;;  %v117_v43 = vld [vmem:[#allocation7 + $0xb8] sm:$0xff] }
  0x26   :  { %175 = vmatpush.msra.mxu0 %v126_v28  ;;  %216 = vmatpush.msra.mxu1 %v127_v29  ;;  %v110_v44 = vld [vmem:[#allocation7 + $0x80] sm:$0xff]  ;;  %v111_v45 = vld [vmem:[#allocation7 + $0x88] sm:$0xff]  ;;  %v112_v46 = vld [vmem:[#allocation7 + $0x90] sm:$0xff] }
  0x27   :  { %257 = vmatpush.msra.mxu2 %v128_v30  ;;  %298 = vmatpush.msra.mxu3 %v129_v31  ;;  %v113_v47 = vld [vmem:[#allocation7 + $0x98] sm:$0xff]  ;;  %v106_v48 = vld [vmem:[#allocation7 + $0x60] sm:$0xff]  ;;  %v107_v49 = vld [vmem:[#allocation7 + $0x68] sm:$0xff] }
  0x28   :  { %176 = vmatpush.msra.mxu0 %v122_v32  ;;  %217 = vmatpush.msra.mxu1 %v123_v33  ;;  %v108_v50 = vld [vmem:[#allocation7 + $0x70] sm:$0xff]  ;;  %v109_v51 = vld [vmem:[#allocation7 + $0x78] sm:$0xff]  ;;  %v102_v52 = vld [vmem:[#allocation7 + $0x40] sm:$0xff] }
  0x29   :  { %258 = vmatpush.msra.mxu2 %v124_v34  ;;  %299 = vmatpush.msra.mxu3 %v125_v35  ;;  %v103_v53 = vld [vmem:[#allocation7 + $0x48] sm:$0xff]  ;;  %v104_v54 = vld [vmem:[#allocation7 + $0x50] sm:$0xff]  ;;  %v105_v55 = vld [vmem:[#allocation7 + $0x58] sm:$0xff] }
  0x2a   :  { %177 = vmatpush.msra.mxu0 %v118_v36  ;;  %218 = vmatpush.msra.mxu1 %v119_v37  ;;  %v98_v56 = vld [vmem:[#allocation7 + $0x20] sm:$0xff]  ;;  %v99_v57 = vld [vmem:[#allocation7 + $0x28] sm:$0xff]  ;;  %v100_v58 = vld [vmem:[#allocation7 + $0x30] sm:$0xff] }
  0x2b   :  { %259 = vmatpush.msra.mxu2 %v120_v38  ;;  %300 = vmatpush.msra.mxu3 %v121_v39  ;;  %v101_v59 = vld [vmem:[#allocation7 + $0x38] sm:$0xff]  ;;  %v94_v60 = vld [vmem:[#allocation7] sm:$0xff]  ;;  %v95_v61 = vld [vmem:[#allocation7 + $0x8] sm:$0xff] }
  0x2c   :  { %178 = vmatpush.msra.mxu0 %v114_v40  ;;  %219 = vmatpush.msra.mxu1 %v115_v41  ;;  %v96_v62 = vld [vmem:[#allocation7 + $0x10] sm:$0xff]  ;;  %v97_v63 = vld [vmem:[#allocation7 + $0x18] sm:$0xff]  ;;  %v2490_v0 = vld [vmem:[#allocation9 + $0xe0] sm:$0xf] }
  0x2d   :  { %260 = vmatpush.msra.mxu2 %v116_v42  ;;  %301 = vmatpush.msra.mxu3 %v117_v43  ;;  %v2662_v1 = vld [vmem:[#allocation9 + $0xec] sm:$0xf0]  ;;  %v2660_v2 = vld [vmem:[#allocation9 + $0xe4] sm:$0xf]  ;;  %v2492_v3 = vld [vmem:[#allocation9 + $0xf0] sm:$0xf0] }
  0x2e   :  { %179 = vmatpush.msra.mxu0 %v110_v44  ;;  %220 = vmatpush.msra.mxu1 %v111_v45  ;;  %v2498_v4 = vld [vmem:[#allocation9 + $0xe8] sm:$0xf]  ;;  %v2663_v5 = vld [vmem:[#allocation9 + $0xf4] sm:$0xf0]  ;;  %v2661_v6 = vld [vmem:[#allocation9 + $0xec] sm:$0xf]  ;;  %v3116_v9 = vor.u32 %v2662_v1, %v2490_v0  ;;  %v3118_v10 = vor.u32 %v2660_v2, %v2492_v3 }
  0x2f   :  { %261 = vmatpush.msra.mxu2 %v112_v46  ;;  %302 = vmatpush.msra.mxu3 %v113_v47  ;;  %v2500_v7 = vld [vmem:[#allocation9 + $0xf8] sm:$0xf0]  ;;  %v86_v8 = vld [vmem:[#allocation4] sm:$0xff]  ;;  %v2658_v12 = vld [vmem:[#allocation9 + $0xcc] sm:$0xf0]  ;;  %v3120_v13 = vor.u32 %v2663_v5, %v2498_v4 }
  0x30   :  { %180 = vmatpush.msra.mxu0 %v106_v48  ;;  %221 = vmatpush.msra.mxu1 %v107_v49  ;;  %v2474_v11 = vld [vmem:[#allocation9 + $0xc0] sm:$0xf]  ;;  %v3122_v14 = vor.u32 %v2661_v6, %v2500_v7  ;;  %v2656_v15 = vld [vmem:[#allocation9 + $0xc4] sm:$0xf]  ;;  %v2476_v16 = vld [vmem:[#allocation9 + $0xd0] sm:$0xf0] }
  0x31   :  { %262 = vmatpush.msra.mxu2 %v108_v50  ;;  %303 = vmatpush.msra.mxu3 %v109_v51  ;;  %v2482_v17 = vld [vmem:[#allocation9 + $0xc8] sm:$0xf]  ;;  %v2659_v18 = vld [vmem:[#allocation9 + $0xd4] sm:$0xf0]  ;;  %v2657_v19 = vld [vmem:[#allocation9 + $0xcc] sm:$0xf]  ;;  %v3126_v21 = vor.u32 %v2658_v12, %v2474_v11  ;;  %v3128_v22 = vor.u32 %v2656_v15, %v2476_v16 }
  0x32   :  { %181 = vmatpush.msra.mxu0 %v102_v52  ;;  %222 = vmatpush.msra.mxu1 %v103_v53  ;;  %v2484_v20 = vld [vmem:[#allocation9 + $0xd8] sm:$0xf0]  ;;  %v2458_v23 = vld [vmem:[#allocation9 + $0xa0] sm:$0xf]  ;;  %v2654_v24 = vld [vmem:[#allocation9 + $0xac] sm:$0xf0]  ;;  %v3132_v25 = vor.u32 %v2659_v18, %v2482_v17 }
  0x33   :  { %263 = vmatpush.msra.mxu2 %v104_v54  ;;  %304 = vmatpush.msra.mxu3 %v105_v55  ;;  %v3134_v26 = vor.u32 %v2657_v19, %v2484_v20  ;;  %v2652_v27 = vld [vmem:[#allocation9 + $0xa4] sm:$0xf]  ;;  %v2460_v28 = vld [vmem:[#allocation9 + $0xb0] sm:$0xf0]  ;;  %v2466_v29 = vld [vmem:[#allocation9 + $0xa8] sm:$0xf]  ;;  %v3138_v34 = vor.u32 %v2654_v24, %v2458_v23 }
  0x34   :  { %182 = vmatpush.msra.mxu0 %v98_v56  ;;  %223 = vmatpush.msra.mxu1 %v99_v57  ;;  %v2655_v30 = vld [vmem:[#allocation9 + $0xb4] sm:$0xf0]  ;;  %v2653_v31 = vld [vmem:[#allocation9 + $0xac] sm:$0xf]  ;;  %v2468_v32 = vld [vmem:[#allocation9 + $0xb8] sm:$0xf0]  ;;  %v3140_v35 = vor.u32 %v2652_v27, %v2460_v28 }
  0x35   :  { %264 = vmatpush.msra.mxu2 %v100_v58  ;;  %305 = vmatpush.msra.mxu3 %v101_v59  ;;  %v87_v33 = vld [vmem:[#allocation4 + $0x8] sm:$0xff]  ;;  %v2442_v36 = vld [vmem:[#allocation9 + $0x80] sm:$0xf]  ;;  %v2650_v37 = vld [vmem:[#allocation9 + $0x8c] sm:$0xf0]  ;;  %v3144_v38 = vor.u32 %v2655_v30, %v2466_v29  ;;  %v3146_v39 = vor.u32 %v2653_v31, %v2468_v32 }
  0x36   :  { %183 = vmatpush.msra.mxu0 %v94_v60  ;;  %224 = vmatpush.msra.mxu1 %v95_v61  ;;  %v2648_v40 = vld [vmem:[#allocation9 + $0x84] sm:$0xf]  ;;  %v2444_v41 = vld [vmem:[#allocation9 + $0x90] sm:$0xf0]  ;;  %v2450_v42 = vld [vmem:[#allocation9 + $0x88] sm:$0xf]  ;;  %v3150_v46 = vor.u32 %v2650_v37, %v2442_v36 }
  0x37   :  { %265 = vmatpush.msra.mxu2 %v96_v62  ;;  %306 = vmatpush.msra.mxu3 %v97_v63  ;;  %v2651_v43 = vld [vmem:[#allocation9 + $0x94] sm:$0xf0]  ;;  %v2649_v44 = vld [vmem:[#allocation9 + $0x8c] sm:$0xf]  ;;  %v2452_v45 = vld [vmem:[#allocation9 + $0x98] sm:$0xf0]  ;;  %v3152_v47 = vor.u32 %v2648_v40, %v2444_v41 }
  0x38   :  { %184 = vmatmul.f32.vlgmr.msra.gmra.mxu0 %v86_v8  ;;  %225 = vmatmul.f32.vlgmr.msra.gmra.mxu1 %v86_v8  ;;  %v2426_v48 = vld [vmem:[#allocation9 + $0x60] sm:$0xf]  ;;  %v2646_v49 = vld [vmem:[#allocation9 + $0x6c] sm:$0xf0]  ;;  %v3156_v50 = vor.u32 %v2651_v43, %v2450_v42  ;;  %v3158_v51 = vor.u32 %v2649_v44, %v2452_v45  ;;  %v2644_v52 = vld [vmem:[#allocation9 + $0x64] sm:$0xf] }
  0x39   :  { %266 = vmatmul.f32.vlgmr.msra.gmra.mxu2 %v86_v8  ;;  %307 = vmatmul.f32.vlgmr.msra.gmra.mxu3 %v86_v8  ;;  %v2428_v53 = vld [vmem:[#allocation9 + $0x70] sm:$0xf0]  ;;  %v2434_v54 = vld [vmem:[#allocation9 + $0x68] sm:$0xf]  ;;  %v2647_v55 = vld [vmem:[#allocation9 + $0x74] sm:$0xf0]  ;;  %v3162_v59 = vor.u32 %v2646_v49, %v2426_v48 }
  0x3a   :  { %560 = vmatpush.bf16.msrb.mxu0 %v3116_v9  ;;  %573 = vmatpush.bf16.msrb.mxu1 %v3118_v10  ;;  %v2645_v56 = vld [vmem:[#allocation9 + $0x6c] sm:$0xf]  ;;  %v2436_v57 = vld [vmem:[#allocation9 + $0x78] sm:$0xf0]  ;;  %v88_v58 = vld [vmem:[#allocation4 + $0x10] sm:$0xff]  ;;  %v3164_v60 = vor.u32 %v2644_v52, %v2428_v53  ;;  %v3168_v63 = vor.u32 %v2647_v55, %v2434_v54 }
  0x3b   :  { %586 = vmatpush.bf16.msrb.mxu2 %v3120_v13  ;;  %599 = vmatpush.bf16.msrb.mxu3 %v3122_v14  ;;  %v2410_v61 = vld [vmem:[#allocation9 + $0x40] sm:$0xf]  ;;  %v2642_v62 = vld [vmem:[#allocation9 + $0x4c] sm:$0xf0]  ;;  %v3170_v0 = vor.u32 %v2645_v56, %v2436_v57  ;;  %v2640_v1 = vld [vmem:[#allocation9 + $0x44] sm:$0xf] }
  0x3c   :  { %v2412_v2 = vld [vmem:[#allocation9 + $0x50] sm:$0xf0]  ;;  %v2418_v3 = vld [vmem:[#allocation9 + $0x48] sm:$0xf]  ;;  %v2643_v4 = vld [vmem:[#allocation9 + $0x54] sm:$0xf0]  ;;  %v3174_v7 = vor.u32 %v2642_v62, %v2410_v61 }
  0x3d   :  { %v2641_v5 = vld [vmem:[#allocation9 + $0x4c] sm:$0xf]  ;;  %v2420_v6 = vld [vmem:[#allocation9 + $0x58] sm:$0xf0]  ;;  %v3176_v8 = vor.u32 %v2640_v1, %v2412_v2  ;;  %v2394_v11 = vld [vmem:[#allocation9 + $0x20] sm:$0xf]  ;;  %v3180_v15 = vor.u32 %v2643_v4, %v2418_v3 }
  0x3e   :  { %561 = vmatpush.bf16.msrb.mxu0 %v3126_v21  ;;  %574 = vmatpush.bf16.msrb.mxu1 %v3128_v22  ;;  %v2638_v12 = vld [vmem:[#allocation9 + $0x2c] sm:$0xf0]  ;;  %v3182_v16 = vor.u32 %v2641_v5, %v2420_v6  ;;  %v2636_v17 = vld [vmem:[#allocation9 + $0x24] sm:$0xf]  ;;  %v2396_v18 = vld [vmem:[#allocation9 + $0x30] sm:$0xf0] }
  0x3f   :  { %587 = vmatpush.bf16.msrb.mxu2 %v3132_v25  ;;  %600 = vmatpush.bf16.msrb.mxu3 %v3134_v26  ;;  %v2402_v19 = vld [vmem:[#allocation9 + $0x28] sm:$0xf]  ;;  %v2639_v20 = vld [vmem:[#allocation9 + $0x34] sm:$0xf0]  ;;  %v2637_v23 = vld [vmem:[#allocation9 + $0x2c] sm:$0xf]  ;;  %v3186_v28 = vor.u32 %v2638_v12, %v2394_v11  ;;  %v3188_v29 = vor.u32 %v2636_v17, %v2396_v18 }
  0x40   :  { %187 = vmatmul.f32.gmra.mxu0 %v87_v33  ;;  %228 = vmatmul.f32.gmra.mxu1 %v87_v33  ;;  %v2404_v24 = vld [vmem:[#allocation9 + $0x38] sm:$0xf0]  ;;  %v3192_v30 = vor.u32 %v2639_v20, %v2402_v19  ;;  %v2378_v32 = vld [vmem:[#allocation9] sm:$0xf]  ;;  %v2632_v36 = vld [vmem:[#allocation9 + $0x4] sm:$0xf] }
  0x41   :  { %269 = vmatmul.f32.gmra.mxu2 %v87_v33  ;;  %310 = vmatmul.f32.gmra.mxu3 %v87_v33  ;;  %v89_v27 = vld [vmem:[#allocation4 + $0x18] sm:$0xff]  ;;  %v3194_v31 = vor.u32 %v2637_v23, %v2404_v24  ;;  %v2634_v33 = vld [vmem:[#allocation9 + $0xc] sm:$0xf0]  ;;  %v2380_v40 = vld [vmem:[#allocation9 + $0x10] sm:$0xf0]  ;;  %v4141_v56 = vmov 0  }
  0x42   :  { %562 = vmatpush.bf16.msrb.mxu0 %v3138_v34  ;;  %575 = vmatpush.bf16.msrb.mxu1 %v3140_v35  ;;  %v3198_v37 = vor.u32 %v2634_v33, %v2378_v32  ;;  %v2386_v41 = vld [vmem:[#allocation9 + $0x8] sm:$0xf]  ;;  %v2635_v42 = vld [vmem:[#allocation9 + $0x14] sm:$0xf0]  ;;  %v3202_v43 = vor.u32 %v2632_v36, %v2380_v40  ;;  %v2633_v45 = vld [vmem:[#allocation9 + $0xc] sm:$0xf] }
  0x43   :  { %588 = vmatpush.bf16.msrb.mxu2 %v3144_v38  ;;  %601 = vmatpush.bf16.msrb.mxu3 %v3146_v39  ;;  %v3204_v44 = vor.u32 %v2635_v42, %v2386_v41  ;;  %v2388_v48 = vld [vmem:[#allocation9 + $0x18] sm:$0xf0]  ;;  %v90_v52 = vld [vmem:[#allocation4 + $0x20] sm:$0xff]  ;;  %v91_v53 = vld [vmem:[#allocation4 + $0x28] sm:$0xff] }
  0x44   :  { %v3206_v49 = vor.u32 %v2633_v45, %v2388_v48  ;;  %v92_v54 = vld [vmem:[#allocation4 + $0x30] sm:$0xff]  ;;  %v93_v55 = vld [vmem:[#allocation4 + $0x38] sm:$0xff] }
  0x46   :  { %563 = vmatpush.bf16.msrb.mxu0 %v3150_v46  ;;  %576 = vmatpush.bf16.msrb.mxu1 %v3152_v47 }
  0x47   :  { %589 = vmatpush.bf16.msrb.mxu2 %v3156_v50  ;;  %602 = vmatpush.bf16.msrb.mxu3 %v3158_v51 }
  0x48   :  { %190 = vmatmul.f32.gmra.mxu0 %v88_v58  ;;  %231 = vmatmul.f32.gmra.mxu1 %v88_v58 }
  0x49   :  { %272 = vmatmul.f32.gmra.mxu2 %v88_v58  ;;  %313 = vmatmul.f32.gmra.mxu3 %v88_v58 }
  0x4a   :  { %564 = vmatpush.bf16.msrb.mxu0 %v3162_v59  ;;  %577 = vmatpush.bf16.msrb.mxu1 %v3164_v60 }
  0x4b   :  { %590 = vmatpush.bf16.msrb.mxu2 %v3168_v63  ;;  %603 = vmatpush.bf16.msrb.mxu3 %v3170_v0 }
  0x4e   :  { %565 = vmatpush.bf16.msrb.mxu0 %v3174_v7  ;;  %578 = vmatpush.bf16.msrb.mxu1 %v3176_v8 }
  0x4f   :  { %591 = vmatpush.bf16.msrb.mxu2 %v3180_v15  ;;  %604 = vmatpush.bf16.msrb.mxu3 %v3182_v16 }
  0x50   :  { %193 = vmatmul.f32.gmra.mxu0 %v89_v27  ;;  %234 = vmatmul.f32.gmra.mxu1 %v89_v27 }
  0x51   :  { %275 = vmatmul.f32.gmra.mxu2 %v89_v27  ;;  %316 = vmatmul.f32.gmra.mxu3 %v89_v27 }
  0x52   :  { %566 = vmatpush.bf16.msrb.mxu0 %v3186_v28  ;;  %579 = vmatpush.bf16.msrb.mxu1 %v3188_v29 }
  0x53   :  { %592 = vmatpush.bf16.msrb.mxu2 %v3192_v30  ;;  %605 = vmatpush.bf16.msrb.mxu3 %v3194_v31 }
  0x56   :  { %567 = vmatpush.bf16.msrb.mxu0 %v3198_v37  ;;  %580 = vmatpush.bf16.msrb.mxu1 %v3202_v43 }
  0x57   :  { %593 = vmatpush.bf16.msrb.mxu2 %v3204_v44  ;;  %606 = vmatpush.bf16.msrb.mxu3 %v3206_v49 }
  0x58   :  { %196 = vmatmul.f32.gmra.mxu0 %v90_v52  ;;  %237 = vmatmul.f32.gmra.mxu1 %v90_v52 }
  0x59   :  { %278 = vmatmul.f32.gmra.mxu2 %v90_v52  ;;  %319 = vmatmul.f32.gmra.mxu3 %v90_v52 }
  0x5a   :  { %640 = vmatpush.bf16.msra.mxu0 %v3116_v9  ;;  %653 = vmatpush.bf16.msra.mxu1 %v3118_v10 }
  0x5b   :  { %666 = vmatpush.bf16.msra.mxu2 %v3120_v13  ;;  %679 = vmatpush.bf16.msra.mxu3 %v3122_v14 }
  0x5e   :  { %641 = vmatpush.bf16.msra.mxu0 %v3126_v21  ;;  %654 = vmatpush.bf16.msra.mxu1 %v3128_v22 }
  0x5f   :  { %667 = vmatpush.bf16.msra.mxu2 %v3132_v25  ;;  %680 = vmatpush.bf16.msra.mxu3 %v3134_v26 }
  0x60   :  { %199 = vmatmul.f32.gmra.mxu0 %v91_v53  ;;  %240 = vmatmul.f32.gmra.mxu1 %v91_v53 }
  0x61   :  { %281 = vmatmul.f32.gmra.mxu2 %v91_v53  ;;  %322 = vmatmul.f32.gmra.mxu3 %v91_v53  ;;  %v158_v53 = vld [vmem:[#allocation10] sm:$0xf] }
  0x62   :  { %642 = vmatpush.bf16.msra.mxu0 %v3138_v34  ;;  %655 = vmatpush.bf16.msra.mxu1 %v3140_v35 }
  0x63   :  { %668 = vmatpush.bf16.msra.mxu2 %v3144_v38  ;;  %681 = vmatpush.bf16.msra.mxu3 %v3146_v39 }
  0x66   :  { %643 = vmatpush.bf16.msra.mxu0 %v3150_v46  ;;  %656 = vmatpush.bf16.msra.mxu1 %v3152_v47 }
  0x67   :  { %669 = vmatpush.bf16.msra.mxu2 %v3156_v50  ;;  %682 = vmatpush.bf16.msra.mxu3 %v3158_v51 }
  0x68   :  { %202 = vmatmul.f32.gmra.mxu0 %v92_v54  ;;  %243 = vmatmul.f32.gmra.mxu1 %v92_v54 }
  0x69   :  { %284 = vmatmul.f32.gmra.mxu2 %v92_v54  ;;  %325 = vmatmul.f32.gmra.mxu3 %v92_v54 }
  0x6a   :  { %644 = vmatpush.bf16.msra.mxu0 %v3162_v59  ;;  %657 = vmatpush.bf16.msra.mxu1 %v3164_v60 }
  0x6b   :  { %670 = vmatpush.bf16.msra.mxu2 %v3168_v63  ;;  %683 = vmatpush.bf16.msra.mxu3 %v3170_v0 }
  0x6e   :  { %645 = vmatpush.bf16.msra.mxu0 %v3174_v7  ;;  %658 = vmatpush.bf16.msra.mxu1 %v3176_v8 }
  0x6f   :  { %671 = vmatpush.bf16.msra.mxu2 %v3180_v15  ;;  %684 = vmatpush.bf16.msra.mxu3 %v3182_v16 }
  0x70   :  { %205 = vmatmul.f32.gmra.mxu0 %v93_v55  ;;  %246 = vmatmul.f32.gmra.mxu1 %v93_v55 }
  0x71   :  { %287 = vmatmul.f32.gmra.mxu2 %v93_v55  ;;  %328 = vmatmul.f32.gmra.mxu3 %v93_v55 }
  0x72   :  { %646 = vmatpush.bf16.msra.mxu0 %v3186_v28  ;;  %659 = vmatpush.bf16.msra.mxu1 %v3188_v29 }
  0x73   :  { %672 = vmatpush.bf16.msra.mxu2 %v3192_v30  ;;  %685 = vmatpush.bf16.msra.mxu3 %v3194_v31 }
  0x76   :  { %647 = vmatpush.bf16.msra.mxu0 %v3198_v37  ;;  %660 = vmatpush.bf16.msra.mxu1 %v3202_v43 }
  0x77   :  { %673 = vmatpush.bf16.msra.mxu2 %v3204_v44  ;;  %686 = vmatpush.bf16.msra.mxu3 %v3206_v49 }
  0x78   :  { %568 = vmatmul.bf16.vlgmr.msrb.gmra.mxu0 %v4141_v56  ;;  %581 = vmatmul.bf16.vlgmr.msrb.gmra.mxu1 %v4141_v56 }
  0x79   :  { %594 = vmatmul.bf16.vlgmr.msrb.gmra.mxu2 %v4141_v56  ;;  %607 = vmatmul.bf16.vlgmr.msrb.gmra.mxu3 %v4141_v56  ;;  %v3332_v56 = vperm.slane %v158_v53, 0 }
  0x7a   :  { %720 = vmatpush.bf16.msrb.mxu0 %v3116_v9  ;;  %733 = vmatpush.bf16.msrb.mxu1 %v3118_v10 }
  0x7b   :  { %746 = vmatpush.bf16.msrb.mxu2 %v3120_v13  ;;  %759 = vmatpush.bf16.msrb.mxu3 %v3122_v14 }
  0x7e   :  { %721 = vmatpush.bf16.msrb.mxu0 %v3126_v21  ;;  %734 = vmatpush.bf16.msrb.mxu1 %v3128_v22 }
  0x7f   :  { %747 = vmatpush.bf16.msrb.mxu2 %v3132_v25  ;;  %760 = vmatpush.bf16.msrb.mxu3 %v3134_v26 }
  0x82   :  { %722 = vmatpush.bf16.msrb.mxu0 %v3138_v34  ;;  %735 = vmatpush.bf16.msrb.mxu1 %v3140_v35 }
  0x83   :  { %748 = vmatpush.bf16.msrb.mxu2 %v3144_v38  ;;  %761 = vmatpush.bf16.msrb.mxu3 %v3146_v39 }
  0x86   :  { %723 = vmatpush.bf16.msrb.mxu0 %v3150_v46  ;;  %736 = vmatpush.bf16.msrb.mxu1 %v3152_v47 }
  0x87   :  { %749 = vmatpush.bf16.msrb.mxu2 %v3156_v50  ;;  %762 = vmatpush.bf16.msrb.mxu3 %v3158_v51 }
  0x8a   :  { %724 = vmatpush.bf16.msrb.mxu0 %v3162_v59  ;;  %737 = vmatpush.bf16.msrb.mxu1 %v3164_v60 }
  0x8b   :  { %750 = vmatpush.bf16.msrb.mxu2 %v3168_v63  ;;  %763 = vmatpush.bf16.msrb.mxu3 %v3170_v0 }
  0x8e   :  { %725 = vmatpush.bf16.msrb.mxu0 %v3174_v7  ;;  %738 = vmatpush.bf16.msrb.mxu1 %v3176_v8 }
  0x8f   :  { %751 = vmatpush.bf16.msrb.mxu2 %v3180_v15  ;;  %764 = vmatpush.bf16.msrb.mxu3 %v3182_v16 }
  0x92   :  { %726 = vmatpush.bf16.msrb.mxu0 %v3186_v28  ;;  %739 = vmatpush.bf16.msrb.mxu1 %v3188_v29 }
  0x93   :  { %752 = vmatpush.bf16.msrb.mxu2 %v3192_v30  ;;  %765 = vmatpush.bf16.msrb.mxu3 %v3194_v31 }
  0x96   :  { %727 = vmatpush.bf16.msrb.mxu0 %v3198_v37  ;;  %740 = vmatpush.bf16.msrb.mxu1 %v3202_v43 }
  0x97   :  { %753 = vmatpush.bf16.msrb.mxu2 %v3204_v44  ;;  %766 = vmatpush.bf16.msrb.mxu3 %v3206_v49 }
  0xb5   :  { %v185_v57 = vpop.f32.mrf.mxu0  ;;  %v226_v58 = vpop.f32.mrf.mxu1 }
  0xbc   :  { %v267_v61 = vpop.f32.mrf.mxu2  ;;  %v308_v62 = vpop.f32.mrf.mxu3 }
  0xbd   :  { %v3280_v1 = vpop.f32.mrf.mxu0  ;;  %v3282_v2 = vpop.f32.mrf.mxu1 }
  0xc4   :  { %v3284_v3 = vpop.f32.mrf.mxu2  ;;  %v3286_v4 = vpop.f32.mrf.mxu3 }
  0xc5   :  { %v3288_v5 = vpop.f32.mrf.mxu0  ;;  %v3290_v6 = vpop.f32.mrf.mxu1 }
  0xcc   :  { %v3292_v11 = vpop.f32.mrf.mxu2  ;;  %v3294_v12 = vpop.f32.mrf.mxu3 }
  0xcd   :  { %4143 = vst [vmem:[#allocation21_spill] sm:$0xff] %v3292_v11  ;;  %v3296_v17 = vpop.f32.mrf.mxu0  ;;  %v3298_v18 = vpop.f32.mrf.mxu1 }
  0xce   :  { %4144 = vst [vmem:[#allocation22_spill] sm:$0xff] %v3294_v12 }
  0xcf   :  { %4145 = vst [vmem:[#allocation23_spill] sm:$0xff] %v3296_v17 }
  0xd0   :  { %4146 = vst [vmem:[#allocation24_spill] sm:$0xff] %v3298_v18 }
  0xd4   :  { %v3300_v19 = vpop.f32.mrf.mxu2  ;;  %v3302_v20 = vpop.f32.mrf.mxu3 }
  0xd5   :  { %4147 = vst [vmem:[#allocation25_spill] sm:$0xff] %v3300_v19  ;;  %v3304_v23 = vpop.f32.mrf.mxu0  ;;  %v3306_v24 = vpop.f32.mrf.mxu1 }
  0xd6   :  { %4148 = vst [vmem:[#allocation26_spill] sm:$0xff] %v3302_v20 }
  0xd7   :  { %4149 = vst [vmem:[#allocation27_spill] sm:$0xff] %v3304_v23 }
  0xd8   :  { %4150 = vst [vmem:[#allocation28_spill] sm:$0xff] %v3306_v24 }
  0xdc   :  { %v3308_v27 = vpop.f32.mrf.mxu2  ;;  %v3310_v32 = vpop.f32.mrf.mxu3 }
  0xdd   :  { %4151 = vst [vmem:[#allocation29_spill] sm:$0xff] %v3308_v27  ;;  %v3312_v33 = vpop.f32.mrf.mxu0  ;;  %v3314_v36 = vpop.f32.mrf.mxu1  ;;  %v3342_v27 = vperm.slane %v158_v53, 2 }
  0xde   :  { %4152 = vst [vmem:[#allocation30_spill] sm:$0xff] %v3310_v32 }
  0xdf   :  { %4153 = vst [vmem:[#allocation31_spill] sm:$0xff] %v3312_v33  ;;  %v268_v23 = vadd.f32 %v267_v61, %v3342_v27 }
  0xe0   :  { %4154 = vst [vmem:[#allocation32_spill] sm:$0xff] %v3314_v36  ;;  %v3334_v36 = vperm.slane %v158_v53, 1 }
  0xe4   :  { %v3316_v40 = vpop.f32.mrf.mxu2  ;;  %v3318_v41 = vpop.f32.mrf.mxu3 }
  0xe5   :  { %4155 = vst [vmem:[#allocation33_spill] sm:$0xff] %v3316_v40  ;;  %v3320_v42 = vpop.f32.mrf.mxu0  ;;  %v3322_v45 = vpop.f32.mrf.mxu1  ;;  %v186_v40 = vadd.f32 %v185_v57, %v3332_v56 }
  0xe6   :  { %4156 = vst [vmem:[#allocation34_spill] sm:$0xff] %v3318_v41  ;;  %v227_v41 = vadd.f32 %v226_v58, %v3334_v36 }
  0xe7   :  { %4157 = vst [vmem:[#allocation35_spill] sm:$0xff] %v3320_v42 }
  0xe8   :  { %4158 = vst [vmem:[#allocation36_spill] sm:$0xff] %v3322_v45 }
  0xec   :  { %v3324_v48 = vpop.f32.mrf.mxu2  ;;  %v3326_v52 = vpop.f32.mrf.mxu3 }
  0xed   :  { %4159 = vst [vmem:[#allocation37_spill] sm:$0xff] %v3324_v48  ;;  %v3328_v54 = vpop.f32.mrf.mxu0  ;;  %v3330_v55 = vpop.f32.mrf.mxu1 }
  0xee   :  { %4160 = vst [vmem:[#allocation38_spill] sm:$0xff] %v3326_v52 }
  0xef   :  { %4161 = vst [vmem:[#allocation39_spill] sm:$0xff] %v3328_v54  ;;  %v3344_v54 = vperm.slane %v158_v53, 3 }
  0xf0   :  { %4162 = vst [vmem:[#allocation40_spill] sm:$0xff] %v3330_v55 }
  0xf1   :  { %v309_v57 = vadd.f32 %v308_v62, %v3344_v54 }
  0xf4   :  { %v3338_v42 = vpop.f32.mrf.mxu2  ;;  %v3340_v45 = vpop.f32.mrf.mxu3 }
  0xf5   :  { %4163 = vst [vmem:[#allocation41_spill] sm:$0xff] %v3338_v42  ;;  %v569_v48 = vpop.f32.mrf.mxu0  ;;  %v582_v33 = vpop.f32.mrf.mxu1 }
  0xf6   :  { %4164 = vst [vmem:[#allocation42_spill] sm:$0xff] %v3340_v45  ;;  %v612_v52 = vadd.f32 %v569_v48, %v186_v40  ;;  %v613_v32 = vadd.f32 %v582_v33, %v227_v41 }
  0xf8   :  { %v616_v55 = vmul.f32 0.5, %v612_v52  ;;  %v620_v24 = vmul.f32 0.5, %v613_v32 }
  0xfa   :  { %2712 = vtanh.f32 %v616_v55 }
  0xfb   :  { %2714 = vtanh.f32 %v620_v24 }
  0xfc   :  { %v595_v58 = vpop.f32.mrf.mxu2  ;;  %v608_v42 = vpop.f32.mrf.mxu3 }
  0xfd   :  { %v614_v20 = vadd.f32 %v595_v58, %v268_v23  ;;  %v615_v45 = vadd.f32 %v608_v42, %v309_v57  ;;  %v571_v19 = vpop.f32.mrf.mxu0  ;;  %v584_v18 = vpop.f32.mrf.mxu1 }
  0xff   :  { %2716 = vtanh.f32 %v614_v20  ;;  %v625_v33 = vmul.f32 0.5, %v615_v45 }
 0x100   :  { %v2713_v40 = vpop.eup %2712 }
 0x101   :  { %v2715_v41 = vpop.eup %2714  ;;  %v618_v48 = vadd.f32 1.0, %v2713_v40  ;;  %2718 = vtanh.f32 %v625_v33 }
 0x102   :  { %v622_v53 = vadd.f32 1.0, %v2715_v41 }
 0x103   :  { %v619_v32 = vmul.f32 0.5, %v618_v48  ;;  %v271_v48 = vadd.f32 %v3284_v3, %v3342_v27 }
 0x104   :  { %v623_v52 = vmul.f32 0.5, %v622_v53  ;;  %v597_v55 = vpop.f32.mrf.mxu2  ;;  %v610_v61 = vpop.f32.mrf.mxu3  ;;  %v312_v53 = vadd.f32 %v3286_v4, %v3344_v54 }
 0x105   :  { %v2717_v17 = vpop.eup %2716 }
 0x106   :  { %v629_v62 = vmul.f32 0.0, %v623_v52  ;;  %v630_v24 = vmul.f32 %v2717_v17, %v619_v32  ;;  %v230_v17 = vadd.f32 %v3282_v2, %v3334_v36 }
 0x107   :  { %v2719_v12 = vpop.eup %2718 }
 0x108   :  { %v3348_v11 = vadd.f32 %v630_v24, %v629_v62  ;;  %v627_v18 = vadd.f32 1.0, %v2719_v12  ;;  %v189_v12 = vadd.f32 %v3280_v1, %v3332_v56 }
 0x10a   :  { %2720 = vtanh.f32 %v3348_v11  ;;  %v628_v19 = vmul.f32 0.5, %v627_v18 }
 0x110   :  { %v2721_v20 = vpop.eup %2720 }
 0x111   :  { %v3351_v23 = vmul.f32 %v2721_v20, %v628_v19 }
 0x113   :  { %v639_v42 = vpack.c.bf16 %v3351_v23, %v3351_v23 }
 0x115   :  { %648 = vmatmul.bf16.vlgmr.msra.gmra.mxu0 %v639_v42  ;;  %661 = vmatmul.bf16.vlgmr.msra.gmra.mxu1 %v639_v42 }
 0x116   :  { %674 = vmatmul.bf16.vlgmr.msra.gmra.mxu2 %v639_v42  ;;  %687 = vmatmul.bf16.vlgmr.msra.gmra.mxu3 %v639_v42 }
 0x117   :  { %800 = vmatpush.bf16.msra.mxu0 %v3116_v9  ;;  %813 = vmatpush.bf16.msra.mxu1 %v3118_v10 }
 0x118   :  { %826 = vmatpush.bf16.msra.mxu2 %v3120_v13  ;;  %839 = vmatpush.bf16.msra.mxu3 %v3122_v14 }
 0x11b   :  { %801 = vmatpush.bf16.msra.mxu0 %v3126_v21  ;;  %814 = vmatpush.bf16.msra.mxu1 %v3128_v22 }
 0x11c   :  { %827 = vmatpush.bf16.msra.mxu2 %v3132_v25  ;;  %840 = vmatpush.bf16.msra.mxu3 %v3134_v26 }
 0x11f   :  { %802 = vmatpush.bf16.msra.mxu0 %v3138_v34  ;;  %815 = vmatpush.bf16.msra.mxu1 %v3140_v35 }
 0x120   :  { %828 = vmatpush.bf16.msra.mxu2 %v3144_v38  ;;  %841 = vmatpush.bf16.msra.mxu3 %v3146_v39 }
 0x123   :  { %803 = vmatpush.bf16.msra.mxu0 %v3150_v46  ;;  %816 = vmatpush.bf16.msra.mxu1 %v3152_v47 }
 0x124   :  { %829 = vmatpush.bf16.msra.mxu2 %v3156_v50  ;;  %842 = vmatpush.bf16.msra.mxu3 %v3158_v51 }
 0x127   :  { %804 = vmatpush.bf16.msra.mxu0 %v3162_v59  ;;  %817 = vmatpush.bf16.msra.mxu1 %v3164_v60 }
 0x128   :  { %830 = vmatpush.bf16.msra.mxu2 %v3168_v63  ;;  %843 = vmatpush.bf16.msra.mxu3 %v3170_v0 }
 0x12b   :  { %805 = vmatpush.bf16.msra.mxu0 %v3174_v7  ;;  %818 = vmatpush.bf16.msra.mxu1 %v3176_v8 }
 0x12c   :  { %831 = vmatpush.bf16.msra.mxu2 %v3180_v15  ;;  %844 = vmatpush.bf16.msra.mxu3 %v3182_v16 }
 0x12f   :  { %806 = vmatpush.bf16.msra.mxu0 %v3186_v28  ;;  %819 = vmatpush.bf16.msra.mxu1 %v3188_v29 }
 0x130   :  { %832 = vmatpush.bf16.msra.mxu2 %v3192_v30  ;;  %845 = vmatpush.bf16.msra.mxu3 %v3194_v31 }
 0x133   :  { %807 = vmatpush.bf16.msra.mxu0 %v3198_v37  ;;  %820 = vmatpush.bf16.msra.mxu1 %v3202_v43 }
 0x134   :  { %833 = vmatpush.bf16.msra.mxu2 %v3204_v44  ;;  %846 = vmatpush.bf16.msra.mxu3 %v3206_v49 }
 0x192   :  { %v649_v45 = vpop.f32.mrf.mxu0  ;;  %v662_v57 = vpop.f32.mrf.mxu1 }
 0x193   :  { %v692_v58 = vadd.f32 %v649_v45, %v189_v12  ;;  %v693_v33 = vadd.f32 %v662_v57, %v230_v17 }
 0x195   :  { %v696_v40 = vmul.f32 0.5, %v692_v58  ;;  %v700_v41 = vmul.f32 0.5, %v693_v33 }
 0x197   :  { %2722 = vtanh.f32 %v696_v40 }
 0x198   :  { %2724 = vtanh.f32 %v700_v41 }
 0x199   :  { %v675_v32 = vpop.f32.mrf.mxu2  ;;  %v688_v52 = vpop.f32.mrf.mxu3 }
 0x19a   :  { %v694_v1 = vadd.f32 %v675_v32, %v271_v48  ;;  %v695_v55 = vadd.f32 %v688_v52, %v312_v53  ;;  %v651_v61 = vpop.f32.mrf.mxu0  ;;  %v664_v2 = vpop.f32.mrf.mxu1  ;;  %v233_v52 = vadd.f32 %v3290_v6, %v3334_v36 }
 0x19c   :  { %2726 = vtanh.f32 %v694_v1  ;;  %v705_v62 = vmul.f32 0.5, %v695_v55 }
 0x19d   :  { %v2723_v24 = vpop.eup %2722 }
 0x19e   :  { %v2725_v18 = vpop.eup %2724  ;;  %v698_v19 = vadd.f32 1.0, %v2723_v24  ;;  %2728 = vtanh.f32 %v705_v62 }
 0x19f   :  { %v702_v20 = vadd.f32 1.0, %v2725_v18  ;;  %v4165_v18 = vld [vmem:[#allocation21_spill] sm:$0xff] }
 0x1a0   :  { %v699_v42 = vmul.f32 0.5, %v698_v19  ;;  %v274_v19 = vadd.f32 %v4165_v18, %v3342_v27 }
 0x1a1   :  { %v703_v12 = vmul.f32 0.5, %v702_v20  ;;  %v677_v3 = vpop.f32.mrf.mxu2  ;;  %v690_v17 = vpop.f32.mrf.mxu3  ;;  %v4166_v20 = vld [vmem:[#allocation22_spill] sm:$0xff] }
 0x1a2   :  { %v2727_v45 = vpop.eup %2726 }
 0x1a3   :  { %v709_v4 = vmul.f32 %v703_v12, %v3348_v11  ;;  %v710_v57 = vmul.f32 %v2727_v45, %v699_v42  ;;  %v192_v11 = vadd.f32 %v3288_v5, %v3332_v56  ;;  %v315_v42 = vadd.f32 %v4166_v20, %v3344_v54 }
 0x1a4   :  { %v2729_v58 = vpop.eup %2728 }
 0x1a5   :  { %v3396_v33 = vadd.f32 %v710_v57, %v709_v4  ;;  %v707_v40 = vadd.f32 1.0, %v2729_v58 }
 0x1a7   :  { %2730 = vtanh.f32 %v3396_v33  ;;  %v708_v41 = vmul.f32 0.5, %v707_v40 }
 0x1ad   :  { %v2731_v48 = vpop.eup %2730 }
 0x1ae   :  { %v3399_v53 = vmul.f32 %v2731_v48, %v708_v41 }
 0x1b0   :  { %v719_v32 = vpack.c.bf16 %v3399_v53, %v3399_v53 }
 0x1b2   :  { %728 = vmatmul.bf16.vlgmr.msrb.gmra.mxu0 %v719_v32  ;;  %741 = vmatmul.bf16.vlgmr.msrb.gmra.mxu1 %v719_v32 }
 0x1b3   :  { %754 = vmatmul.bf16.vlgmr.msrb.gmra.mxu2 %v719_v32  ;;  %767 = vmatmul.bf16.vlgmr.msrb.gmra.mxu3 %v719_v32 }
 0x1b4   :  { %880 = vmatpush.bf16.msrb.mxu0 %v3116_v9  ;;  %893 = vmatpush.bf16.msrb.mxu1 %v3118_v10 }
 0x1b5   :  { %906 = vmatpush.bf16.msrb.mxu2 %v3120_v13  ;;  %919 = vmatpush.bf16.msrb.mxu3 %v3122_v14 }
 0x1b8   :  { %881 = vmatpush.bf16.msrb.mxu0 %v3126_v21  ;;  %894 = vmatpush.bf16.msrb.mxu1 %v3128_v22 }
 0x1b9   :  { %907 = vmatpush.bf16.msrb.mxu2 %v3132_v25  ;;  %920 = vmatpush.bf16.msrb.mxu3 %v3134_v26 }
 0x1bc   :  { %882 = vmatpush.bf16.msrb.mxu0 %v3138_v34  ;;  %895 = vmatpush.bf16.msrb.mxu1 %v3140_v35 }
 0x1bd   :  { %908 = vmatpush.bf16.msrb.mxu2 %v3144_v38  ;;  %921 = vmatpush.bf16.msrb.mxu3 %v3146_v39 }
 0x1c0   :  { %883 = vmatpush.bf16.msrb.mxu0 %v3150_v46  ;;  %896 = vmatpush.bf16.msrb.mxu1 %v3152_v47 }
 0x1c1   :  { %909 = vmatpush.bf16.msrb.mxu2 %v3156_v50  ;;  %922 = vmatpush.bf16.msrb.mxu3 %v3158_v51 }
 0x1c4   :  { %884 = vmatpush.bf16.msrb.mxu0 %v3162_v59  ;;  %897 = vmatpush.bf16.msrb.mxu1 %v3164_v60 }
 0x1c5   :  { %910 = vmatpush.bf16.msrb.mxu2 %v3168_v63  ;;  %923 = vmatpush.bf16.msrb.mxu3 %v3170_v0 }
 0x1c8   :  { %885 = vmatpush.bf16.msrb.mxu0 %v3174_v7  ;;  %898 = vmatpush.bf16.msrb.mxu1 %v3176_v8 }
 0x1c9   :  { %911 = vmatpush.bf16.msrb.mxu2 %v3180_v15  ;;  %924 = vmatpush.bf16.msrb.mxu3 %v3182_v16 }
 0x1cc   :  { %886 = vmatpush.bf16.msrb.mxu0 %v3186_v28  ;;  %899 = vmatpush.bf16.msrb.mxu1 %v3188_v29 }
 0x1cd   :  { %912 = vmatpush.bf16.msrb.mxu2 %v3192_v30  ;;  %925 = vmatpush.bf16.msrb.mxu3 %v3194_v31 }
 0x1d0   :  { %887 = vmatpush.bf16.msrb.mxu0 %v3198_v37  ;;  %900 = vmatpush.bf16.msrb.mxu1 %v3202_v43 }
 0x1d1   :  { %913 = vmatpush.bf16.msrb.mxu2 %v3204_v44  ;;  %926 = vmatpush.bf16.msrb.mxu3 %v3206_v49 }
 0x22f   :  { %v729_v1 = vpop.f32.mrf.mxu0  ;;  %v742_v55 = vpop.f32.mrf.mxu1 }
 0x230   :  { %v772_v61 = vadd.f32 %v729_v1, %v192_v11  ;;  %v773_v2 = vadd.f32 %v742_v55, %v233_v52 }
 0x232   :  { %v776_v62 = vmul.f32 0.5, %v772_v61  ;;  %v780_v24 = vmul.f32 0.5, %v773_v2 }
 0x234   :  { %2732 = vtanh.f32 %v776_v62 }
 0x235   :  { %2734 = vtanh.f32 %v780_v24 }
 0x236   :  { %v755_v12 = vpop.f32.mrf.mxu2  ;;  %v768_v3 = vpop.f32.mrf.mxu3 }
 0x237   :  { %v774_v5 = vadd.f32 %v755_v12, %v274_v19  ;;  %v775_v17 = vadd.f32 %v768_v3, %v315_v42  ;;  %v731_v45 = vpop.f32.mrf.mxu0  ;;  %v744_v6 = vpop.f32.mrf.mxu1  ;;  %v4168_v3 = vld [vmem:[#allocation24_spill] sm:$0xff] }
 0x239   :  { %2736 = vtanh.f32 %v774_v5  ;;  %v785_v4 = vmul.f32 0.5, %v775_v17  ;;  %v236_v5 = vadd.f32 %v4168_v3, %v3334_v36 }
 0x23a   :  { %v2733_v57 = vpop.eup %2732 }
 0x23b   :  { %v2735_v58 = vpop.eup %2734  ;;  %v778_v40 = vadd.f32 1.0, %v2733_v57  ;;  %2738 = vtanh.f32 %v785_v4 }
 0x23c   :  { %v782_v41 = vadd.f32 1.0, %v2735_v58 }
 0x23d   :  { %v779_v48 = vmul.f32 0.5, %v778_v40  ;;  %v4169_v40 = vld [vmem:[#allocation25_spill] sm:$0xff] }
 0x23e   :  { %v783_v32 = vmul.f32 0.5, %v782_v41  ;;  %v757_v11 = vpop.f32.mrf.mxu2  ;;  %v770_v52 = vpop.f32.mrf.mxu3  ;;  %v277_v41 = vadd.f32 %v4169_v40, %v3342_v27 }
 0x23f   :  { %v2737_v1 = vpop.eup %2736 }
 0x240   :  { %v789_v55 = vmul.f32 %v783_v32, %v3396_v33  ;;  %v790_v61 = vmul.f32 %v2737_v1, %v779_v48  ;;  %v4167_v33 = vld [vmem:[#allocation23_spill] sm:$0xff]  ;;  %v4170_v48 = vld [vmem:[#allocation26_spill] sm:$0xff] }
 0x241   :  { %v2739_v2 = vpop.eup %2738  ;;  %v195_v12 = vadd.f32 %v4167_v33, %v3332_v56  ;;  %v318_v32 = vadd.f32 %v4170_v48, %v3344_v54 }
 0x242   :  { %v3444_v62 = vadd.f32 %v790_v61, %v789_v55  ;;  %v787_v24 = vadd.f32 1.0, %v2739_v2 }
 0x244   :  { %2740 = vtanh.f32 %v3444_v62  ;;  %v788_v18 = vmul.f32 0.5, %v787_v24 }
 0x24a   :  { %v2741_v19 = vpop.eup %2740 }
 0x24b   :  { %v3447_v20 = vmul.f32 %v2741_v19, %v788_v18 }
 0x24d   :  { %v799_v42 = vpack.c.bf16 %v3447_v20, %v3447_v20 }
 0x24f   :  { %808 = vmatmul.bf16.vlgmr.msra.gmra.mxu0 %v799_v42  ;;  %821 = vmatmul.bf16.vlgmr.msra.gmra.mxu1 %v799_v42 }
 0x250   :  { %834 = vmatmul.bf16.vlgmr.msra.gmra.mxu2 %v799_v42  ;;  %847 = vmatmul.bf16.vlgmr.msra.gmra.mxu3 %v799_v42 }
 0x251   :  { %960 = vmatpush.bf16.msra.mxu0 %v3116_v9  ;;  %973 = vmatpush.bf16.msra.mxu1 %v3118_v10 }
 0x252   :  { %986 = vmatpush.bf16.msra.mxu2 %v3120_v13  ;;  %999 = vmatpush.bf16.msra.mxu3 %v3122_v14 }
 0x255   :  { %961 = vmatpush.bf16.msra.mxu0 %v3126_v21  ;;  %974 = vmatpush.bf16.msra.mxu1 %v3128_v22 }
 0x256   :  { %987 = vmatpush.bf16.msra.mxu2 %v3132_v25  ;;  %1000 = vmatpush.bf16.msra.mxu3 %v3134_v26 }
 0x259   :  { %962 = vmatpush.bf16.msra.mxu0 %v3138_v34  ;;  %975 = vmatpush.bf16.msra.mxu1 %v3140_v35 }
 0x25a   :  { %988 = vmatpush.bf16.msra.mxu2 %v3144_v38  ;;  %1001 = vmatpush.bf16.msra.mxu3 %v3146_v39 }
 0x25d   :  { %963 = vmatpush.bf16.msra.mxu0 %v3150_v46  ;;  %976 = vmatpush.bf16.msra.mxu1 %v3152_v47 }
 0x25e   :  { %989 = vmatpush.bf16.msra.mxu2 %v3156_v50  ;;  %1002 = vmatpush.bf16.msra.mxu3 %v3158_v51 }
 0x261   :  { %964 = vmatpush.bf16.msra.mxu0 %v3162_v59  ;;  %977 = vmatpush.bf16.msra.mxu1 %v3164_v60 }
 0x262   :  { %990 = vmatpush.bf16.msra.mxu2 %v3168_v63  ;;  %1003 = vmatpush.bf16.msra.mxu3 %v3170_v0 }
 0x265   :  { %965 = vmatpush.bf16.msra.mxu0 %v3174_v7  ;;  %978 = vmatpush.bf16.msra.mxu1 %v3176_v8 }
 0x266   :  { %991 = vmatpush.bf16.msra.mxu2 %v3180_v15  ;;  %1004 = vmatpush.bf16.msra.mxu3 %v3182_v16 }
 0x269   :  { %966 = vmatpush.bf16.msra.mxu0 %v3186_v28  ;;  %979 = vmatpush.bf16.msra.mxu1 %v3188_v29 }
 0x26a   :  { %992 = vmatpush.bf16.msra.mxu2 %v3192_v30  ;;  %1005 = vmatpush.bf16.msra.mxu3 %v3194_v31 }
 0x26d   :  { %967 = vmatpush.bf16.msra.mxu0 %v3198_v37  ;;  %980 = vmatpush.bf16.msra.mxu1 %v3202_v43 }
 0x26e   :  { %993 = vmatpush.bf16.msra.mxu2 %v3204_v44  ;;  %1006 = vmatpush.bf16.msra.mxu3 %v3206_v49 }
 0x2cc   :  { %v809_v17 = vpop.f32.mrf.mxu0  ;;  %v822_v45 = vpop.f32.mrf.mxu1 }
 0x2cd   :  { %v852_v6 = vadd.f32 %v809_v17, %v195_v12  ;;  %v853_v4 = vadd.f32 %v822_v45, %v236_v5 }
 0x2cf   :  { %v856_v57 = vmul.f32 0.5, %v852_v6  ;;  %v860_v58 = vmul.f32 0.5, %v853_v4 }
 0x2d1   :  { %2742 = vtanh.f32 %v856_v57 }
 0x2d2   :  { %2744 = vtanh.f32 %v860_v58 }
 0x2d3   :  { %v835_v11 = vpop.f32.mrf.mxu2  ;;  %v848_v52 = vpop.f32.mrf.mxu3 }
 0x2d4   :  { %v854_v1 = vadd.f32 %v835_v11, %v277_v41  ;;  %v855_v55 = vadd.f32 %v848_v52, %v318_v32  ;;  %v811_v61 = vpop.f32.mrf.mxu0  ;;  %v824_v2 = vpop.f32.mrf.mxu1 }
 0x2d6   :  { %2746 = vtanh.f32 %v854_v1  ;;  %v865_v24 = vmul.f32 0.5, %v855_v55  ;;  %v4172_v1 = vld [vmem:[#allocation28_spill] sm:$0xff] }
 0x2d7   :  { %v2743_v18 = vpop.eup %2742  ;;  %v239_v55 = vadd.f32 %v4172_v1, %v3334_v36 }
 0x2d8   :  { %v2745_v19 = vpop.eup %2744  ;;  %v858_v42 = vadd.f32 1.0, %v2743_v18  ;;  %2748 = vtanh.f32 %v865_v24 }
 0x2d9   :  { %v862_v33 = vadd.f32 1.0, %v2745_v19 }
 0x2da   :  { %v859_v12 = vmul.f32 0.5, %v858_v42 }
 0x2db   :  { %v863_v3 = vmul.f32 0.5, %v862_v33  ;;  %v837_v5 = vpop.f32.mrf.mxu2  ;;  %v850_v17 = vpop.f32.mrf.mxu3  ;;  %v4173_v33 = vld [vmem:[#allocation29_spill] sm:$0xff] }
 0x2dc   :  { %v2747_v45 = vpop.eup %2746 }
 0x2dd   :  { %v869_v6 = vmul.f32 %v863_v3, %v3444_v62  ;;  %v870_v4 = vmul.f32 %v2747_v45, %v859_v12  ;;  %v4171_v62 = vld [vmem:[#allocation27_spill] sm:$0xff]  ;;  %v280_v12 = vadd.f32 %v4173_v33, %v3342_v27  ;;  %v4174_v3 = vld [vmem:[#allocation30_spill] sm:$0xff] }
 0x2de   :  { %v2749_v57 = vpop.eup %2748  ;;  %v198_v52 = vadd.f32 %v4171_v62, %v3332_v56  ;;  %v321_v5 = vadd.f32 %v4174_v3, %v3344_v54 }
 0x2df   :  { %v3492_v58 = vadd.f32 %v870_v4, %v869_v6  ;;  %v867_v40 = vadd.f32 1.0, %v2749_v57 }
 0x2e1   :  { %2750 = vtanh.f32 %v3492_v58  ;;  %v868_v41 = vmul.f32 0.5, %v867_v40 }
 0x2e7   :  { %v2751_v48 = vpop.eup %2750 }
 0x2e8   :  { %v3495_v32 = vmul.f32 %v2751_v48, %v868_v41 }
 0x2ea   :  { %v879_v11 = vpack.c.bf16 %v3495_v32, %v3495_v32 }
 0x2ec   :  { %888 = vmatmul.bf16.vlgmr.msrb.gmra.mxu0 %v879_v11  ;;  %901 = vmatmul.bf16.vlgmr.msrb.gmra.mxu1 %v879_v11 }
 0x2ed   :  { %914 = vmatmul.bf16.vlgmr.msrb.gmra.mxu2 %v879_v11  ;;  %927 = vmatmul.bf16.vlgmr.msrb.gmra.mxu3 %v879_v11 }
 0x2ee   :  { %1040 = vmatpush.bf16.msrb.mxu0 %v3116_v9  ;;  %1053 = vmatpush.bf16.msrb.mxu1 %v3118_v10 }
 0x2ef   :  { %1066 = vmatpush.bf16.msrb.mxu2 %v3120_v13  ;;  %1079 = vmatpush.bf16.msrb.mxu3 %v3122_v14 }
 0x2f2   :  { %1041 = vmatpush.bf16.msrb.mxu0 %v3126_v21  ;;  %1054 = vmatpush.bf16.msrb.mxu1 %v3128_v22 }
 0x2f3   :  { %1067 = vmatpush.bf16.msrb.mxu2 %v3132_v25  ;;  %1080 = vmatpush.bf16.msrb.mxu3 %v3134_v26 }
 0x2f6   :  { %1042 = vmatpush.bf16.msrb.mxu0 %v3138_v34  ;;  %1055 = vmatpush.bf16.msrb.mxu1 %v3140_v35 }
 0x2f7   :  { %1068 = vmatpush.bf16.msrb.mxu2 %v3144_v38  ;;  %1081 = vmatpush.bf16.msrb.mxu3 %v3146_v39 }
 0x2fa   :  { %1043 = vmatpush.bf16.msrb.mxu0 %v3150_v46  ;;  %1056 = vmatpush.bf16.msrb.mxu1 %v3152_v47 }
 0x2fb   :  { %1069 = vmatpush.bf16.msrb.mxu2 %v3156_v50  ;;  %1082 = vmatpush.bf16.msrb.mxu3 %v3158_v51 }
 0x2fe   :  { %1044 = vmatpush.bf16.msrb.mxu0 %v3162_v59  ;;  %1057 = vmatpush.bf16.msrb.mxu1 %v3164_v60 }
 0x2ff   :  { %1070 = vmatpush.bf16.msrb.mxu2 %v3168_v63  ;;  %1083 = vmatpush.bf16.msrb.mxu3 %v3170_v0 }
 0x302   :  { %1045 = vmatpush.bf16.msrb.mxu0 %v3174_v7  ;;  %1058 = vmatpush.bf16.msrb.mxu1 %v3176_v8 }
 0x303   :  { %1071 = vmatpush.bf16.msrb.mxu2 %v3180_v15  ;;  %1084 = vmatpush.bf16.msrb.mxu3 %v3182_v16 }
 0x306   :  { %1046 = vmatpush.bf16.msrb.mxu0 %v3186_v28  ;;  %1059 = vmatpush.bf16.msrb.mxu1 %v3188_v29 }
 0x307   :  { %1072 = vmatpush.bf16.msrb.mxu2 %v3192_v30  ;;  %1085 = vmatpush.bf16.msrb.mxu3 %v3194_v31 }
 0x30a   :  { %1047 = vmatpush.bf16.msrb.mxu0 %v3198_v37  ;;  %1060 = vmatpush.bf16.msrb.mxu1 %v3202_v43 }
 0x30b   :  { %1073 = vmatpush.bf16.msrb.mxu2 %v3204_v44  ;;  %1086 = vmatpush.bf16.msrb.mxu3 %v3206_v49 }
 0x369   :  { %v889_v61 = vpop.f32.mrf.mxu0  ;;  %v902_v2 = vpop.f32.mrf.mxu1 }
 0x36a   :  { %v932_v24 = vadd.f32 %v889_v61, %v198_v52  ;;  %v933_v18 = vadd.f32 %v902_v2, %v239_v55 }
 0x36c   :  { %v936_v19 = vmul.f32 0.5, %v932_v24  ;;  %v940_v42 = vmul.f32 0.5, %v933_v18 }
 0x36e   :  { %2752 = vtanh.f32 %v936_v19 }
 0x36f   :  { %2754 = vtanh.f32 %v940_v42 }
 0x370   :  { %v915_v17 = vpop.f32.mrf.mxu2  ;;  %v928_v45 = vpop.f32.mrf.mxu3 }
 0x371   :  { %v934_v6 = vadd.f32 %v915_v17, %v280_v12  ;;  %v935_v4 = vadd.f32 %v928_v45, %v321_v5  ;;  %v891_v57 = vpop.f32.mrf.mxu0  ;;  %v904_v40 = vpop.f32.mrf.mxu1 }
 0x373   :  { %2756 = vtanh.f32 %v934_v6  ;;  %v945_v41 = vmul.f32 0.5, %v935_v4 }
 0x374   :  { %v2753_v48 = vpop.eup %2752 }
 0x375   :  { %v2755_v11 = vpop.eup %2754  ;;  %v938_v62 = vadd.f32 1.0, %v2753_v48  ;;  %2758 = vtanh.f32 %v945_v41 }
 0x376   :  { %v942_v52 = vadd.f32 1.0, %v2755_v11  ;;  %v1266_v11 = vld [vmem:[#allocation7 + $0x3e0] sm:$0xff] }
 0x377   :  { %v939_v1 = vmul.f32 0.5, %v938_v62  ;;  %v1267_v62 = vld [vmem:[#allocation7 + $0x3e8] sm:$0xff] }
 0x378   :  { %v943_v55 = vmul.f32 0.5, %v942_v52  ;;  %v917_v61 = vpop.f32.mrf.mxu2  ;;  %v930_v2 = vpop.f32.mrf.mxu3  ;;  %v1268_v52 = vld [vmem:[#allocation7 + $0x3f0] sm:$0xff] }
 0x379   :  { %v2757_v24 = vpop.eup %2756  ;;  %v1263_v61 = vld [vmem:[#allocation7 + $0x3c8] sm:$0xff]  ;;  %v1264_v2 = vld [vmem:[#allocation7 + $0x3d0] sm:$0xff] }
 0x37a   :  { %v949_v18 = vmul.f32 %v943_v55, %v3492_v58  ;;  %v950_v19 = vmul.f32 %v2757_v24, %v939_v1  ;;  %v1269_v1 = vld [vmem:[#allocation7 + $0x3f8] sm:$0xff]  ;;  %v1262_v55 = vld [vmem:[#allocation7 + $0x3c0] sm:$0xff] }
 0x37b   :  { %v2759_v42 = vpop.eup %2758  ;;  %v1265_v24 = vld [vmem:[#allocation7 + $0x3d8] sm:$0xff] }
 0x37c   :  { %v3540_v33 = vadd.f32 %v950_v19, %v949_v18  ;;  %v947_v12 = vadd.f32 1.0, %v2759_v42  ;;  %v1258_v18 = vld [vmem:[#allocation7 + $0x3a0] sm:$0xff]  ;;  %v1259_v19 = vld [vmem:[#allocation7 + $0x3a8] sm:$0xff]  ;;  %v1260_v42 = vld [vmem:[#allocation7 + $0x3b0] sm:$0xff] }
 0x37e   :  { %2760 = vtanh.f32 %v3540_v33  ;;  %v948_v3 = vmul.f32 0.5, %v947_v12  ;;  %v1254_v12 = vld [vmem:[#allocation7 + $0x380] sm:$0xff] }
 0x384   :  { %v2761_v5 = vpop.eup %2760 }
 0x385   :  { %v3543_v17 = vmul.f32 %v2761_v5, %v948_v3  ;;  %v1255_v3 = vld [vmem:[#allocation7 + $0x388] sm:$0xff]  ;;  %v1256_v5 = vld [vmem:[#allocation7 + $0x390] sm:$0xff] }
 0x387   :  { %v959_v45 = vpack.c.bf16 %v3543_v17, %v3543_v17 }
 0x389   :  { %968 = vmatmul.bf16.vlgmr.msra.gmra.mxu0 %v959_v45  ;;  %981 = vmatmul.bf16.vlgmr.msra.gmra.mxu1 %v959_v45 }
 0x38a   :  { %994 = vmatmul.bf16.vlgmr.msra.gmra.mxu2 %v959_v45  ;;  %1007 = vmatmul.bf16.vlgmr.msra.gmra.mxu3 %v959_v45  ;;  %v1257_v45 = vld [vmem:[#allocation7 + $0x398] sm:$0xff] }
 0x38b   :  { %1120 = vmatpush.bf16.msra.mxu0 %v3116_v9  ;;  %1133 = vmatpush.bf16.msra.mxu1 %v3118_v10  ;;  %v4175_v9 = vld [vmem:[#allocation31_spill] sm:$0xff] }
 0x38c   :  { %1146 = vmatpush.bf16.msra.mxu2 %v3120_v13  ;;  %1159 = vmatpush.bf16.msra.mxu3 %v3122_v14  ;;  %v201_v10 = vadd.f32 %v4175_v9, %v3332_v56  ;;  %v4176_v13 = vld [vmem:[#allocation32_spill] sm:$0xff] }
 0x38d   :  { %v242_v14 = vadd.f32 %v4176_v13, %v3334_v36  ;;  %v1250_v9 = vld [vmem:[#allocation7 + $0x360] sm:$0xff]  ;;  %v1252_v13 = vld [vmem:[#allocation7 + $0x370] sm:$0xff] }
 0x38f   :  { %1121 = vmatpush.bf16.msra.mxu0 %v3126_v21  ;;  %1134 = vmatpush.bf16.msra.mxu1 %v3128_v22 }
 0x390   :  { %1147 = vmatpush.bf16.msra.mxu2 %v3132_v25  ;;  %1160 = vmatpush.bf16.msra.mxu3 %v3134_v26 }
 0x393   :  { %1122 = vmatpush.bf16.msra.mxu0 %v3138_v34  ;;  %1135 = vmatpush.bf16.msra.mxu1 %v3140_v35 }
 0x394   :  { %1148 = vmatpush.bf16.msra.mxu2 %v3144_v38  ;;  %1161 = vmatpush.bf16.msra.mxu3 %v3146_v39  ;;  %v4177_v38 = vld [vmem:[#allocation33_spill] sm:$0xff] }
 0x395   :  { %v283_v39 = vadd.f32 %v4177_v38, %v3342_v27  ;;  %v1244_v38 = vld [vmem:[#allocation7 + $0x330] sm:$0xff] }
 0x397   :  { %1123 = vmatpush.bf16.msra.mxu0 %v3150_v46  ;;  %1136 = vmatpush.bf16.msra.mxu1 %v3152_v47  ;;  %v4178_v46 = vld [vmem:[#allocation34_spill] sm:$0xff] }
 0x398   :  { %1149 = vmatpush.bf16.msra.mxu2 %v3156_v50  ;;  %1162 = vmatpush.bf16.msra.mxu3 %v3158_v51  ;;  %v324_v47 = vadd.f32 %v4178_v46, %v3344_v54  ;;  %v1238_v46 = vld [vmem:[#allocation7 + $0x300] sm:$0xff] }
 0x39b   :  { %1124 = vmatpush.bf16.msra.mxu0 %v3162_v59  ;;  %1137 = vmatpush.bf16.msra.mxu1 %v3164_v60 }
 0x39c   :  { %1150 = vmatpush.bf16.msra.mxu2 %v3168_v63  ;;  %1163 = vmatpush.bf16.msra.mxu3 %v3170_v0 }
 0x39f   :  { %1125 = vmatpush.bf16.msra.mxu0 %v3174_v7  ;;  %1138 = vmatpush.bf16.msra.mxu1 %v3176_v8 }
 0x3a0   :  { %1151 = vmatpush.bf16.msra.mxu2 %v3180_v15  ;;  %1164 = vmatpush.bf16.msra.mxu3 %v3182_v16 }
 0x3a3   :  { %1126 = vmatpush.bf16.msra.mxu0 %v3186_v28  ;;  %1139 = vmatpush.bf16.msra.mxu1 %v3188_v29 }
 0x3a4   :  { %1152 = vmatpush.bf16.msra.mxu2 %v3192_v30  ;;  %1165 = vmatpush.bf16.msra.mxu3 %v3194_v31 }
 0x3a7   :  { %1127 = vmatpush.bf16.msra.mxu0 %v3198_v37  ;;  %1140 = vmatpush.bf16.msra.mxu1 %v3202_v43 }
 0x3a8   :  { %1153 = vmatpush.bf16.msra.mxu2 %v3204_v44  ;;  %1166 = vmatpush.bf16.msra.mxu3 %v3206_v49 }
 0x406   :  { %v969_v21 = vpop.f32.mrf.mxu0  ;;  %v982_v22 = vpop.f32.mrf.mxu1 }
 0x407   :  { %v1012_v25 = vadd.f32 %v969_v21, %v201_v10  ;;  %v1013_v26 = vadd.f32 %v982_v22, %v242_v14  ;;  %v1251_v10 = vld [vmem:[#allocation7 + $0x368] sm:$0xff]  ;;  %v1253_v14 = vld [vmem:[#allocation7 + $0x378] sm:$0xff]  ;;  %v1246_v21 = vld [vmem:[#allocation7 + $0x340] sm:$0xff] }
 0x408   :  { %v1247_v22 = vld [vmem:[#allocation7 + $0x348] sm:$0xff] }
 0x409   :  { %v1016_v34 = vmul.f32 0.5, %v1012_v25  ;;  %v1020_v35 = vmul.f32 0.5, %v1013_v26  ;;  %v1248_v25 = vld [vmem:[#allocation7 + $0x350] sm:$0xff]  ;;  %v1249_v26 = vld [vmem:[#allocation7 + $0x358] sm:$0xff] }
 0x40b   :  { %2762 = vtanh.f32 %v1016_v34  ;;  %v1242_v34 = vld [vmem:[#allocation7 + $0x320] sm:$0xff] }
 0x40c   :  { %2764 = vtanh.f32 %v1020_v35  ;;  %v1243_v35 = vld [vmem:[#allocation7 + $0x328] sm:$0xff] }
 0x40d   :  { %v995_v50 = vpop.f32.mrf.mxu2  ;;  %v1008_v51 = vpop.f32.mrf.mxu3 }
 0x40e   :  { %v1014_v59 = vadd.f32 %v995_v50, %v283_v39  ;;  %v1015_v60 = vadd.f32 %v1008_v51, %v324_v47  ;;  %v971_v63 = vpop.f32.mrf.mxu0  ;;  %v984_v0 = vpop.f32.mrf.mxu1  ;;  %v1245_v39 = vld [vmem:[#allocation7 + $0x338] sm:$0xff]  ;;  %v1239_v47 = vld [vmem:[#allocation7 + $0x308] sm:$0xff]  ;;  %v1240_v50 = vld [vmem:[#allocation7 + $0x310] sm:$0xff] }
 0x40f   :  { %v1241_v51 = vld [vmem:[#allocation7 + $0x318] sm:$0xff]  ;;  %v4180_v63 = vld [vmem:[#allocation36_spill] sm:$0xff] }
 0x410   :  { %2766 = vtanh.f32 %v1014_v59  ;;  %v1025_v7 = vmul.f32 0.5, %v1015_v60  ;;  %v4179_v59 = vld [vmem:[#allocation35_spill] sm:$0xff]  ;;  %v245_v0 = vadd.f32 %v4180_v63, %v3334_v36 }
 0x411   :  { %v2763_v8 = vpop.eup %2762  ;;  %v204_v60 = vadd.f32 %v4179_v59, %v3332_v56  ;;  %v1206_v59 = vld [vmem:[#allocation7 + $0x200] sm:$0xff] }
 0x412   :  { %v2765_v15 = vpop.eup %2764  ;;  %v1018_v16 = vadd.f32 1.0, %v2763_v8  ;;  %2768 = vtanh.f32 %v1025_v7 }
 0x413   :  { %v1022_v28 = vadd.f32 1.0, %v2765_v15 }
 0x414   :  { %v1019_v29 = vmul.f32 0.5, %v1018_v16 }
 0x415   :  { %v1023_v30 = vmul.f32 0.5, %v1022_v28  ;;  %v997_v31 = vpop.f32.mrf.mxu2  ;;  %v1010_v37 = vpop.f32.mrf.mxu3  ;;  %v1234_v28 = vld [vmem:[#allocation7 + $0x2e0] sm:$0xff] }
 0x416   :  { %v2767_v43 = vpop.eup %2766  ;;  %v1237_v31 = vld [vmem:[#allocation7 + $0x2f8] sm:$0xff]  ;;  %v1230_v37 = vld [vmem:[#allocation7 + $0x2c0] sm:$0xff] }
 0x417   :  { %v1029_v44 = vmul.f32 %v1023_v30, %v3540_v33  ;;  %v1030_v49 = vmul.f32 %v2767_v43, %v1019_v29  ;;  %v1261_v33 = vld [vmem:[#allocation7 + $0x3b8] sm:$0xff]  ;;  %v1235_v29 = vld [vmem:[#allocation7 + $0x2e8] sm:$0xff]  ;;  %v1236_v30 = vld [vmem:[#allocation7 + $0x2f0] sm:$0xff] }
 0x418   :  { %v2769_v58 = vpop.eup %2768  ;;  %v1231_v43 = vld [vmem:[#allocation7 + $0x2c8] sm:$0xff] }
 0x419   :  { %v3588_v6 = vadd.f32 %v1030_v49, %v1029_v44  ;;  %v1027_v4 = vadd.f32 1.0, %v2769_v58  ;;  %v1232_v58 = vld [vmem:[#allocation7 + $0x2d0] sm:$0xff] }
 0x41b   :  { %2770 = vtanh.f32 %v3588_v6  ;;  %v1028_v57 = vmul.f32 0.5, %v1027_v4  ;;  %v1233_v4 = vld [vmem:[#allocation7 + $0x2d8] sm:$0xff] }
 0x421   :  { %v2771_v40 = vpop.eup %2770 }
 0x422   :  { %v3591_v41 = vmul.f32 %v2771_v40, %v1028_v57  ;;  %v1226_v57 = vld [vmem:[#allocation7 + $0x2a0] sm:$0xff]  ;;  %v1227_v40 = vld [vmem:[#allocation7 + $0x2a8] sm:$0xff] }
 0x424   :  { %v1039_v48 = vpack.c.bf16 %v3591_v41, %v3591_v41 }
 0x426   :  { %1048 = vmatmul.bf16.vlgmr.msrb.gmra.mxu0 %v1039_v48  ;;  %1061 = vmatmul.bf16.vlgmr.msrb.gmra.mxu1 %v1039_v48 }
 0x427   :  { %1074 = vmatmul.bf16.vlgmr.msrb.gmra.mxu2 %v1039_v48  ;;  %1087 = vmatmul.bf16.vlgmr.msrb.gmra.mxu3 %v1039_v48  ;;  %v1228_v48 = vld [vmem:[#allocation7 + $0x2b0] sm:$0xff] }
 0x428   :  { %1281 = vmatpush.msrb.mxu0 %v1266_v11  ;;  %1322 = vmatpush.msrb.mxu1 %v1267_v62  ;;  %v1229_v11 = vld [vmem:[#allocation7 + $0x2b8] sm:$0xff]  ;;  %v1222_v62 = vld [vmem:[#allocation7 + $0x280] sm:$0xff] }
 0x429   :  { %1363 = vmatpush.msrb.mxu2 %v1268_v52  ;;  %1404 = vmatpush.msrb.mxu3 %v1269_v1  ;;  %v1223_v52 = vld [vmem:[#allocation7 + $0x288] sm:$0xff] }
 0x42a   :  { %1282 = vmatpush.msrb.mxu0 %v1262_v55  ;;  %1323 = vmatpush.msrb.mxu1 %v1263_v61  ;;  %v4181_v1 = vld [vmem:[#allocation37_spill] sm:$0xff]  ;;  %v4182_v61 = vld [vmem:[#allocation38_spill] sm:$0xff] }
 0x42b   :  { %1364 = vmatpush.msrb.mxu2 %v1264_v2  ;;  %1405 = vmatpush.msrb.mxu3 %v1265_v24  ;;  %v286_v55 = vadd.f32 %v4181_v1, %v3342_v27  ;;  %v327_v2 = vadd.f32 %v4182_v61, %v3344_v54  ;;  %v1224_v24 = vld [vmem:[#allocation7 + $0x290] sm:$0xff]  ;;  %v2602_v61 = vld [vmem:[#allocation9 + $0x1c0] sm:$0xf] }
 0x42c   :  { %1283 = vmatpush.msrb.mxu0 %v1258_v18  ;;  %1324 = vmatpush.msrb.mxu1 %v1259_v19  ;;  %v1225_v18 = vld [vmem:[#allocation7 + $0x298] sm:$0xff] }
 0x42d   :  { %1365 = vmatpush.msrb.mxu2 %v1260_v42  ;;  %1406 = vmatpush.msrb.mxu3 %v1261_v33  ;;  %v1218_v33 = vld [vmem:[#allocation7 + $0x260] sm:$0xff] }
 0x42e   :  { %1284 = vmatpush.msrb.mxu0 %v1254_v12  ;;  %1325 = vmatpush.msrb.mxu1 %v1255_v3  ;;  %v1219_v12 = vld [vmem:[#allocation7 + $0x268] sm:$0xff] }
 0x42f   :  { %1366 = vmatpush.msrb.mxu2 %v1256_v5  ;;  %1407 = vmatpush.msrb.mxu3 %v1257_v45 }
 0x430   :  { %1285 = vmatpush.msrb.mxu0 %v1250_v9  ;;  %1326 = vmatpush.msrb.mxu1 %v1251_v10  ;;  %v1220_v10 = vld [vmem:[#allocation7 + $0x270] sm:$0xff] }
 0x431   :  { %1367 = vmatpush.msrb.mxu2 %v1252_v13  ;;  %1408 = vmatpush.msrb.mxu3 %v1253_v14  ;;  %v1221_v13 = vld [vmem:[#allocation7 + $0x278] sm:$0xff]  ;;  %v1214_v14 = vld [vmem:[#allocation7 + $0x240] sm:$0xff] }
 0x432   :  { %1286 = vmatpush.msrb.mxu0 %v1246_v21  ;;  %1327 = vmatpush.msrb.mxu1 %v1247_v22  ;;  %v1215_v21 = vld [vmem:[#allocation7 + $0x248] sm:$0xff] }
 0x433   :  { %1368 = vmatpush.msrb.mxu2 %v1248_v25  ;;  %1409 = vmatpush.msrb.mxu3 %v1249_v26  ;;  %v1216_v25 = vld [vmem:[#allocation7 + $0x250] sm:$0xff]  ;;  %v1217_v26 = vld [vmem:[#allocation7 + $0x258] sm:$0xff] }
 0x434   :  { %1287 = vmatpush.msrb.mxu0 %v1242_v34  ;;  %1328 = vmatpush.msrb.mxu1 %v1243_v35  ;;  %v1210_v35 = vld [vmem:[#allocation7 + $0x220] sm:$0xff] }
 0x435   :  { %1369 = vmatpush.msrb.mxu2 %v1244_v38  ;;  %1410 = vmatpush.msrb.mxu3 %v1245_v39  ;;  %v1211_v38 = vld [vmem:[#allocation7 + $0x228] sm:$0xff] }
 0x436   :  { %1288 = vmatpush.msrb.mxu0 %v1238_v46  ;;  %1329 = vmatpush.msrb.mxu1 %v1239_v47  ;;  %v1212_v47 = vld [vmem:[#allocation7 + $0x230] sm:$0xff] }
 0x437   :  { %1370 = vmatpush.msrb.mxu2 %v1240_v50  ;;  %1411 = vmatpush.msrb.mxu3 %v1241_v51  ;;  %v1213_v50 = vld [vmem:[#allocation7 + $0x238] sm:$0xff] }
 0x438   :  { %1289 = vmatpush.msrb.mxu0 %v1234_v28  ;;  %1330 = vmatpush.msrb.mxu1 %v1235_v29 }
 0x439   :  { %1371 = vmatpush.msrb.mxu2 %v1236_v30  ;;  %1412 = vmatpush.msrb.mxu3 %v1237_v31 }
 0x43a   :  { %1290 = vmatpush.msrb.mxu0 %v1230_v37  ;;  %1331 = vmatpush.msrb.mxu1 %v1231_v43 }
 0x43b   :  { %1372 = vmatpush.msrb.mxu2 %v1232_v58  ;;  %1413 = vmatpush.msrb.mxu3 %v1233_v4 }
 0x43c   :  { %1291 = vmatpush.msrb.mxu0 %v1226_v57  ;;  %1332 = vmatpush.msrb.mxu1 %v1227_v40  ;;  %v2694_v57 = vld [vmem:[#allocation9 + $0x1ec] sm:$0xf0]  ;;  %v2692_v40 = vld [vmem:[#allocation9 + $0x1e4] sm:$0xf] }
 0x43d   :  { %1373 = vmatpush.msrb.mxu2 %v1228_v48  ;;  %1414 = vmatpush.msrb.mxu3 %v1229_v11  ;;  %v2620_v48 = vld [vmem:[#allocation9 + $0x1f0] sm:$0xf0]  ;;  %v2626_v11 = vld [vmem:[#allocation9 + $0x1e8] sm:$0xf] }
 0x43e   :  { %1292 = vmatpush.msrb.mxu0 %v1222_v62  ;;  %1333 = vmatpush.msrb.mxu1 %v1223_v52  ;;  %v2695_v62 = vld [vmem:[#allocation9 + $0x1f4] sm:$0xf0]  ;;  %v3625_v52 = vor.u32 %v2692_v40, %v2620_v48  ;;  %v2674_v40 = vld [vmem:[#allocation9 + $0x14c] sm:$0xf0]  ;;  %v2672_v48 = vld [vmem:[#allocation9 + $0x144] sm:$0xf] }
 0x43f   :  { %1374 = vmatpush.msrb.mxu2 %v1224_v24  ;;  %1415 = vmatpush.msrb.mxu3 %v1225_v18  ;;  %v3627_v1 = vor.u32 %v2695_v62, %v2626_v11  ;;  %v2688_v24 = vld [vmem:[#allocation9 + $0x1c4] sm:$0xf]  ;;  %v2604_v18 = vld [vmem:[#allocation9 + $0x1d0] sm:$0xf0] }
 0x440   :  { %1293 = vmatpush.msrb.mxu0 %v1218_v33  ;;  %1334 = vmatpush.msrb.mxu1 %v1219_v12  ;;  %v2689_v33 = vld [vmem:[#allocation9 + $0x1cc] sm:$0xf]  ;;  %v2540_v62 = vld [vmem:[#allocation9 + $0x150] sm:$0xf0] }
 0x441   :  { %1375 = vmatpush.msrb.mxu2 %v1220_v10  ;;  %1416 = vmatpush.msrb.mxu3 %v1221_v13 }
 0x442   :  { %1294 = vmatpush.msrb.mxu0 %v1214_v14  ;;  %1335 = vmatpush.msrb.mxu1 %v1215_v21  ;;  %v2684_v14 = vld [vmem:[#allocation9 + $0x1a4] sm:$0xf]  ;;  %v2588_v21 = vld [vmem:[#allocation9 + $0x1b0] sm:$0xf0] }
 0x443   :  { %1376 = vmatpush.msrb.mxu2 %v1216_v25  ;;  %1417 = vmatpush.msrb.mxu3 %v1217_v26  ;;  %v2687_v25 = vld [vmem:[#allocation9 + $0x1b4] sm:$0xf0]  ;;  %v2685_v26 = vld [vmem:[#allocation9 + $0x1ac] sm:$0xf] }
 0x444   :  { %1295 = vmatpush.msrb.mxu0 %v1210_v35  ;;  %1336 = vmatpush.msrb.mxu1 %v1211_v38  ;;  %v3651_v38 = vor.u32 %v2684_v14, %v2588_v21  ;;  %v2530_v14 = vld [vmem:[#allocation9 + $0x128] sm:$0xf]  ;;  %v2671_v21 = vld [vmem:[#allocation9 + $0x134] sm:$0xf0] }
 0x445   :  { %1377 = vmatpush.msrb.mxu2 %v1212_v47  ;;  %1418 = vmatpush.msrb.mxu3 %v1213_v50  ;;  %v2682_v50 = vld [vmem:[#allocation9 + $0x18c] sm:$0xf0] }
 0x446   :  { %1296 = vmatpush.msrb.mxu0 %v1206_v59  ;;  %v2578_v59 = vld [vmem:[#allocation9 + $0x188] sm:$0xf] }
 0x4a3   :  { %v1049_v7 = vpop.f32.mrf.mxu0  ;;  %v1062_v8 = vpop.f32.mrf.mxu1 }
 0x4a4   :  { %v1092_v15 = vadd.f32 %v1049_v7, %v204_v60  ;;  %v1093_v16 = vadd.f32 %v1062_v8, %v245_v0  ;;  %v1207_v60 = vld [vmem:[#allocation7 + $0x208] sm:$0xff]  ;;  %v1208_v0 = vld [vmem:[#allocation7 + $0x210] sm:$0xff]  ;;  %v1209_v7 = vld [vmem:[#allocation7 + $0x218] sm:$0xff] }
 0x4a5   :  { %1337 = vmatpush.msrb.mxu1 %v1207_v60  ;;  %1378 = vmatpush.msrb.mxu2 %v1208_v0  ;;  %v2683_v60 = vld [vmem:[#allocation9 + $0x194] sm:$0xf0] }
 0x4a6   :  { %v1096_v44 = vmul.f32 0.5, %v1092_v15  ;;  %v1100_v49 = vmul.f32 0.5, %v1093_v16  ;;  %1419 = vmatpush.msrb.mxu3 %v1209_v7  ;;  %v3667_v7 = vor.u32 %v2683_v60, %v2578_v59  ;;  %v2506_v60 = vld [vmem:[#allocation9 + $0x100] sm:$0xf] }
 0x4a8   :  { %2772 = vtanh.f32 %v1096_v44 }
 0x4a9   :  { %2774 = vtanh.f32 %v1100_v49 }
 0x4aa   :  { %v1075_v19 = vpop.f32.mrf.mxu2  ;;  %v1088_v42 = vpop.f32.mrf.mxu3 }
 0x4ab   :  { %v1094_v3 = vadd.f32 %v1075_v19, %v286_v55  ;;  %v1095_v5 = vadd.f32 %v1088_v42, %v327_v2  ;;  %v1051_v45 = vpop.f32.mrf.mxu0  ;;  %v1064_v9 = vpop.f32.mrf.mxu1  ;;  %v2628_v55 = vld [vmem:[#allocation9 + $0x1f8] sm:$0xf0]  ;;  %v2610_v19 = vld [vmem:[#allocation9 + $0x1c8] sm:$0xf]  ;;  %v2691_v42 = vld [vmem:[#allocation9 + $0x1d4] sm:$0xf0] }
 0x4ac   :  { %v2586_v45 = vld [vmem:[#allocation9 + $0x1a0] sm:$0xf]  ;;  %v2686_v9 = vld [vmem:[#allocation9 + $0x1ac] sm:$0xf0]  ;;  %v3639_v10 = vor.u32 %v2691_v42, %v2610_v19 }
 0x4ad   :  { %2776 = vtanh.f32 %v1094_v3  ;;  %v1105_v22 = vmul.f32 0.5, %v1095_v5  ;;  %v3637_v3 = vor.u32 %v2688_v24, %v2604_v18  ;;  %v2612_v5 = vld [vmem:[#allocation9 + $0x1d8] sm:$0xf0]  ;;  %v3649_v35 = vor.u32 %v2686_v9, %v2586_v45  ;;  %v2673_v24 = vld [vmem:[#allocation9 + $0x14c] sm:$0xf] }
 0x4ae   :  { %v2773_v34 = vpop.eup %2772  ;;  %v3641_v13 = vor.u32 %v2689_v33, %v2612_v5  ;;  %v2548_v18 = vld [vmem:[#allocation9 + $0x158] sm:$0xf0]  ;;  %v2522_v42 = vld [vmem:[#allocation9 + $0x120] sm:$0xf]  ;;  %v2670_v33 = vld [vmem:[#allocation9 + $0x12c] sm:$0xf0] }
 0x4af   :  { %v2775_v39 = vpop.eup %2774  ;;  %v1098_v46 = vadd.f32 1.0, %v2773_v34  ;;  %2778 = vtanh.f32 %v1105_v22  ;;  %v2594_v22 = vld [vmem:[#allocation9 + $0x1a8] sm:$0xf]  ;;  %v2596_v34 = vld [vmem:[#allocation9 + $0x1b8] sm:$0xf0]  ;;  %v3706_v19 = vor.u32 %v2673_v24, %v2548_v18  ;;  %v3711_v45 = vor.u32 %v2670_v33, %v2522_v42  ;;  %v4186_v18 = vld [vmem:[#allocation42_spill] sm:$0xff] }
 0x4b0   :  { %v1102_v51 = vadd.f32 1.0, %v2775_v39  ;;  %v2570_v39 = vld [vmem:[#allocation9 + $0x180] sm:$0xf]  ;;  %v3657_v47 = vor.u32 %v2685_v26, %v2596_v34  ;;  %v2668_v5 = vld [vmem:[#allocation9 + $0x124] sm:$0xf]  ;;  %v330_v42 = vadd.f32 %v4186_v18, %v3344_v54 }
 0x4b1   :  { %v1099_v63 = vmul.f32 0.5, %v1098_v46  ;;  %v3655_v46 = vor.u32 %v2687_v25, %v2594_v22  ;;  %v2524_v9 = vld [vmem:[#allocation9 + $0x130] sm:$0xf0]  ;;  %v3715_v25 = vor.u32 %v2671_v21, %v2530_v14  ;;  %v2669_v26 = vld [vmem:[#allocation9 + $0x12c] sm:$0xf] }
 0x4b2   :  { %v1103_v8 = vmul.f32 0.5, %v1102_v51  ;;  %v1077_v15 = vpop.f32.mrf.mxu2  ;;  %v1090_v16 = vpop.f32.mrf.mxu3  ;;  %v2680_v51 = vld [vmem:[#allocation9 + $0x184] sm:$0xf]  ;;  %v3713_v22 = vor.u32 %v2668_v5, %v2524_v9  ;;  %v2532_v34 = vld [vmem:[#allocation9 + $0x138] sm:$0xf0] }
 0x4b3   :  { %v2777_v28 = vpop.eup %2776  ;;  %v2554_v16 = vld [vmem:[#allocation9 + $0x160] sm:$0xf]  ;;  %v3722_v59 = vor.u32 %v2669_v26, %v2532_v34 }
 0x4b4   :  { %v1109_v29 = vmul.f32 %v1103_v8, %v3588_v6  ;;  %v1110_v30 = vmul.f32 %v2777_v28, %v1099_v63  ;;  %v2618_v6 = vld [vmem:[#allocation9 + $0x1e0] sm:$0xf]  ;;  %v3661_v63 = vor.u32 %v2682_v50, %v2570_v39  ;;  %v2580_v8 = vld [vmem:[#allocation9 + $0x198] sm:$0xf0]  ;;  %v2678_v28 = vld [vmem:[#allocation9 + $0x16c] sm:$0xf0] }
 0x4b5   :  { %v2779_v31 = vpop.eup %2778  ;;  %v4183_v39 = vld [vmem:[#allocation39_spill] sm:$0xff] }
 0x4b6   :  { %v3604_v37 = vadd.f32 %v1110_v30, %v1109_v29  ;;  %v1107_v43 = vadd.f32 1.0, %v2779_v31  ;;  %v2676_v29 = vld [vmem:[#allocation9 + $0x164] sm:$0xf]  ;;  %v3686_v30 = vor.u32 %v2678_v28, %v2554_v16  ;;  %v2556_v31 = vld [vmem:[#allocation9 + $0x170] sm:$0xf0]  ;;  %v207_v50 = vadd.f32 %v4183_v39, %v3332_v56 }
 0x4b7   :  { %v2514_v56 = vld [vmem:[#allocation9 + $0x108] sm:$0xf] }
 0x4b8   :  { %2780 = vtanh.f32 %v3604_v37  ;;  %v1108_v44 = vmul.f32 0.5, %v1107_v43  ;;  %v2562_v43 = vld [vmem:[#allocation9 + $0x168] sm:$0xf] }
 0x4be   :  { %v2781_v49 = vpop.eup %2780 }
 0x4bf   :  { %v3607_v58 = vmul.f32 %v2781_v49, %v1108_v44  ;;  %v3689_v44 = vor.u32 %v2676_v29, %v2556_v31  ;;  %v2508_v31 = vld [vmem:[#allocation9 + $0x110] sm:$0xf0] }
 0x4c1   :  { %v1119_v4 = vpack.c.bf16 %v3607_v58, %v3607_v58 }
 0x4c3   :  { %1128 = vmatmul.bf16.vlgmr.msra.gmra.mxu0 %v1119_v4  ;;  %1141 = vmatmul.bf16.vlgmr.msra.gmra.mxu1 %v1119_v4 }
 0x4c4   :  { %1154 = vmatmul.bf16.vlgmr.msra.gmra.mxu2 %v1119_v4  ;;  %1167 = vmatmul.bf16.vlgmr.msra.gmra.mxu3 %v1119_v4  ;;  %v2564_v4 = vld [vmem:[#allocation9 + $0x178] sm:$0xf0] }
 0x4c5   :  { %1687 = vmatpush.bf16.msra.mxu1 %v3625_v52  ;;  %1700 = vmatpush.bf16.msra.mxu2 %v3627_v1 }
 0x4c9   :  { %1688 = vmatpush.bf16.msra.mxu1 %v3637_v3  ;;  %1701 = vmatpush.bf16.msra.mxu2 %v3639_v10 }
 0x4cd   :  { %1689 = vmatpush.bf16.msra.mxu1 %v3651_v38  ;;  %1702 = vmatpush.bf16.msra.mxu2 %v3655_v46 }
 0x4d1   :  { %1703 = vmatpush.bf16.msra.mxu2 %v3667_v7 }
 0x4d3   :  { %1297 = vmatmul.f32.vlgmr.msrb.gmra.mxu0 %v3351_v23  ;;  %1338 = vmatmul.f32.vlgmr.msrb.gmra.mxu1 %v3351_v23 }
 0x4d4   :  { %1379 = vmatmul.f32.vlgmr.msrb.gmra.mxu2 %v3351_v23  ;;  %1420 = vmatmul.f32.vlgmr.msrb.gmra.mxu3 %v3351_v23  ;;  %v3623_v23 = vor.u32 %v2694_v57, %v2618_v6  ;;  %v2538_v57 = vld [vmem:[#allocation9 + $0x140] sm:$0xf] }
 0x4d5   :  { %v3699_v11 = vor.u32 %v2674_v40, %v2538_v57  ;;  %v2665_v57 = vld [vmem:[#allocation9 + $0x10c] sm:$0xf]  ;;  %v2516_v40 = vld [vmem:[#allocation9 + $0x118] sm:$0xf0] }
 0x4d6   :  { %1674 = vmatpush.bf16.msra.mxu0 %v3623_v23 }
 0x4db   :  { %1300 = vmatmul.f32.gmra.mxu0 %v3399_v53  ;;  %1341 = vmatmul.f32.gmra.mxu1 %v3399_v53 }
 0x4dc   :  { %1382 = vmatmul.f32.gmra.mxu2 %v3399_v53  ;;  %1423 = vmatmul.f32.gmra.mxu3 %v3399_v53  ;;  %v2693_v53 = vld [vmem:[#allocation9 + $0x1ec] sm:$0xf] }
 0x4dd   :  { %v3630_v2 = vor.u32 %v2693_v53, %v2628_v55  ;;  %v2546_v53 = vld [vmem:[#allocation9 + $0x148] sm:$0xf]  ;;  %v2675_v55 = vld [vmem:[#allocation9 + $0x154] sm:$0xf0] }
 0x4df   :  { %1713 = vmatpush.bf16.msra.mxu3 %v3630_v2 }
 0x4e3   :  { %1303 = vmatmul.f32.gmra.mxu0 %v3447_v20  ;;  %1344 = vmatmul.f32.gmra.mxu1 %v3447_v20 }
 0x4e4   :  { %1385 = vmatmul.f32.gmra.mxu2 %v3447_v20  ;;  %1426 = vmatmul.f32.gmra.mxu3 %v3447_v20  ;;  %v2690_v20 = vld [vmem:[#allocation9 + $0x1cc] sm:$0xf0] }
 0x4e5   :  { %v3635_v12 = vor.u32 %v2690_v20, %v2602_v61  ;;  %1714 = vmatpush.bf16.msra.mxu3 %v3641_v13  ;;  %v3701_v61 = vor.u32 %v2672_v48, %v2540_v62  ;;  %v3703_v20 = vor.u32 %v2675_v55, %v2546_v53  ;;  %v3733_v48 = vor.u32 %v2665_v57, %v2516_v40  ;;  %v4185_v55 = vld [vmem:[#allocation41_spill] sm:$0xff] }
 0x4e6   :  { %v289_v24 = vadd.f32 %v4185_v55, %v3342_v27  ;;  %v4187_v57 = vmov 0  }
 0x4e7   :  { %1675 = vmatpush.bf16.msra.mxu0 %v3635_v12 }
 0x4e9   :  { %1715 = vmatpush.bf16.msra.mxu3 %v3657_v47 }
 0x4eb   :  { %1306 = vmatmul.f32.gmra.mxu0 %v3495_v32  ;;  %1347 = vmatmul.f32.gmra.mxu1 %v3495_v32 }
 0x4ec   :  { %1388 = vmatmul.f32.gmra.mxu2 %v3495_v32  ;;  %1429 = vmatmul.f32.gmra.mxu3 %v3495_v32  ;;  %v2572_v32 = vld [vmem:[#allocation9 + $0x190] sm:$0xf0] }
 0x4ed   :  { %1676 = vmatpush.bf16.msra.mxu0 %v3649_v35  ;;  %v3663_v0 = vor.u32 %v2680_v51, %v2572_v32  ;;  %v4184_v51 = vld [vmem:[#allocation40_spill] sm:$0xff] }
 0x4ee   :  { %v248_v32 = vadd.f32 %v4184_v51, %v3334_v36 }
 0x4ef   :  { %1690 = vmatpush.bf16.msra.mxu1 %v3663_v0 }
 0x4f1   :  { %1677 = vmatpush.bf16.msra.mxu0 %v3661_v63 }
 0x4f3   :  { %1309 = vmatmul.f32.gmra.mxu0 %v3543_v17  ;;  %1350 = vmatmul.f32.gmra.mxu1 %v3543_v17 }
 0x4f4   :  { %1391 = vmatmul.f32.gmra.mxu2 %v3543_v17  ;;  %1432 = vmatmul.f32.gmra.mxu3 %v3543_v17  ;;  %v2681_v17 = vld [vmem:[#allocation9 + $0x18c] sm:$0xf] }
 0x4f5   :  { %v3684_v15 = vor.u32 %v2681_v17, %v2580_v8  ;;  %1678 = vmatpush.bf16.msra.mxu0 %v3686_v30  ;;  %1691 = vmatpush.bf16.msra.mxu1 %v3689_v44  ;;  %v2666_v17 = vld [vmem:[#allocation9 + $0x10c] sm:$0xf0]  ;;  %v2664_v8 = vld [vmem:[#allocation9 + $0x104] sm:$0xf] }
 0x4f6   :  { %v3726_v29 = vor.u32 %v2666_v17, %v2506_v60 }
 0x4f7   :  { %1716 = vmatpush.bf16.msra.mxu3 %v3684_v15 }
 0x4f9   :  { %1679 = vmatpush.bf16.msra.mxu0 %v3699_v11  ;;  %1692 = vmatpush.bf16.msra.mxu1 %v3701_v61 }
 0x4fb   :  { %1312 = vmatmul.f32.gmra.mxu0 %v3591_v41  ;;  %1353 = vmatmul.f32.gmra.mxu1 %v3591_v41 }
 0x4fc   :  { %1394 = vmatmul.f32.gmra.mxu2 %v3591_v41  ;;  %1435 = vmatmul.f32.gmra.mxu3 %v3591_v41  ;;  %v2679_v41 = vld [vmem:[#allocation9 + $0x174] sm:$0xf0] }
 0x4fd   :  { %v3691_v49 = vor.u32 %v2679_v41, %v2562_v43  ;;  %1680 = vmatpush.bf16.msra.mxu0 %v3711_v45  ;;  %1693 = vmatpush.bf16.msra.mxu1 %v3713_v22  ;;  %v2667_v43 = vld [vmem:[#allocation9 + $0x114] sm:$0xf0] }
 0x4ff   :  { %1704 = vmatpush.bf16.msra.mxu2 %v3691_v49 }
 0x501   :  { %1681 = vmatpush.bf16.msra.mxu0 %v3726_v29 }
 0x503   :  { %1315 = vmatmul.f32.gmra.mxu0 %v3607_v58  ;;  %1356 = vmatmul.f32.gmra.mxu1 %v3607_v58 }
 0x504   :  { %1397 = vmatmul.f32.gmra.mxu2 %v3607_v58  ;;  %1438 = vmatmul.f32.gmra.mxu3 %v3607_v58  ;;  %v2677_v58 = vld [vmem:[#allocation9 + $0x16c] sm:$0xf] }
 0x505   :  { %v3696_v6 = vor.u32 %v2677_v58, %v2564_v4  ;;  %1705 = vmatpush.bf16.msra.mxu2 %v3703_v20  ;;  %v3729_v58 = vor.u32 %v2664_v8, %v2508_v31  ;;  %v3731_v4 = vor.u32 %v2667_v43, %v2514_v56  ;;  %1754 = vmatpush.bf16.msrb.mxu0 %v3623_v23 }
 0x507   :  { %1717 = vmatpush.bf16.msra.mxu3 %v3696_v6  ;;  %1694 = vmatpush.bf16.msra.mxu1 %v3729_v58 }
 0x509   :  { %1706 = vmatpush.bf16.msra.mxu2 %v3715_v25  ;;  %1755 = vmatpush.bf16.msrb.mxu0 %v3635_v12 }
 0x50b   :  { %1718 = vmatpush.bf16.msra.mxu3 %v3706_v19  ;;  %1767 = vmatpush.bf16.msrb.mxu1 %v3625_v52 }
 0x50d   :  { %1707 = vmatpush.bf16.msra.mxu2 %v3731_v4  ;;  %1756 = vmatpush.bf16.msrb.mxu0 %v3649_v35 }
 0x50f   :  { %1719 = vmatpush.bf16.msra.mxu3 %v3722_v59  ;;  %1768 = vmatpush.bf16.msrb.mxu1 %v3637_v3 }
 0x511   :  { %1780 = vmatpush.bf16.msrb.mxu2 %v3627_v1  ;;  %1757 = vmatpush.bf16.msrb.mxu0 %v3661_v63 }
 0x513   :  { %1720 = vmatpush.bf16.msra.mxu3 %v3733_v48  ;;  %1769 = vmatpush.bf16.msrb.mxu1 %v3651_v38 }
 0x515   :  { %1781 = vmatpush.bf16.msrb.mxu2 %v3639_v10  ;;  %1758 = vmatpush.bf16.msrb.mxu0 %v3686_v30 }
 0x517   :  { %1793 = vmatpush.bf16.msrb.mxu3 %v3630_v2  ;;  %1770 = vmatpush.bf16.msrb.mxu1 %v3663_v0 }
 0x519   :  { %1782 = vmatpush.bf16.msrb.mxu2 %v3655_v46  ;;  %1759 = vmatpush.bf16.msrb.mxu0 %v3699_v11 }
 0x51b   :  { %1794 = vmatpush.bf16.msrb.mxu3 %v3641_v13  ;;  %1771 = vmatpush.bf16.msrb.mxu1 %v3689_v44 }
 0x51d   :  { %1783 = vmatpush.bf16.msrb.mxu2 %v3667_v7  ;;  %1760 = vmatpush.bf16.msrb.mxu0 %v3711_v45 }
 0x51f   :  { %1795 = vmatpush.bf16.msrb.mxu3 %v3657_v47  ;;  %1772 = vmatpush.bf16.msrb.mxu1 %v3701_v61 }
 0x521   :  { %1784 = vmatpush.bf16.msrb.mxu2 %v3691_v49  ;;  %1761 = vmatpush.bf16.msrb.mxu0 %v3726_v29 }
 0x523   :  { %1796 = vmatpush.bf16.msrb.mxu3 %v3684_v15  ;;  %1773 = vmatpush.bf16.msrb.mxu1 %v3713_v22 }
 0x525   :  { %1785 = vmatpush.bf16.msrb.mxu2 %v3703_v20 }
 0x527   :  { %1797 = vmatpush.bf16.msrb.mxu3 %v3696_v6  ;;  %1774 = vmatpush.bf16.msrb.mxu1 %v3729_v58 }
 0x529   :  { %1786 = vmatpush.bf16.msrb.mxu2 %v3715_v25 }
 0x52b   :  { %1798 = vmatpush.bf16.msrb.mxu3 %v3706_v19 }
 0x52d   :  { %1787 = vmatpush.bf16.msrb.mxu2 %v3731_v4 }
 0x52f   :  { %1799 = vmatpush.bf16.msrb.mxu3 %v3722_v59 }
 0x533   :  { %1800 = vmatpush.bf16.msrb.mxu3 %v3733_v48 }
 0x540   :  { %v1129_v16 = vpop.f32.mrf.mxu0  ;;  %v1142_v28 = vpop.f32.mrf.mxu1 }
 0x541   :  { %v1172_v41 = vadd.f32 %v1129_v16, %v207_v50  ;;  %v1173_v36 = vadd.f32 %v1142_v28, %v248_v32 }
 0x543   :  { %v1176_v62 = vmul.f32 0.5, %v1172_v41  ;;  %v1180_v53 = vmul.f32 0.5, %v1173_v36 }
 0x545   :  { %2782 = vtanh.f32 %v1176_v62 }
 0x546   :  { %2784 = vtanh.f32 %v1180_v53 }
 0x547   :  { %v1155_v33 = vpop.f32.mrf.mxu2  ;;  %v1168_v5 = vpop.f32.mrf.mxu3 }
 0x548   :  { %v1174_v9 = vadd.f32 %v1155_v33, %v289_v24  ;;  %v1175_v14 = vadd.f32 %v1168_v5, %v330_v42  ;;  %v1131_v21 = vpop.f32.mrf.mxu0  ;;  %v1144_v26 = vpop.f32.mrf.mxu1 }
 0x54a   :  { %2786 = vtanh.f32 %v1174_v9  ;;  %v1185_v27 = vmul.f32 0.5, %v1175_v14 }
 0x54b   :  { %v2783_v54 = vpop.eup %2782 }
 0x54c   :  { %v2785_v34 = vpop.eup %2784  ;;  %v1178_v39 = vadd.f32 1.0, %v2783_v54  ;;  %2788 = vtanh.f32 %v1185_v27 }
 0x54d   :  { %v1182_v50 = vadd.f32 1.0, %v2785_v34 }
 0x54e   :  { %v1179_v51 = vmul.f32 0.5, %v1178_v39 }
 0x54f   :  { %v1183_v32 = vmul.f32 0.5, %v1182_v50  ;;  %v1157_v60 = vpop.f32.mrf.mxu2  ;;  %v1170_v17 = vpop.f32.mrf.mxu3 }
 0x550   :  { %v2787_v8 = vpop.eup %2786  ;;  %v1298_v40 = vpop.f32.mrf.mxu0 }
 0x551   :  { %v1189_v16 = vmul.f32 %v1183_v32, %v3604_v37  ;;  %v1190_v28 = vmul.f32 %v2787_v8, %v1179_v51  ;;  %v1339_v62 = vpop.f32.mrf.mxu1 }
 0x552   :  { %v2789_v31 = vpop.eup %2788 }
 0x553   :  { %v1191_v56 = vadd.f32 %v1190_v28, %v1189_v16  ;;  %v1187_v43 = vadd.f32 1.0, %v2789_v31 }
 0x555   :  { %2790 = vtanh.f32 %v1191_v56  ;;  %1196 = vst [vmem:[#allocation15] sm:$0xff] %v1191_v56  ;;  %v1188_v37 = vmul.f32 0.5, %v1187_v43 }
 0x557   :  { %v1380_v53 = vpop.f32.mrf.mxu2  ;;  %v1421_v55 = vpop.f32.mrf.mxu3 }
 0x558   :  { %v3812_v24 = vpop.f32.mrf.mxu0 }
 0x559   :  { %v3814_v18 = vpop.f32.mrf.mxu1 }
 0x55b   :  { %v2791_v41 = vpop.eup %2790 }
 0x55c   :  { %v1193_v36 = vmul.f32 %v2791_v41, %v1188_v37  ;;  %v1271_v37 = vld [vmem:[#allocation10 + $0x4] sm:$0xf] }
 0x55e   :  { %1195 = vst [vmem:[#allocation13] sm:$0xff] %v1193_v36  ;;  %1318 = vmatmul.f32.gmra.mxu0 %v1193_v36  ;;  %1359 = vmatmul.f32.gmra.mxu1 %v1193_v36 }
 0x55f   :  { %1400 = vmatmul.f32.gmra.mxu2 %v1193_v36  ;;  %1441 = vmatmul.f32.gmra.mxu3 %v1193_v36  ;;  %v3816_v42 = vpop.f32.mrf.mxu2  ;;  %v3818_v33 = vpop.f32.mrf.mxu3 }
 0x560   :  { %v3820_v5 = vpop.f32.mrf.mxu0 }
 0x561   :  { %v3822_v9 = vpop.f32.mrf.mxu1 }
 0x566   :  { %1682 = vmatmul.bf16.vlgmr.msra.gmra.mxu0 %v4187_v57  ;;  %1695 = vmatmul.bf16.vlgmr.msra.gmra.mxu1 %v4187_v57 }
 0x567   :  { %1708 = vmatmul.bf16.vlgmr.msra.gmra.mxu2 %v4187_v57  ;;  %1721 = vmatmul.bf16.vlgmr.msra.gmra.mxu3 %v4187_v57  ;;  %v3824_v14 = vpop.f32.mrf.mxu2  ;;  %v3826_v21 = vpop.f32.mrf.mxu3  ;;  %v3864_v57 = vperm.slane %v1271_v37, 0 }
 0x568   :  { %1835 = vmatpush.bf16.msra.mxu0 %v3623_v23  ;;  %1848 = vmatpush.bf16.msra.mxu1 %v3625_v52  ;;  %4188 = vst [vmem:[#allocation21_spill] sm:$0xff] %v3824_v14  ;;  %v3828_v26 = vpop.f32.mrf.mxu0 }
 0x569   :  { %1861 = vmatpush.bf16.msra.mxu2 %v3627_v1  ;;  %1874 = vmatpush.bf16.msra.mxu3 %v3630_v2  ;;  %4189 = vst [vmem:[#allocation22_spill] sm:$0xff] %v3826_v21  ;;  %v3830_v27 = vpop.f32.mrf.mxu1 }
 0x56a   :  { %4190 = vst [vmem:[#allocation23_spill] sm:$0xff] %v3828_v26 }
 0x56b   :  { %4191 = vst [vmem:[#allocation24_spill] sm:$0xff] %v3830_v27 }
 0x56c   :  { %1836 = vmatpush.bf16.msra.mxu0 %v3635_v12  ;;  %1849 = vmatpush.bf16.msra.mxu1 %v3637_v3 }
 0x56d   :  { %1862 = vmatpush.bf16.msra.mxu2 %v3639_v10  ;;  %1875 = vmatpush.bf16.msra.mxu3 %v3641_v13 }
 0x56f   :  { %v3832_v54 = vpop.f32.mrf.mxu2  ;;  %v3834_v34 = vpop.f32.mrf.mxu3 }
 0x570   :  { %1837 = vmatpush.bf16.msra.mxu0 %v3649_v35  ;;  %1850 = vmatpush.bf16.msra.mxu1 %v3651_v38  ;;  %4192 = vst [vmem:[#allocation25_spill] sm:$0xff] %v3832_v54  ;;  %v3836_v39 = vpop.f32.mrf.mxu0 }
 0x571   :  { %1863 = vmatpush.bf16.msra.mxu2 %v3655_v46  ;;  %1876 = vmatpush.bf16.msra.mxu3 %v3657_v47  ;;  %4193 = vst [vmem:[#allocation26_spill] sm:$0xff] %v3834_v34  ;;  %v3838_v50 = vpop.f32.mrf.mxu1 }
 0x572   :  { %4194 = vst [vmem:[#allocation27_spill] sm:$0xff] %v3836_v39 }
 0x573   :  { %4195 = vst [vmem:[#allocation28_spill] sm:$0xff] %v3838_v50 }
 0x574   :  { %1838 = vmatpush.bf16.msra.mxu0 %v3661_v63  ;;  %1851 = vmatpush.bf16.msra.mxu1 %v3663_v0 }
 0x575   :  { %1864 = vmatpush.bf16.msra.mxu2 %v3667_v7  ;;  %1877 = vmatpush.bf16.msra.mxu3 %v3684_v15 }
 0x577   :  { %v3840_v51 = vpop.f32.mrf.mxu2  ;;  %v3842_v32 = vpop.f32.mrf.mxu3 }
 0x578   :  { %1839 = vmatpush.bf16.msra.mxu0 %v3686_v30  ;;  %1852 = vmatpush.bf16.msra.mxu1 %v3689_v44  ;;  %4196 = vst [vmem:[#allocation29_spill] sm:$0xff] %v3840_v51  ;;  %v3844_v60 = vpop.f32.mrf.mxu0  ;;  %v3874_v51 = vperm.slane %v1271_v37, 2 }
 0x579   :  { %1865 = vmatpush.bf16.msra.mxu2 %v3691_v49  ;;  %1878 = vmatpush.bf16.msra.mxu3 %v3696_v6  ;;  %4197 = vst [vmem:[#allocation30_spill] sm:$0xff] %v3842_v32  ;;  %v3846_v17 = vpop.f32.mrf.mxu1 }
 0x57a   :  { %4198 = vst [vmem:[#allocation31_spill] sm:$0xff] %v3844_v60  ;;  %v1381_v39 = vadd.f32 %v1380_v53, %v3874_v51 }
 0x57b   :  { %4199 = vst [vmem:[#allocation32_spill] sm:$0xff] %v3846_v17  ;;  %v3866_v17 = vperm.slane %v1271_v37, 1 }
 0x57c   :  { %1840 = vmatpush.bf16.msra.mxu0 %v3699_v11  ;;  %1853 = vmatpush.bf16.msra.mxu1 %v3701_v61 }
 0x57d   :  { %1866 = vmatpush.bf16.msra.mxu2 %v3703_v20  ;;  %1879 = vmatpush.bf16.msra.mxu3 %v3706_v19 }
 0x57f   :  { %v3848_v8 = vpop.f32.mrf.mxu2  ;;  %v3850_v16 = vpop.f32.mrf.mxu3 }
 0x580   :  { %1841 = vmatpush.bf16.msra.mxu0 %v3711_v45  ;;  %1854 = vmatpush.bf16.msra.mxu1 %v3713_v22  ;;  %4200 = vst [vmem:[#allocation33_spill] sm:$0xff] %v3848_v8  ;;  %v3852_v28 = vpop.f32.mrf.mxu0  ;;  %v1299_v8 = vadd.f32 %v1298_v40, %v3864_v57 }
 0x581   :  { %1867 = vmatpush.bf16.msra.mxu2 %v3715_v25  ;;  %1880 = vmatpush.bf16.msra.mxu3 %v3722_v59  ;;  %4201 = vst [vmem:[#allocation34_spill] sm:$0xff] %v3850_v16  ;;  %v3854_v31 = vpop.f32.mrf.mxu1  ;;  %v1340_v16 = vadd.f32 %v1339_v62, %v3866_v17 }
 0x582   :  { %4202 = vst [vmem:[#allocation35_spill] sm:$0xff] %v3852_v28 }
 0x583   :  { %4203 = vst [vmem:[#allocation36_spill] sm:$0xff] %v3854_v31 }
 0x584   :  { %1842 = vmatpush.bf16.msra.mxu0 %v3726_v29  ;;  %1855 = vmatpush.bf16.msra.mxu1 %v3729_v58 }
 0x585   :  { %1868 = vmatpush.bf16.msra.mxu2 %v3731_v4  ;;  %1881 = vmatpush.bf16.msra.mxu3 %v3733_v48 }
 0x587   :  { %v3856_v56 = vpop.f32.mrf.mxu2  ;;  %v3858_v43 = vpop.f32.mrf.mxu3 }
 0x588   :  { %4204 = vst [vmem:[#allocation37_spill] sm:$0xff] %v3856_v56 }
 0x589   :  { %4205 = vst [vmem:[#allocation38_spill] sm:$0xff] %v3858_v43 }
 0x5db   :  { %v3860_v41 = vpop.f32.mrf.mxu0  ;;  %v3862_v36 = vpop.f32.mrf.mxu1 }
 0x5dc   :  { %4206 = vst [vmem:[#allocation39_spill] sm:$0xff] %v3860_v41  ;;  %v3876_v41 = vperm.slane %v1271_v37, 3 }
 0x5dd   :  { %4207 = vst [vmem:[#allocation40_spill] sm:$0xff] %v3862_v36 }
 0x5de   :  { %v1422_v40 = vadd.f32 %v1421_v55, %v3876_v41 }
 0x5e2   :  { %v3870_v28 = vpop.f32.mrf.mxu2  ;;  %v3872_v31 = vpop.f32.mrf.mxu3 }
 0x5e3   :  { %4208 = vst [vmem:[#allocation41_spill] sm:$0xff] %v3870_v28  ;;  %v1683_v56 = vpop.f32.mrf.mxu0  ;;  %v1696_v60 = vpop.f32.mrf.mxu1 }
 0x5e4   :  { %4209 = vst [vmem:[#allocation42_spill] sm:$0xff] %v3872_v31  ;;  %v1726_v43 = vadd.f32 %v1683_v56, %v1299_v8  ;;  %v1727_v32 = vadd.f32 %v1696_v60, %v1340_v16 }
 0x5e6   :  { %v1730_v36 = vmul.f32 0.5, %v1726_v43  ;;  %v1734_v50 = vmul.f32 0.5, %v1727_v32 }
 0x5e8   :  { %2792 = vtanh.f32 %v1730_v36 }
 0x5e9   :  { %2794 = vtanh.f32 %v1734_v50 }
 0x5ea   :  { %v1709_v62 = vpop.f32.mrf.mxu2  ;;  %v1722_v28 = vpop.f32.mrf.mxu3 }
 0x5eb   :  { %v1728_v34 = vadd.f32 %v1709_v62, %v1381_v39  ;;  %v1729_v31 = vadd.f32 %v1722_v28, %v1422_v40  ;;  %v1685_v54 = vpop.f32.mrf.mxu0  ;;  %v1698_v27 = vpop.f32.mrf.mxu1 }
 0x5ed   :  { %2796 = vtanh.f32 %v1728_v34  ;;  %v1739_v60 = vmul.f32 0.5, %v1729_v31 }
 0x5ee   :  { %v2793_v8 = vpop.eup %2792 }
 0x5ef   :  { %v2795_v16 = vpop.eup %2794  ;;  %v1732_v56 = vadd.f32 1.0, %v2793_v8  ;;  %2798 = vtanh.f32 %v1739_v60 }
 0x5f0   :  { %v1736_v37 = vadd.f32 1.0, %v2795_v16 }
 0x5f1   :  { %v1733_v32 = vmul.f32 0.5, %v1732_v56  ;;  %v1384_v56 = vadd.f32 %v3816_v42, %v3874_v51 }
 0x5f2   :  { %v1737_v43 = vmul.f32 0.5, %v1736_v37  ;;  %v1711_v36 = vpop.f32.mrf.mxu2  ;;  %v1724_v53 = vpop.f32.mrf.mxu3  ;;  %v1425_v37 = vadd.f32 %v3818_v33, %v3876_v41 }
 0x5f3   :  { %v2797_v26 = vpop.eup %2796 }
 0x5f4   :  { %v1743_v55 = vmul.f32 0.0, %v1737_v43  ;;  %v1744_v50 = vmul.f32 %v2797_v26, %v1733_v32  ;;  %v1343_v26 = vadd.f32 %v3814_v18, %v3866_v17 }
 0x5f5   :  { %v2799_v21 = vpop.eup %2798 }
 0x5f6   :  { %v3880_v14 = vadd.f32 %v1744_v50, %v1743_v55  ;;  %v1741_v27 = vadd.f32 1.0, %v2799_v21  ;;  %v1302_v21 = vadd.f32 %v3812_v24, %v3864_v57 }
 0x5f8   :  { %2800 = vtanh.f32 %v3880_v14  ;;  %v1742_v54 = vmul.f32 0.5, %v1741_v27 }
 0x5fe   :  { %v2801_v34 = vpop.eup %2800 }
 0x5ff   :  { %v1747_v39 = vmul.f32 %v2801_v34, %v1742_v54 }
 0x601   :  { %1748 = vst [vmem:[#allocation12] sm:$0xff] %v1747_v39  ;;  %v1753_v28 = vpack.c.bf16 %v1747_v39, %v1747_v39 }
 0x603   :  { %1762 = vmatmul.bf16.vlgmr.msrb.gmra.mxu0 %v1753_v28  ;;  %1775 = vmatmul.bf16.vlgmr.msrb.gmra.mxu1 %v1753_v28 }
 0x604   :  { %1788 = vmatmul.bf16.vlgmr.msrb.gmra.mxu2 %v1753_v28  ;;  %1801 = vmatmul.bf16.vlgmr.msrb.gmra.mxu3 %v1753_v28 }
 0x605   :  { %1916 = vmatpush.bf16.msrb.mxu0 %v3623_v23  ;;  %1929 = vmatpush.bf16.msrb.mxu1 %v3625_v52 }
 0x606   :  { %1942 = vmatpush.bf16.msrb.mxu2 %v3627_v1  ;;  %1955 = vmatpush.bf16.msrb.mxu3 %v3630_v2 }
 0x609   :  { %1917 = vmatpush.bf16.msrb.mxu0 %v3635_v12  ;;  %1930 = vmatpush.bf16.msrb.mxu1 %v3637_v3 }
 0x60a   :  { %1943 = vmatpush.bf16.msrb.mxu2 %v3639_v10  ;;  %1956 = vmatpush.bf16.msrb.mxu3 %v3641_v13 }
 0x60d   :  { %1918 = vmatpush.bf16.msrb.mxu0 %v3649_v35  ;;  %1931 = vmatpush.bf16.msrb.mxu1 %v3651_v38 }
 0x60e   :  { %1944 = vmatpush.bf16.msrb.mxu2 %v3655_v46  ;;  %1957 = vmatpush.bf16.msrb.mxu3 %v3657_v47 }
 0x611   :  { %1919 = vmatpush.bf16.msrb.mxu0 %v3661_v63  ;;  %1932 = vmatpush.bf16.msrb.mxu1 %v3663_v0 }
 0x612   :  { %1945 = vmatpush.bf16.msrb.mxu2 %v3667_v7  ;;  %1958 = vmatpush.bf16.msrb.mxu3 %v3684_v15 }
 0x615   :  { %1920 = vmatpush.bf16.msrb.mxu0 %v3686_v30  ;;  %1933 = vmatpush.bf16.msrb.mxu1 %v3689_v44 }
 0x616   :  { %1946 = vmatpush.bf16.msrb.mxu2 %v3691_v49  ;;  %1959 = vmatpush.bf16.msrb.mxu3 %v3696_v6 }
 0x619   :  { %1921 = vmatpush.bf16.msrb.mxu0 %v3699_v11  ;;  %1934 = vmatpush.bf16.msrb.mxu1 %v3701_v61 }
 0x61a   :  { %1947 = vmatpush.bf16.msrb.mxu2 %v3703_v20  ;;  %1960 = vmatpush.bf16.msrb.mxu3 %v3706_v19 }
 0x61d   :  { %1922 = vmatpush.bf16.msrb.mxu0 %v3711_v45  ;;  %1935 = vmatpush.bf16.msrb.mxu1 %v3713_v22 }
 0x61e   :  { %1948 = vmatpush.bf16.msrb.mxu2 %v3715_v25  ;;  %1961 = vmatpush.bf16.msrb.mxu3 %v3722_v59 }
 0x621   :  { %1923 = vmatpush.bf16.msrb.mxu0 %v3726_v29  ;;  %1936 = vmatpush.bf16.msrb.mxu1 %v3729_v58 }
 0x622   :  { %1949 = vmatpush.bf16.msrb.mxu2 %v3731_v4  ;;  %1962 = vmatpush.bf16.msrb.mxu3 %v3733_v48 }
 0x680   :  { %v1763_v31 = vpop.f32.mrf.mxu0  ;;  %v1776_v40 = vpop.f32.mrf.mxu1 }
 0x681   :  { %v1806_v62 = vadd.f32 %v1763_v31, %v1302_v21  ;;  %v1807_v60 = vadd.f32 %v1776_v40, %v1343_v26 }
 0x683   :  { %v1810_v8 = vmul.f32 0.5, %v1806_v62  ;;  %v1814_v16 = vmul.f32 0.5, %v1807_v60 }
 0x685   :  { %2802 = vtanh.f32 %v1810_v8 }
 0x686   :  { %2804 = vtanh.f32 %v1814_v16 }
 0x687   :  { %v1789_v32 = vpop.f32.mrf.mxu2  ;;  %v1802_v43 = vpop.f32.mrf.mxu3 }
 0x688   :  { %v1808_v24 = vadd.f32 %v1789_v32, %v1384_v56  ;;  %v1809_v36 = vadd.f32 %v1802_v43, %v1425_v37  ;;  %v1765_v53 = vpop.f32.mrf.mxu0  ;;  %v1778_v18 = vpop.f32.mrf.mxu1  ;;  %v1346_v32 = vadd.f32 %v3822_v9, %v3866_v17 }
 0x68a   :  { %2806 = vtanh.f32 %v1808_v24  ;;  %v1819_v55 = vmul.f32 0.5, %v1809_v36 }
 0x68b   :  { %v2803_v50 = vpop.eup %2802 }
 0x68c   :  { %v2805_v27 = vpop.eup %2804  ;;  %v1812_v54 = vadd.f32 1.0, %v2803_v50  ;;  %2808 = vtanh.f32 %v1819_v55  ;;  %v4210_v50 = vld [vmem:[#allocation21_spill] sm:$0xff] }
 0x68d   :  { %v1816_v34 = vadd.f32 1.0, %v2805_v27  ;;  %v1387_v27 = vadd.f32 %v4210_v50, %v3874_v51 }
 0x68e   :  { %v1813_v39 = vmul.f32 0.5, %v1812_v54  ;;  %v4211_v54 = vld [vmem:[#allocation22_spill] sm:$0xff] }
 0x68f   :  { %v1817_v28 = vmul.f32 0.5, %v1816_v34  ;;  %v1791_v42 = vpop.f32.mrf.mxu2  ;;  %v1804_v21 = vpop.f32.mrf.mxu3  ;;  %v1428_v34 = vadd.f32 %v4211_v54, %v3876_v41 }
 0x690   :  { %v2807_v26 = vpop.eup %2806 }
 0x691   :  { %v1823_v33 = vmul.f32 %v1817_v28, %v3880_v14  ;;  %v1824_v31 = vmul.f32 %v2807_v26, %v1813_v39  ;;  %v1305_v14 = vadd.f32 %v3820_v5, %v3864_v57 }
 0x692   :  { %v2809_v40 = vpop.eup %2808 }
 0x693   :  { %v3924_v62 = vadd.f32 %v1824_v31, %v1823_v33  ;;  %v1821_v60 = vadd.f32 1.0, %v2809_v40 }
 0x695   :  { %2810 = vtanh.f32 %v3924_v62  ;;  %v1822_v8 = vmul.f32 0.5, %v1821_v60 }
 0x69b   :  { %v2811_v16 = vpop.eup %2810 }
 0x69c   :  { %v1827_v56 = vmul.f32 %v2811_v16, %v1822_v8 }
 0x69e   :  { %1829 = vst [vmem:[#allocation12 + $0x8] sm:$0xff] %v1827_v56  ;;  %v1834_v37 = vpack.c.bf16 %v1827_v56, %v1827_v56 }
 0x6a0   :  { %1843 = vmatmul.bf16.vlgmr.msra.gmra.mxu0 %v1834_v37  ;;  %1856 = vmatmul.bf16.vlgmr.msra.gmra.mxu1 %v1834_v37 }
 0x6a1   :  { %1869 = vmatmul.bf16.vlgmr.msra.gmra.mxu2 %v1834_v37  ;;  %1882 = vmatmul.bf16.vlgmr.msra.gmra.mxu3 %v1834_v37 }
 0x6a2   :  { %1997 = vmatpush.bf16.msra.mxu0 %v3623_v23  ;;  %2010 = vmatpush.bf16.msra.mxu1 %v3625_v52 }
 0x6a3   :  { %2023 = vmatpush.bf16.msra.mxu2 %v3627_v1  ;;  %2036 = vmatpush.bf16.msra.mxu3 %v3630_v2 }
 0x6a6   :  { %1998 = vmatpush.bf16.msra.mxu0 %v3635_v12  ;;  %2011 = vmatpush.bf16.msra.mxu1 %v3637_v3 }
 0x6a7   :  { %2024 = vmatpush.bf16.msra.mxu2 %v3639_v10  ;;  %2037 = vmatpush.bf16.msra.mxu3 %v3641_v13 }
 0x6aa   :  { %1999 = vmatpush.bf16.msra.mxu0 %v3649_v35  ;;  %2012 = vmatpush.bf16.msra.mxu1 %v3651_v38 }
 0x6ab   :  { %2025 = vmatpush.bf16.msra.mxu2 %v3655_v46  ;;  %2038 = vmatpush.bf16.msra.mxu3 %v3657_v47 }
 0x6ae   :  { %2000 = vmatpush.bf16.msra.mxu0 %v3661_v63  ;;  %2013 = vmatpush.bf16.msra.mxu1 %v3663_v0 }
 0x6af   :  { %2026 = vmatpush.bf16.msra.mxu2 %v3667_v7  ;;  %2039 = vmatpush.bf16.msra.mxu3 %v3684_v15 }
 0x6b2   :  { %2001 = vmatpush.bf16.msra.mxu0 %v3686_v30  ;;  %2014 = vmatpush.bf16.msra.mxu1 %v3689_v44 }
 0x6b3   :  { %2027 = vmatpush.bf16.msra.mxu2 %v3691_v49  ;;  %2040 = vmatpush.bf16.msra.mxu3 %v3696_v6 }
 0x6b6   :  { %2002 = vmatpush.bf16.msra.mxu0 %v3699_v11  ;;  %2015 = vmatpush.bf16.msra.mxu1 %v3701_v61 }
 0x6b7   :  { %2028 = vmatpush.bf16.msra.mxu2 %v3703_v20  ;;  %2041 = vmatpush.bf16.msra.mxu3 %v3706_v19 }
 0x6ba   :  { %2003 = vmatpush.bf16.msra.mxu0 %v3711_v45  ;;  %2016 = vmatpush.bf16.msra.mxu1 %v3713_v22 }
 0x6bb   :  { %2029 = vmatpush.bf16.msra.mxu2 %v3715_v25  ;;  %2042 = vmatpush.bf16.msra.mxu3 %v3722_v59 }
 0x6be   :  { %2004 = vmatpush.bf16.msra.mxu0 %v3726_v29  ;;  %2017 = vmatpush.bf16.msra.mxu1 %v3729_v58 }
 0x6bf   :  { %2030 = vmatpush.bf16.msra.mxu2 %v3731_v4  ;;  %2043 = vmatpush.bf16.msra.mxu3 %v3733_v48 }
 0x71d   :  { %v1844_v43 = vpop.f32.mrf.mxu0  ;;  %v1857_v24 = vpop.f32.mrf.mxu1 }
 0x71e   :  { %v1887_v36 = vadd.f32 %v1844_v43, %v1305_v14  ;;  %v1888_v53 = vadd.f32 %v1857_v24, %v1346_v32 }
 0x720   :  { %v1891_v18 = vmul.f32 0.5, %v1887_v36  ;;  %v1895_v55 = vmul.f32 0.5, %v1888_v53 }
 0x722   :  { %2812 = vtanh.f32 %v1891_v18 }
 0x723   :  { %2814 = vtanh.f32 %v1895_v55 }
 0x724   :  { %v1870_v39 = vpop.f32.mrf.mxu2  ;;  %v1883_v28 = vpop.f32.mrf.mxu3 }
 0x725   :  { %v1889_v5 = vadd.f32 %v1870_v39, %v1387_v27  ;;  %v1890_v42 = vadd.f32 %v1883_v28, %v1428_v34  ;;  %v1846_v21 = vpop.f32.mrf.mxu0  ;;  %v1859_v9 = vpop.f32.mrf.mxu1  ;;  %v4213_v34 = vld [vmem:[#allocation24_spill] sm:$0xff] }
 0x726   :  { %v1349_v39 = vadd.f32 %v4213_v34, %v3866_v17 }
 0x727   :  { %2816 = vtanh.f32 %v1889_v5  ;;  %v1900_v26 = vmul.f32 0.5, %v1890_v42 }
 0x728   :  { %v2813_v33 = vpop.eup %2812 }
 0x729   :  { %v2815_v31 = vpop.eup %2814  ;;  %v1893_v40 = vadd.f32 1.0, %v2813_v33  ;;  %2818 = vtanh.f32 %v1900_v26  ;;  %v4214_v33 = vld [vmem:[#allocation25_spill] sm:$0xff] }
 0x72a   :  { %v1897_v60 = vadd.f32 1.0, %v2815_v31  ;;  %v1390_v31 = vadd.f32 %v4214_v33, %v3874_v51 }
 0x72b   :  { %v1894_v8 = vmul.f32 0.5, %v1893_v40  ;;  %v4215_v40 = vld [vmem:[#allocation26_spill] sm:$0xff] }
 0x72c   :  { %v1898_v16 = vmul.f32 0.5, %v1897_v60  ;;  %v1872_v56 = vpop.f32.mrf.mxu2  ;;  %v1885_v37 = vpop.f32.mrf.mxu3  ;;  %v1431_v60 = vadd.f32 %v4215_v40, %v3876_v41 }
 0x72d   :  { %v2817_v14 = vpop.eup %2816 }
 0x72e   :  { %v1904_v32 = vmul.f32 %v1898_v16, %v3924_v62  ;;  %v1905_v43 = vmul.f32 %v2817_v14, %v1894_v8  ;;  %v4212_v62 = vld [vmem:[#allocation23_spill] sm:$0xff] }
 0x72f   :  { %v2819_v24 = vpop.eup %2818  ;;  %v1308_v54 = vadd.f32 %v4212_v62, %v3864_v57 }
 0x730   :  { %v3968_v36 = vadd.f32 %v1905_v43, %v1904_v32  ;;  %v1902_v53 = vadd.f32 1.0, %v2819_v24 }
 0x732   :  { %2820 = vtanh.f32 %v3968_v36  ;;  %v1903_v18 = vmul.f32 0.5, %v1902_v53 }
 0x738   :  { %v2821_v55 = vpop.eup %2820 }
 0x739   :  { %v1908_v50 = vmul.f32 %v2821_v55, %v1903_v18 }
 0x73b   :  { %1910 = vst [vmem:[#allocation12 + $0x10] sm:$0xff] %v1908_v50  ;;  %v1915_v27 = vpack.c.bf16 %v1908_v50, %v1908_v50 }
 0x73d   :  { %1924 = vmatmul.bf16.vlgmr.msrb.gmra.mxu0 %v1915_v27  ;;  %1937 = vmatmul.bf16.vlgmr.msrb.gmra.mxu1 %v1915_v27 }
 0x73e   :  { %1950 = vmatmul.bf16.vlgmr.msrb.gmra.mxu2 %v1915_v27  ;;  %1963 = vmatmul.bf16.vlgmr.msrb.gmra.mxu3 %v1915_v27 }
 0x73f   :  { %2078 = vmatpush.bf16.msrb.mxu0 %v3623_v23  ;;  %2091 = vmatpush.bf16.msrb.mxu1 %v3625_v52 }
 0x740   :  { %2104 = vmatpush.bf16.msrb.mxu2 %v3627_v1  ;;  %2117 = vmatpush.bf16.msrb.mxu3 %v3630_v2 }
 0x743   :  { %2079 = vmatpush.bf16.msrb.mxu0 %v3635_v12  ;;  %2092 = vmatpush.bf16.msrb.mxu1 %v3637_v3 }
 0x744   :  { %2105 = vmatpush.bf16.msrb.mxu2 %v3639_v10  ;;  %2118 = vmatpush.bf16.msrb.mxu3 %v3641_v13 }
 0x747   :  { %2080 = vmatpush.bf16.msrb.mxu0 %v3649_v35  ;;  %2093 = vmatpush.bf16.msrb.mxu1 %v3651_v38 }
 0x748   :  { %2106 = vmatpush.bf16.msrb.mxu2 %v3655_v46  ;;  %2119 = vmatpush.bf16.msrb.mxu3 %v3657_v47 }
 0x74b   :  { %2081 = vmatpush.bf16.msrb.mxu0 %v3661_v63  ;;  %2094 = vmatpush.bf16.msrb.mxu1 %v3663_v0 }
 0x74c   :  { %2107 = vmatpush.bf16.msrb.mxu2 %v3667_v7  ;;  %2120 = vmatpush.bf16.msrb.mxu3 %v3684_v15 }
 0x74f   :  { %2082 = vmatpush.bf16.msrb.mxu0 %v3686_v30  ;;  %2095 = vmatpush.bf16.msrb.mxu1 %v3689_v44 }
 0x750   :  { %2108 = vmatpush.bf16.msrb.mxu2 %v3691_v49  ;;  %2121 = vmatpush.bf16.msrb.mxu3 %v3696_v6 }
 0x753   :  { %2083 = vmatpush.bf16.msrb.mxu0 %v3699_v11  ;;  %2096 = vmatpush.bf16.msrb.mxu1 %v3701_v61 }
 0x754   :  { %2109 = vmatpush.bf16.msrb.mxu2 %v3703_v20  ;;  %2122 = vmatpush.bf16.msrb.mxu3 %v3706_v19 }
 0x757   :  { %2084 = vmatpush.bf16.msrb.mxu0 %v3711_v45  ;;  %2097 = vmatpush.bf16.msrb.mxu1 %v3713_v22 }
 0x758   :  { %2110 = vmatpush.bf16.msrb.mxu2 %v3715_v25  ;;  %2123 = vmatpush.bf16.msrb.mxu3 %v3722_v59 }
 0x75b   :  { %2085 = vmatpush.bf16.msrb.mxu0 %v3726_v29  ;;  %2098 = vmatpush.bf16.msrb.mxu1 %v3729_v58 }
 0x75c   :  { %2111 = vmatpush.bf16.msrb.mxu2 %v3731_v4  ;;  %2124 = vmatpush.bf16.msrb.mxu3 %v3733_v48 }
 0x7ba   :  { %v1925_v28 = vpop.f32.mrf.mxu0  ;;  %v1938_v5 = vpop.f32.mrf.mxu1 }
 0x7bb   :  { %v1968_v42 = vadd.f32 %v1925_v28, %v1308_v54  ;;  %v1969_v21 = vadd.f32 %v1938_v5, %v1349_v39 }
 0x7bd   :  { %v1972_v9 = vmul.f32 0.5, %v1968_v42  ;;  %v1976_v26 = vmul.f32 0.5, %v1969_v21 }
 0x7bf   :  { %2822 = vtanh.f32 %v1972_v9 }
 0x7c0   :  { %2824 = vtanh.f32 %v1976_v26 }
 0x7c1   :  { %v1951_v8 = vpop.f32.mrf.mxu2  ;;  %v1964_v16 = vpop.f32.mrf.mxu3 }
 0x7c2   :  { %v1970_v56 = vadd.f32 %v1951_v8, %v1390_v31  ;;  %v1971_v37 = vadd.f32 %v1964_v16, %v1431_v60  ;;  %v1927_v14 = vpop.f32.mrf.mxu0  ;;  %v1940_v32 = vpop.f32.mrf.mxu1  ;;  %v4217_v60 = vld [vmem:[#allocation28_spill] sm:$0xff] }
 0x7c3   :  { %v1352_v8 = vadd.f32 %v4217_v60, %v3866_v17 }
 0x7c4   :  { %2826 = vtanh.f32 %v1970_v56  ;;  %v1981_v43 = vmul.f32 0.5, %v1971_v37 }
 0x7c5   :  { %v2823_v24 = vpop.eup %2822 }
 0x7c6   :  { %v2825_v53 = vpop.eup %2824  ;;  %v1974_v18 = vadd.f32 1.0, %v2823_v24  ;;  %2828 = vtanh.f32 %v1981_v43  ;;  %v4218_v24 = vld [vmem:[#allocation29_spill] sm:$0xff] }
 0x7c7   :  { %v1978_v55 = vadd.f32 1.0, %v2825_v53  ;;  %v1393_v53 = vadd.f32 %v4218_v24, %v3874_v51 }
 0x7c8   :  { %v1975_v50 = vmul.f32 0.5, %v1974_v18  ;;  %v4219_v18 = vld [vmem:[#allocation30_spill] sm:$0xff] }
 0x7c9   :  { %v1979_v27 = vmul.f32 0.5, %v1978_v55  ;;  %v1953_v62 = vpop.f32.mrf.mxu2  ;;  %v1966_v54 = vpop.f32.mrf.mxu3  ;;  %v1434_v55 = vadd.f32 %v4219_v18, %v3876_v41 }
 0x7ca   :  { %v2827_v34 = vpop.eup %2826 }
 0x7cb   :  { %v1985_v39 = vmul.f32 %v1979_v27, %v3968_v36  ;;  %v1986_v28 = vmul.f32 %v2827_v34, %v1975_v50  ;;  %v4216_v36 = vld [vmem:[#allocation27_spill] sm:$0xff] }
 0x7cc   :  { %v2829_v5 = vpop.eup %2828  ;;  %v1311_v40 = vadd.f32 %v4216_v36, %v3864_v57 }
 0x7cd   :  { %v4012_v42 = vadd.f32 %v1986_v28, %v1985_v39  ;;  %v1983_v21 = vadd.f32 1.0, %v2829_v5 }
 0x7cf   :  { %2830 = vtanh.f32 %v4012_v42  ;;  %v1984_v9 = vmul.f32 0.5, %v1983_v21 }
 0x7d5   :  { %v2831_v26 = vpop.eup %2830 }
 0x7d6   :  { %v1989_v33 = vmul.f32 %v2831_v26, %v1984_v9 }
 0x7d8   :  { %1991 = vst [vmem:[#allocation12 + $0x18] sm:$0xff] %v1989_v33  ;;  %v1996_v31 = vpack.c.bf16 %v1989_v33, %v1989_v33 }
 0x7da   :  { %2005 = vmatmul.bf16.vlgmr.msra.gmra.mxu0 %v1996_v31  ;;  %2018 = vmatmul.bf16.vlgmr.msra.gmra.mxu1 %v1996_v31 }
 0x7db   :  { %2031 = vmatmul.bf16.vlgmr.msra.gmra.mxu2 %v1996_v31  ;;  %2044 = vmatmul.bf16.vlgmr.msra.gmra.mxu3 %v1996_v31 }
 0x7dc   :  { %2159 = vmatpush.bf16.msra.mxu0 %v3623_v23  ;;  %2172 = vmatpush.bf16.msra.mxu1 %v3625_v52 }
 0x7dd   :  { %2185 = vmatpush.bf16.msra.mxu2 %v3627_v1  ;;  %2198 = vmatpush.bf16.msra.mxu3 %v3630_v2 }
 0x7e0   :  { %2160 = vmatpush.bf16.msra.mxu0 %v3635_v12  ;;  %2173 = vmatpush.bf16.msra.mxu1 %v3637_v3 }
 0x7e1   :  { %2186 = vmatpush.bf16.msra.mxu2 %v3639_v10  ;;  %2199 = vmatpush.bf16.msra.mxu3 %v3641_v13 }
 0x7e4   :  { %2161 = vmatpush.bf16.msra.mxu0 %v3649_v35  ;;  %2174 = vmatpush.bf16.msra.mxu1 %v3651_v38 }
 0x7e5   :  { %2187 = vmatpush.bf16.msra.mxu2 %v3655_v46  ;;  %2200 = vmatpush.bf16.msra.mxu3 %v3657_v47 }
 0x7e8   :  { %2162 = vmatpush.bf16.msra.mxu0 %v3661_v63  ;;  %2175 = vmatpush.bf16.msra.mxu1 %v3663_v0 }
 0x7e9   :  { %2188 = vmatpush.bf16.msra.mxu2 %v3667_v7  ;;  %2201 = vmatpush.bf16.msra.mxu3 %v3684_v15 }
 0x7ec   :  { %2163 = vmatpush.bf16.msra.mxu0 %v3686_v30  ;;  %2176 = vmatpush.bf16.msra.mxu1 %v3689_v44 }
 0x7ed   :  { %2189 = vmatpush.bf16.msra.mxu2 %v3691_v49  ;;  %2202 = vmatpush.bf16.msra.mxu3 %v3696_v6 }
 0x7f0   :  { %2164 = vmatpush.bf16.msra.mxu0 %v3699_v11  ;;  %2177 = vmatpush.bf16.msra.mxu1 %v3701_v61 }
 0x7f1   :  { %2190 = vmatpush.bf16.msra.mxu2 %v3703_v20  ;;  %2203 = vmatpush.bf16.msra.mxu3 %v3706_v19 }
 0x7f4   :  { %2165 = vmatpush.bf16.msra.mxu0 %v3711_v45  ;;  %2178 = vmatpush.bf16.msra.mxu1 %v3713_v22 }
 0x7f5   :  { %2191 = vmatpush.bf16.msra.mxu2 %v3715_v25  ;;  %2204 = vmatpush.bf16.msra.mxu3 %v3722_v59 }
 0x7f8   :  { %2166 = vmatpush.bf16.msra.mxu0 %v3726_v29  ;;  %2179 = vmatpush.bf16.msra.mxu1 %v3729_v58 }
 0x7f9   :  { %2192 = vmatpush.bf16.msra.mxu2 %v3731_v4  ;;  %2205 = vmatpush.bf16.msra.mxu3 %v3733_v48 }
 0x857   :  { %v2006_v16 = vpop.f32.mrf.mxu0  ;;  %v2019_v56 = vpop.f32.mrf.mxu1 }
 0x858   :  { %v2049_v37 = vadd.f32 %v2006_v16, %v1311_v40  ;;  %v2050_v14 = vadd.f32 %v2019_v56, %v1352_v8 }
 0x85a   :  { %v2053_v32 = vmul.f32 0.5, %v2049_v37  ;;  %v2057_v43 = vmul.f32 0.5, %v2050_v14 }
 0x85c   :  { %2832 = vtanh.f32 %v2053_v32 }
 0x85d   :  { %2834 = vtanh.f32 %v2057_v43 }
 0x85e   :  { %v2032_v50 = vpop.f32.mrf.mxu2  ;;  %v2045_v27 = vpop.f32.mrf.mxu3 }
 0x85f   :  { %v2051_v62 = vadd.f32 %v2032_v50, %v1393_v53  ;;  %v2052_v54 = vadd.f32 %v2045_v27, %v1434_v55  ;;  %v2008_v34 = vpop.f32.mrf.mxu0  ;;  %v2021_v39 = vpop.f32.mrf.mxu1 }
 0x860   :  { %v4224_v34 = vld [vmem:[#allocation35_spill] sm:$0xff] }
 0x861   :  { %2836 = vtanh.f32 %v2051_v62  ;;  %v2062_v28 = vmul.f32 0.5, %v2052_v54  ;;  %v1317_v39 = vadd.f32 %v4224_v34, %v3864_v57 }
 0x862   :  { %v2833_v5 = vpop.eup %2832 }
 0x863   :  { %v2835_v21 = vpop.eup %2834  ;;  %v2055_v9 = vadd.f32 1.0, %v2833_v5  ;;  %2838 = vtanh.f32 %v2062_v28  ;;  %v4225_v28 = vld [vmem:[#allocation36_spill] sm:$0xff] }
 0x864   :  { %v2059_v26 = vadd.f32 1.0, %v2835_v21  ;;  %v1358_v5 = vadd.f32 %v4225_v28, %v3866_v17 }
 0x865   :  { %v2056_v33 = vmul.f32 0.5, %v2055_v9 }
 0x866   :  { %v2060_v31 = vmul.f32 0.5, %v2059_v26  ;;  %v2034_v36 = vpop.f32.mrf.mxu2  ;;  %v2047_v40 = vpop.f32.mrf.mxu3 }
 0x867   :  { %v2837_v60 = vpop.eup %2836  ;;  %v4226_v40 = vld [vmem:[#allocation37_spill] sm:$0xff] }
 0x868   :  { %v2066_v8 = vmul.f32 %v2060_v31, %v4012_v42  ;;  %v2067_v16 = vmul.f32 %v2837_v60, %v2056_v33  ;;  %v1399_v60 = vadd.f32 %v4226_v40, %v3874_v51 }
 0x869   :  { %v2839_v56 = vpop.eup %2838 }
 0x86a   :  { %v4056_v37 = vadd.f32 %v2067_v16, %v2066_v8  ;;  %v2064_v14 = vadd.f32 1.0, %v2839_v56  ;;  %v4227_v8 = vld [vmem:[#allocation38_spill] sm:$0xff] }
 0x86b   :  { %v1440_v16 = vadd.f32 %v4227_v8, %v3876_v41 }
 0x86c   :  { %2840 = vtanh.f32 %v4056_v37  ;;  %v2065_v32 = vmul.f32 0.5, %v2064_v14 }
 0x872   :  { %v2841_v43 = vpop.eup %2840 }
 0x873   :  { %v2070_v24 = vmul.f32 %v2841_v43, %v2065_v32 }
 0x875   :  { %2072 = vst [vmem:[#allocation12 + $0x20] sm:$0xff] %v2070_v24  ;;  %v2077_v53 = vpack.c.bf16 %v2070_v24, %v2070_v24 }
 0x877   :  { %2086 = vmatmul.bf16.vlgmr.msrb.gmra.mxu0 %v2077_v53  ;;  %2099 = vmatmul.bf16.vlgmr.msrb.gmra.mxu1 %v2077_v53 }
 0x878   :  { %2112 = vmatmul.bf16.vlgmr.msrb.gmra.mxu2 %v2077_v53  ;;  %2125 = vmatmul.bf16.vlgmr.msrb.gmra.mxu3 %v2077_v53 }
 0x879   :  { %2240 = vmatpush.bf16.msrb.mxu0 %v3623_v23  ;;  %2253 = vmatpush.bf16.msrb.mxu1 %v3625_v52  ;;  %v4220_v23 = vld [vmem:[#allocation31_spill] sm:$0xff] }
 0x87a   :  { %2266 = vmatpush.bf16.msrb.mxu2 %v3627_v1  ;;  %2279 = vmatpush.bf16.msrb.mxu3 %v3630_v2  ;;  %v1314_v52 = vadd.f32 %v4220_v23, %v3864_v57  ;;  %v4221_v1 = vld [vmem:[#allocation32_spill] sm:$0xff] }
 0x87b   :  { %v1355_v2 = vadd.f32 %v4221_v1, %v3866_v17 }
 0x87d   :  { %2241 = vmatpush.bf16.msrb.mxu0 %v3635_v12  ;;  %2254 = vmatpush.bf16.msrb.mxu1 %v3637_v3 }
 0x87e   :  { %2267 = vmatpush.bf16.msrb.mxu2 %v3639_v10  ;;  %2280 = vmatpush.bf16.msrb.mxu3 %v3641_v13 }
 0x881   :  { %2242 = vmatpush.bf16.msrb.mxu0 %v3649_v35  ;;  %2255 = vmatpush.bf16.msrb.mxu1 %v3651_v38 }
 0x882   :  { %2268 = vmatpush.bf16.msrb.mxu2 %v3655_v46  ;;  %2281 = vmatpush.bf16.msrb.mxu3 %v3657_v47  ;;  %v4222_v46 = vld [vmem:[#allocation33_spill] sm:$0xff] }
 0x883   :  { %v1396_v47 = vadd.f32 %v4222_v46, %v3874_v51 }
 0x885   :  { %2243 = vmatpush.bf16.msrb.mxu0 %v3661_v63  ;;  %2256 = vmatpush.bf16.msrb.mxu1 %v3663_v0  ;;  %v4223_v63 = vld [vmem:[#allocation34_spill] sm:$0xff] }
 0x886   :  { %2269 = vmatpush.bf16.msrb.mxu2 %v3667_v7  ;;  %2282 = vmatpush.bf16.msrb.mxu3 %v3684_v15  ;;  %v1437_v0 = vadd.f32 %v4223_v63, %v3876_v41 }
 0x889   :  { %2244 = vmatpush.bf16.msrb.mxu0 %v3686_v30  ;;  %2257 = vmatpush.bf16.msrb.mxu1 %v3689_v44 }
 0x88a   :  { %2270 = vmatpush.bf16.msrb.mxu2 %v3691_v49  ;;  %2283 = vmatpush.bf16.msrb.mxu3 %v3696_v6 }
 0x88d   :  { %2245 = vmatpush.bf16.msrb.mxu0 %v3699_v11  ;;  %2258 = vmatpush.bf16.msrb.mxu1 %v3701_v61 }
 0x88e   :  { %2271 = vmatpush.bf16.msrb.mxu2 %v3703_v20  ;;  %2284 = vmatpush.bf16.msrb.mxu3 %v3706_v19 }
 0x891   :  { %2246 = vmatpush.bf16.msrb.mxu0 %v3711_v45  ;;  %2259 = vmatpush.bf16.msrb.mxu1 %v3713_v22 }
 0x892   :  { %2272 = vmatpush.bf16.msrb.mxu2 %v3715_v25  ;;  %2285 = vmatpush.bf16.msrb.mxu3 %v3722_v59 }
 0x895   :  { %2247 = vmatpush.bf16.msrb.mxu0 %v3726_v29  ;;  %2260 = vmatpush.bf16.msrb.mxu1 %v3729_v58 }
 0x896   :  { %2273 = vmatpush.bf16.msrb.mxu2 %v3731_v4  ;;  %2286 = vmatpush.bf16.msrb.mxu3 %v3733_v48 }
 0x8f4   :  { %v2087_v12 = vpop.f32.mrf.mxu0  ;;  %v2100_v3 = vpop.f32.mrf.mxu1 }
 0x8f5   :  { %v2130_v10 = vadd.f32 %v2087_v12, %v1314_v52  ;;  %v2131_v13 = vadd.f32 %v2100_v3, %v1355_v2 }
 0x8f7   :  { %v2134_v35 = vmul.f32 0.5, %v2130_v10  ;;  %v2138_v38 = vmul.f32 0.5, %v2131_v13 }
 0x8f9   :  { %2842 = vtanh.f32 %v2134_v35 }
 0x8fa   :  { %2844 = vtanh.f32 %v2138_v38 }
 0x8fb   :  { %v2113_v7 = vpop.f32.mrf.mxu2  ;;  %v2126_v15 = vpop.f32.mrf.mxu3 }
 0x8fc   :  { %v2132_v30 = vadd.f32 %v2113_v7, %v1396_v47  ;;  %v2133_v44 = vadd.f32 %v2126_v15, %v1437_v0  ;;  %v2089_v49 = vpop.f32.mrf.mxu0  ;;  %v2102_v6 = vpop.f32.mrf.mxu1 }
 0x8fd   :  { %v4228_v49 = vld [vmem:[#allocation39_spill] sm:$0xff] }
 0x8fe   :  { %2846 = vtanh.f32 %v2132_v30  ;;  %v2143_v11 = vmul.f32 0.5, %v2133_v44  ;;  %v1320_v6 = vadd.f32 %v4228_v49, %v3864_v57 }
 0x8ff   :  { %v2843_v61 = vpop.eup %2842 }
 0x900   :  { %v2845_v20 = vpop.eup %2844  ;;  %v2136_v19 = vadd.f32 1.0, %v2843_v61  ;;  %2848 = vtanh.f32 %v2143_v11  ;;  %v4229_v11 = vld [vmem:[#allocation40_spill] sm:$0xff] }
 0x901   :  { %v2140_v45 = vadd.f32 1.0, %v2845_v20  ;;  %v1361_v61 = vadd.f32 %v4229_v11, %v3866_v17 }
 0x902   :  { %v2137_v22 = vmul.f32 0.5, %v2136_v19 }
 0x903   :  { %v2141_v25 = vmul.f32 0.5, %v2140_v45  ;;  %v2115_v59 = vpop.f32.mrf.mxu2  ;;  %v2128_v29 = vpop.f32.mrf.mxu3 }
 0x904   :  { %v2847_v58 = vpop.eup %2846  ;;  %v4230_v29 = vld [vmem:[#allocation41_spill] sm:$0xff] }
 0x905   :  { %v2147_v4 = vmul.f32 %v2141_v25, %v4056_v37  ;;  %v2148_v48 = vmul.f32 %v2847_v58, %v2137_v22  ;;  %v1402_v58 = vadd.f32 %v4230_v29, %v3874_v51 }
 0x906   :  { %v2849_v42 = vpop.eup %2848 }
 0x907   :  { %v2149_v18 = vadd.f32 %v2148_v48, %v2147_v4  ;;  %v2145_v55 = vadd.f32 1.0, %v2849_v42  ;;  %v4231_v4 = vld [vmem:[#allocation42_spill] sm:$0xff] }
 0x908   :  { %v1443_v48 = vadd.f32 %v4231_v4, %v3876_v41 }
 0x909   :  { %2850 = vtanh.f32 %v2149_v18  ;;  %v2146_v50 = vmul.f32 0.5, %v2145_v55 }
 0x90f   :  { %v2851_v27 = vpop.eup %2850 }
 0x910   :  { %v2151_v62 = vmul.f32 %v2851_v27, %v2146_v50 }
 0x912   :  { %2153 = vst [vmem:[#allocation12 + $0x28] sm:$0xff] %v2151_v62  ;;  %v2158_v54 = vpack.c.bf16 %v2151_v62, %v2151_v62 }
 0x914   :  { %2167 = vmatmul.bf16.vlgmr.msra.gmra.mxu0 %v2158_v54  ;;  %2180 = vmatmul.bf16.vlgmr.msra.gmra.mxu1 %v2158_v54 }
 0x915   :  { %2193 = vmatmul.bf16.vlgmr.msra.gmra.mxu2 %v2158_v54  ;;  %2206 = vmatmul.bf16.vlgmr.msra.gmra.mxu3 %v2158_v54 }
 0x991   :  { %v2168_v21 = vpop.f32.mrf.mxu0  ;;  %v2181_v9 = vpop.f32.mrf.mxu1 }
 0x992   :  { %v2211_v26 = vadd.f32 %v2168_v21, %v1317_v39  ;;  %v2212_v33 = vadd.f32 %v2181_v9, %v1358_v5 }
 0x994   :  { %v2215_v31 = vmul.f32 0.5, %v2211_v26  ;;  %v2219_v36 = vmul.f32 0.5, %v2212_v33 }
 0x996   :  { %2852 = vtanh.f32 %v2215_v31 }
 0x997   :  { %2854 = vtanh.f32 %v2219_v36 }
 0x998   :  { %v2194_v56 = vpop.f32.mrf.mxu2  ;;  %v2207_v37 = vpop.f32.mrf.mxu3 }
 0x999   :  { %v2213_v14 = vadd.f32 %v2194_v56, %v1399_v60  ;;  %v2214_v32 = vadd.f32 %v2207_v37, %v1440_v16  ;;  %v2170_v43 = vpop.f32.mrf.mxu0  ;;  %v2183_v24 = vpop.f32.mrf.mxu1 }
 0x99b   :  { %2856 = vtanh.f32 %v2213_v14  ;;  %v2224_v53 = vmul.f32 0.5, %v2214_v32 }
 0x99c   :  { %v2853_v23 = vpop.eup %2852 }
 0x99d   :  { %v2855_v52 = vpop.eup %2854  ;;  %v2217_v1 = vadd.f32 1.0, %v2853_v23  ;;  %2858 = vtanh.f32 %v2224_v53 }
 0x99e   :  { %v2221_v2 = vadd.f32 1.0, %v2855_v52 }
 0x99f   :  { %v2218_v12 = vmul.f32 0.5, %v2217_v1 }
 0x9a0   :  { %v2222_v3 = vmul.f32 0.5, %v2221_v2  ;;  %v2196_v10 = vpop.f32.mrf.mxu2  ;;  %v2209_v13 = vpop.f32.mrf.mxu3 }
 0x9a1   :  { %v2857_v35 = vpop.eup %2856 }
 0x9a2   :  { %v2228_v38 = vmul.f32 %v2222_v3, %v2149_v18  ;;  %v2229_v46 = vmul.f32 %v2857_v35, %v2218_v12 }
 0x9a3   :  { %v2859_v47 = vpop.eup %2858 }
 0x9a4   :  { %v2230_v63 = vadd.f32 %v2229_v46, %v2228_v38  ;;  %v2226_v0 = vadd.f32 1.0, %v2859_v47 }
 0x9a6   :  { %2860 = vtanh.f32 %v2230_v63  ;;  %v2227_v7 = vmul.f32 0.5, %v2226_v0 }
 0x9ac   :  { %v2861_v15 = vpop.eup %2860 }
 0x9ad   :  { %v2232_v30 = vmul.f32 %v2861_v15, %v2227_v7 }
 0x9af   :  { %2234 = vst [vmem:[#allocation12 + $0x30] sm:$0xff] %v2232_v30  ;;  %v2239_v44 = vpack.c.bf16 %v2232_v30, %v2232_v30 }
 0x9b1   :  { %2248 = vmatmul.bf16.vlgmr.msrb.gmra.mxu0 %v2239_v44  ;;  %2261 = vmatmul.bf16.vlgmr.msrb.gmra.mxu1 %v2239_v44 }
 0x9b2   :  { %2274 = vmatmul.bf16.vlgmr.msrb.gmra.mxu2 %v2239_v44  ;;  %2287 = vmatmul.bf16.vlgmr.msrb.gmra.mxu3 %v2239_v44 }
 0xa2e   :  { %v2249_v20 = vpop.f32.mrf.mxu0  ;;  %v2262_v19 = vpop.f32.mrf.mxu1 }
 0xa2f   :  { %v2292_v45 = vadd.f32 %v2249_v20, %v1320_v6  ;;  %v2293_v22 = vadd.f32 %v2262_v19, %v1361_v61 }
 0xa31   :  { %v2296_v25 = vmul.f32 0.5, %v2292_v45  ;;  %v2300_v59 = vmul.f32 0.5, %v2293_v22 }
 0xa33   :  { %2862 = vtanh.f32 %v2296_v25 }
 0xa34   :  { %2864 = vtanh.f32 %v2300_v59 }
 0xa35   :  { %v2275_v42 = vpop.f32.mrf.mxu2  ;;  %v2288_v18 = vpop.f32.mrf.mxu3 }
 0xa36   :  { %v2294_v57 = vadd.f32 %v2275_v42, %v1402_v58  ;;  %v2295_v55 = vadd.f32 %v2288_v18, %v1443_v48  ;;  %v2251_v50 = vpop.f32.mrf.mxu0  ;;  %v2264_v17 = vpop.f32.mrf.mxu1 }
 0xa38   :  { %2866 = vtanh.f32 %v2294_v57  ;;  %v2305_v27 = vmul.f32 0.5, %v2295_v55 }
 0xa39   :  { %v2863_v62 = vpop.eup %2862 }
 0xa3a   :  { %v2865_v54 = vpop.eup %2864  ;;  %v2298_v34 = vadd.f32 1.0, %v2863_v62  ;;  %2868 = vtanh.f32 %v2305_v27 }
 0xa3b   :  { %v2302_v39 = vadd.f32 1.0, %v2865_v54 }
 0xa3c   :  { %v2299_v28 = vmul.f32 0.5, %v2298_v34 }
 0xa3d   :  { %v2303_v5 = vmul.f32 0.5, %v2302_v39  ;;  %v2277_v51 = vpop.f32.mrf.mxu2  ;;  %v2290_v21 = vpop.f32.mrf.mxu3 }
 0xa3e   :  { %v2867_v9 = vpop.eup %2866 }
 0xa3f   :  { %v2309_v41 = vmul.f32 %v2303_v5, %v2230_v63  ;;  %v2310_v26 = vmul.f32 %v2867_v9, %v2299_v28 }
 0xa40   :  { %v2869_v33 = vpop.eup %2868 }
 0xa41   :  { %v2311_v31 = vadd.f32 %v2310_v26, %v2309_v41  ;;  %v2307_v36 = vadd.f32 1.0, %v2869_v33 }
 0xa43   :  { %2870 = vtanh.f32 %v2311_v31  ;;  %2319 = vst [vmem:[#allocation15 + $0x8] sm:$0xff] %v2311_v31  ;;  %v2308_v40 = vmul.f32 0.5, %v2307_v36 }
 0xa49   :  { %v2871_v60 = vpop.eup %2870 }
 0xa4a   :  { %v2313_v8 = vmul.f32 %v2871_v60, %v2308_v40 }
 0xa4c   :  { %2315 = vst [vmem:[#allocation12 + $0x38] sm:$0xff] %v2313_v8 }
 0xa4d   :  { %2317 = vst [vmem:[#allocation13 + $0x8] sm:$0xff] %v2313_v8  ;;  %2332 = dma.vmem_to_hbm [thread:$0]  %s2325_s3, 1024, %s2327_s25, [#allocation6], %s3054_s9, %s3054_s9, %s3055_s10  }
 0xa4e   :  { %2345 = dma.vmem_to_hbm [thread:$0]  %s2338_s27, 256, %s2340_s30, [#allocation14], %s3054_s9, %s3054_s9, %s3055_s10  }
 0xa4f   :  { %2358 = dma.vmem_to_hbm [thread:$0]  %s2351_s8, 256, %s2353_s12, [#allocation14], %s3054_s9, %s3054_s9, %s3055_s10  }
 0xa50   :  { %3046 = dma.done.wait [#allocation6], 1024  }
 0xa51   :  { %3047 = vsyncadd [#allocation6], 4294966272 }
 0xa52   :  { %3048 = dma.done.wait [#allocation14], 512  }
 0xa53   :  { %3049 = vsyncadd [#allocation14], 4294966784 }
 0xa54   :  { %2371 = vsyncpa [#allocation5], 1 }
 0xa55   :  { %2372 = vsyncpa [#allocation8], 1 }
 0xa56   :  { %2373 = vsyncpa [#allocation11], 1 }
 0xa57   :  { %2374 = vsyncpa [#allocation6], 1 }
 0xa58   :  { %2375 = vsyncpa [#allocation14], 1 }

</bundles_post_ra>
